<compile_context>
chip_gen: v7x
topology: tpu7x:2x2x1
jax: 0.10.0
libtpu: 0.0.40
codegen_flags: <defaults>
</compile_context>

<pallas_src>
import jax
import jax.numpy as jnp
from jax.experimental import pallas as pl
from jax.experimental.pallas import tpu as pltpu

TB = 128  # batch tile == lane width; fixed so every block / store is lane-dense.


def _round_up(n, m):
    return (n + m - 1) // m * m


def _attn_i_chunk(D, tb=TB, budget_bytes=6 << 20):
    """Rows of the (i, D, TB) f32 attention slab processed per inner step.

    Budgets ~3 concurrently-live f32 temporaries (s, p, p*v) so mid-size D does not
    silently spill; at the deployed D=16 this returns D (single, un-looped chunk).
    Only halves while the chunk still divides D.
    """
    per_row = 3 * D * tb * 4
    ic = D
    while ic > 8 and ic * per_row > budget_bytes and D % (ic // 2) == 0:
        ic //= 2
    return ic


def _vmem_limit_bytes():
    """Generation-aware VMEM budget: ~3/4 of physical, clamped to [32 MiB, 96 MiB].

    -> ~96 MiB on v5e/v6e (128 MiB physical), ~48 MiB on v7x (64 MiB physical).
    """
    try:
        phys = int(pltpu.get_tpu_info().vmem_capacity_bytes)
    except Exception:
        phys = 64 << 20  # conservative (v7x-sized) fallback
    return max(32 << 20, min(96 << 20, (phys * 3) // 4))


def _make_kernel(D, i_chunk, attn_scale):
    n_chunks = D // i_chunk

    def kernel(xT_ref, wqkv_ref, bqkv_ref, g1_ref, beta1_ref,
               w1_ref, b1_ref, g2_ref, beta2_ref, w2_ref, b2_ref, out_ref):
        xT_bf = xT_ref[...]                                    # (D, TB) bf16, batch on lanes
        xT = xT_bf.astype(jnp.float32)

        # Fused q/k/v projection: (3D, D) @ (D, TB); bf16 operands, f32 MXU accumulation.
        qkv = jnp.dot(wqkv_ref[...], xT_bf,
                      preferred_element_type=jnp.float32) + bqkv_ref[...]   # (3D, TB)
        # Batch-on-lanes makes the q/k/v split a sublane-aligned row slice (free at D=16).
        q = qkv[:D]                                            # (D, TB)
        k = qkv[D:2 * D]
        v = qkv[2 * D:]

        # Attention over the feature axis: scores[i,j,b] = attn_scale * q[i,b] * k[j,b].
        # Rank-1 outer product => the row max over j is analytic (no (i, D, TB) max-reduce).
        kmax = jnp.max(k, axis=0, keepdims=True)               # (1, TB)
        kmin = jnp.min(k, axis=0, keepdims=True)               # (1, TB)

        def attn_rows(qc):                                     # qc: (ic, TB) -> av: (ic, TB)
            m = attn_scale * jnp.where(qc >= 0.0, qc * kmax, qc * kmin)   # exact row max
            s = attn_scale * (qc[:, None, :] * k[None, :, :])             # (ic, D, TB)
            p = jnp.exp(s - m[:, None, :])                                # <= 1
            num = jnp.sum(p * v[None, :, :], axis=1)                      # (ic, TB)
            den = jnp.sum(p, axis=1)                                      # (ic, TB), >= 1
            # softmax @ v without normalizing the slab; EUP reciprocal (slot has slack).
            return num * pl.reciprocal(den, approx=True)

        if n_chunks == 1:
            av = attn_rows(q)
        else:
            # Large D: bound the live slab by chunking the i axis; TB stays 128.
            def body(c, acc):
                qc = jax.lax.dynamic_slice_in_dim(q, c * i_chunk, i_chunk, axis=0)
                return jax.lax.dynamic_update_slice_in_dim(
                    acc, attn_rows(qc), c * i_chunk, axis=0)
            av = jax.lax.fori_loop(0, n_chunks, body, jnp.zeros_like(q))

        xr = av + xT                                           # residual (x += x_)

        # LayerNorm1 over input_size (sublane axis), eps = 1e-5.
        mu1 = jnp.mean(xr, axis=0, keepdims=True)
        var1 = jnp.mean((xr - mu1) ** 2, axis=0, keepdims=True)
        xn1 = (xr - mu1) * jax.lax.rsqrt(var1 + 1e-5)
        xn1 = xn1 * g1_ref[...] + beta1_ref[...]               # (D, 1) params, lane-broadcast

        # fc1: (H, D) @ (D, TB), then LeakyReLU(0.5).
        h = jnp.dot(w1_ref[...], xn1.astype(jnp.bfloat16),
                    preferred_element_type=jnp.float32) + b1_ref[...]      # (H, TB)
        h = jnp.where(h >= 0.0, h, 0.5 * h)
        # TODO(synk): Dropout(0.1) is identity in eval mode; training-mode masking would
        # use pltpu.prng_seed + pltpu.prng_random_bits.

        # LayerNorm2 over hidden_size (sublane axis), eps = 1e-5.
        mu2 = jnp.mean(h, axis=0, keepdims=True)
        var2 = jnp.mean((h - mu2) ** 2, axis=0, keepdims=True)
        hn = (h - mu2) * jax.lax.rsqrt(var2 + 1e-5)
        hn = hn * g2_ref[...] + beta2_ref[...]

        # fc2: (1, H) @ (H, TB) -> lane-dense (1, TB) output slab; scalar bias from SMEM.
        o = jnp.dot(w2_ref[...], hn.astype(jnp.bfloat16),
                    preferred_element_type=jnp.float32) + b2_ref[0]
        out_ref[...] = o.astype(out_ref.dtype)

    return kernel


def make_params(key, input_size, hidden_size):
    """PyTorch-layout params: Linear w (out, in), b (out,); LayerNorm = (ones, zeros)."""
    ks = jax.random.split(key, 10)

    def lin(kw, kb, out_f, in_f):
        bound = 1.0 / (in_f ** 0.5)
        w = jax.random.uniform(kw, (out_f, in_f), jnp.float32, -bound, bound)
        b = jax.random.uniform(kb, (out_f,), jnp.float32, -bound, bound)
        return w, b

    wq, bq = lin(ks[0], ks[1], input_size, input_size)
    wk, bk = lin(ks[2], ks[3], input_size, input_size)
    wv, bv = lin(ks[4], ks[5], input_size, input_size)
    w1, b1 = lin(ks[6], ks[7], hidden_size, input_size)
    w2, b2 = lin(ks[8], ks[9], 1, hidden_size)
    g1 = jnp.ones((input_size,), jnp.float32)
    beta1 = jnp.zeros((input_size,), jnp.float32)
    g2 = jnp.ones((hidden_size,), jnp.float32)
    beta2 = jnp.zeros((hidden_size,), jnp.float32)
    return (wq, bq, wk, bk, wv, bv, g1, beta1, w1, b1, g2, beta2, w2, b2)


def pack_params(raw):
    """Re-pack for the batch-on-lanes kernel (free at trace time).

    Weights keep the PyTorch (out, in) layout (left-multiply x^T): fused qkv (3D, D),
    fc1 (H, D), fc2 (1, H) in bf16.  Biases / LN params become f32 (rows, 1) columns;
    the fc2 bias is a (1,) f32 scalar destined for SMEM.
    """
    (wq, bq, wk, bk, wv, bv, g1, beta1, w1, b1, g2, beta2, w2, b2) = raw
    col = lambda a: a.reshape(-1, 1).astype(jnp.float32)
    wqkv = jnp.concatenate([wq, wk, wv], axis=0).astype(jnp.bfloat16)    # (3D, D)
    bqkv = col(jnp.concatenate([bq, bk, bv], axis=0))                    # (3D, 1)
    return (wqkv, bqkv, col(g1), col(beta1),
            w1.astype(jnp.bfloat16), col(b1),
            col(g2), col(beta2),
            w2.astype(jnp.bfloat16), b2.reshape(1).astype(jnp.float32))


def transformer_regressor(x, packed):
    (wqkv, bqkv, g1, beta1, w1, b1, g2, beta2, w2, b2) = packed
    B, D = x.shape
    H = w1.shape[0]

    # TB fixed at 128: lane-dense blocks, unmasked stores, and (when B > 128) G >= 2 so
    # the ("parallel",) batch axis can be sharded across v7x's two TensorCores.
    B_pad = _round_up(B, TB)
    G = B_pad // TB
    xT = jnp.pad(x.T.astype(jnp.bfloat16), ((0, 0), (0, B_pad - B)))     # (D, B_pad)

    # PyTorch divides by q.size(-1)**0.5 with q of shape (B, D, 1) => scale is exactly 1.
    attn_scale = 1.0
    kernel = _make_kernel(D, _attn_i_chunk(D), attn_scale)

    def build(single_buffer_weights):
        if single_buffer_weights:
            # Resident (constant index_map) weights: a single buffer halves their VMEM.
            res = lambda s: pl.BlockSpec(s, lambda i: (0, 0),
                                         pipeline_mode=pl.Buffered(1))
        else:
            res = lambda s: pl.BlockSpec(s, lambda i: (0, 0))
        return pl.pallas_call(
            kernel,
            out_shape=jax.ShapeDtypeStruct((1, B_pad), jnp.float32),
            grid=(G,),
            in_specs=[
                pl.BlockSpec((D, TB), lambda i: (0, i)),        # x^T, batch-tiled on lanes
                res((3 * D, D)), res((3 * D, 1)),               # fused qkv W, b
                res((D, 1)), res((D, 1)),                       # LayerNorm1 gamma, beta
                res((H, D)), res((H, 1)),                       # fc1 W, b
                res((H, 1)), res((H, 1)),                       # LayerNorm2 gamma, beta
                res((1, H)),                                    # fc2 W row
                pl.BlockSpec(memory_space=pltpu.MemorySpace.SMEM),  # fc2 bias (scalar)
            ],
            out_specs=pl.BlockSpec((1, TB), lambda i: (0, i)),  # lane-dense output slab
            compiler_params=pltpu.CompilerParams(
                dimension_semantics=("parallel",),
                vmem_limit_bytes=_vmem_limit_bytes(),
            ),
        )

    args = (xT, wqkv, bqkv, g1, beta1, w1, b1, g2, beta2, w2, b2)
    try:
        out = build(True)(*args)
    except Exception:
        # This JAX build rejected pipeline_mode=pl.Buffered(1); fall back to defaults.
        out = build(False)(*args)
    return out[0, :B]                                           # un-pad -> (B,)


def _reference(x, raw):
    """Pure-JAX reference mirroring the kernel's bf16 matmul rounding (f32 otherwise)."""
    (wq, bq, wk, bk, wv, bv, g1, beta1, w1, b1, g2, beta2, w2, b2) = raw
    bf = lambda a: a.astype(jnp.bfloat16).astype(jnp.float32)
    xb = bf(x)
    q = xb @ bf(wq).T + bq
    k = xb @ bf(wk).T + bk
    v = xb @ bf(wv).T + bv
    # q.unsqueeze(2) has size(-1) == 1 in the PyTorch code => softmax scale is 1.0.
    scores = q[:, :, None] * k[:, None, :]
    att = jax.nn.softmax(scores, axis=-1)
    xr = jnp.einsum("bij,bj->bi", att, v) + xb
    mu = xr.mean(-1, keepdims=True)
    var = ((xr - mu) ** 2).mean(-1, keepdims=True)
    xn = (xr - mu) / jnp.sqrt(var + 1e-5) * g1 + beta1
    h = bf(xn) @ bf(w1).T + b1
    h = jnp.where(h >= 0, h, 0.5 * h)
    mu2 = h.mean(-1, keepdims=True)
    var2 = ((h - mu2) ** 2).mean(-1, keepdims=True)
    hn = (h - mu2) / jnp.sqrt(var2 + 1e-5) * g2 + beta2
    return (bf(hn) @ bf(w2).T + b2)[:, 0]


if __name__ == "__main__":
    key = jax.random.PRNGKey(0)
    B, input_size, hidden_size = 8, 16, 32
    kx, kp = jax.random.split(key)
    x = jax.random.normal(kx, (B, input_size), jnp.float32)
    raw_params = make_params(kp, input_size, hidden_size)
    packed_params = pack_params(raw_params)

    y = transformer_regressor(x, packed_params)
    jax.block_until_ready(y)
    assert y.shape == (B,), y.shape

    y_ref = _reference(x, raw_params)
    assert jnp.allclose(y, y_ref, atol=1e-3, rtol=1e-3), (y, y_ref)

    print("KERNEL_OK")
</pallas_src>

<mosaic_0001>
module attributes {stable_mosaic.version = 11 : i64} {
  func.func @kernel(%arg0: i32, %arg1: memref<16x128xbf16, #tpu.memory_space<vmem>>, %arg2: memref<48x16xbf16, #tpu.memory_space<vmem>>, %arg3: memref<48x1xf32, #tpu.memory_space<vmem>>, %arg4: memref<16x1xf32, #tpu.memory_space<vmem>>, %arg5: memref<16x1xf32, #tpu.memory_space<vmem>>, %arg6: memref<32x16xbf16, #tpu.memory_space<vmem>>, %arg7: memref<32x1xf32, #tpu.memory_space<vmem>>, %arg8: memref<32x1xf32, #tpu.memory_space<vmem>>, %arg9: memref<32x1xf32, #tpu.memory_space<vmem>>, %arg10: memref<1x32xbf16, #tpu.memory_space<vmem>>, %arg11: memref<1xf32, #tpu.memory_space<smem>>, %arg12: memref<1x128xf32, #tpu.memory_space<vmem>>) attributes {dimension_semantics = [#tpu.dimension_semantics<parallel>], iteration_bounds = array<i64: 1>, scalar_prefetch = 0 : i64, scratch_operands = 0 : i64, tpu.core_type = #tpu.core_type<tc>, window_params = [{transform_indices = @transform_0, window_bounds = array<i64: 16, 128>}, {pipeline_mode = #tpu.pipeline_mode<synchronous>, transform_indices = @transform_1, window_bounds = array<i64: 48, 16>}, {pipeline_mode = #tpu.pipeline_mode<synchronous>, transform_indices = @transform_2, window_bounds = array<i64: 48, 1>}, {pipeline_mode = #tpu.pipeline_mode<synchronous>, transform_indices = @transform_3, window_bounds = array<i64: 16, 1>}, {pipeline_mode = #tpu.pipeline_mode<synchronous>, transform_indices = @transform_4, window_bounds = array<i64: 16, 1>}, {pipeline_mode = #tpu.pipeline_mode<synchronous>, transform_indices = @transform_5, window_bounds = array<i64: 32, 16>}, {pipeline_mode = #tpu.pipeline_mode<synchronous>, transform_indices = @transform_6, window_bounds = array<i64: 32, 1>}, {pipeline_mode = #tpu.pipeline_mode<synchronous>, transform_indices = @transform_7, window_bounds = array<i64: 32, 1>}, {pipeline_mode = #tpu.pipeline_mode<synchronous>, transform_indices = @transform_8, window_bounds = array<i64: 32, 1>}, {pipeline_mode = #tpu.pipeline_mode<synchronous>, transform_indices = @transform_9, window_bounds = array<i64: 1, 32>}, {transform_indices = @transform_10, window_bounds = array<i64: 1>}, {transform_indices = @transform_11, window_bounds = array<i64: 1, 128>}]} {
    %c0 = arith.constant 0 : index
    %c0_0 = arith.constant 0 : index
    %0 = vector.load %arg1[%c0, %c0_0] : memref<16x128xbf16, #tpu.memory_space<vmem>>, vector<16x128xbf16>
    %1 = arith.extf %0 : vector<16x128xbf16> to vector<16x128xf32>
    %c0_1 = arith.constant 0 : index
    %c0_2 = arith.constant 0 : index
    %2 = vector.load %arg2[%c0_1, %c0_2] : memref<48x16xbf16, #tpu.memory_space<vmem>>, vector<48x16xbf16>
    %cst = arith.constant dense<0.000000e+00> : vector<48x128xf32>
    %3 = tpu.matmul %2, %0, %cst {dimension_numbers = #tpu.dot_dimension_numbers<[1], [0], [0], [1], [0, 0, 1, 1], [], []>} : vector<48x16xbf16>, vector<16x128xbf16>, vector<48x128xf32> -> vector<48x128xf32>
    %c0_3 = arith.constant 0 : index
    %c0_4 = arith.constant 0 : index
    %4 = vector.load %arg3[%c0_3, %c0_4] : memref<48x1xf32, #tpu.memory_space<vmem>>, vector<48x1xf32>
    %5 = vector.broadcast %4 : vector<48x1xf32> to vector<48x128xf32>
    %6 = arith.addf %3, %5 : vector<48x128xf32>
    %7 = vector.extract_strided_slice %6 {offsets = [0, 0], sizes = [16, 128], strides = [1, 1]} : vector<48x128xf32> to vector<16x128xf32>
    %8 = vector.extract_strided_slice %6 {offsets = [16, 0], sizes = [16, 128], strides = [1, 1]} : vector<48x128xf32> to vector<16x128xf32>
    %9 = vector.extract_strided_slice %6 {offsets = [32, 0], sizes = [16, 128], strides = [1, 1]} : vector<48x128xf32> to vector<16x128xf32>
    %cst_5 = arith.constant dense<0xFF800000> : vector<128xf32>
    %10 = vector.multi_reduction <maximumf>, %8, %cst_5 [0] : vector<16x128xf32> to vector<128xf32>
    %11 = vector.shape_cast %10 : vector<128xf32> to vector<1x128xf32>
    %cst_6 = arith.constant dense<0x7F800000> : vector<128xf32>
    %12 = vector.multi_reduction <minimumf>, %8, %cst_6 [0] : vector<16x128xf32> to vector<128xf32>
    %13 = vector.shape_cast %12 : vector<128xf32> to vector<1x128xf32>
    %cst_7 = arith.constant 0.000000e+00 : f32
    %14 = vector.broadcast %cst_7 : f32 to vector<16x128xf32>
    %15 = arith.cmpf oge, %7, %14 : vector<16x128xf32>
    %16 = vector.broadcast %11 : vector<1x128xf32> to vector<16x128xf32>
    %17 = arith.mulf %7, %16 : vector<16x128xf32>
    %18 = vector.broadcast %13 : vector<1x128xf32> to vector<16x128xf32>
    %19 = arith.mulf %7, %18 : vector<16x128xf32>
    %20 = arith.select %15, %17, %19 : vector<16x128xi1>, vector<16x128xf32>
    %cst_8 = arith.constant 1.000000e+00 : f32
    %21 = vector.broadcast %cst_8 : f32 to vector<16x128xf32>
    %22 = arith.mulf %21, %20 : vector<16x128xf32>
    %23 = vector.shape_cast %7 : vector<16x128xf32> to vector<16x1x128xf32>
    %24 = vector.shape_cast %8 : vector<16x128xf32> to vector<1x16x128xf32>
    %25 = vector.broadcast %23 : vector<16x1x128xf32> to vector<16x16x128xf32>
    %26 = vector.broadcast %24 : vector<1x16x128xf32> to vector<16x16x128xf32>
    %27 = arith.mulf %25, %26 : vector<16x16x128xf32>
    %cst_9 = arith.constant 1.000000e+00 : f32
    %28 = vector.broadcast %cst_9 : f32 to vector<16x16x128xf32>
    %29 = arith.mulf %28, %27 : vector<16x16x128xf32>
    %30 = vector.shape_cast %22 : vector<16x128xf32> to vector<16x1x128xf32>
    %31 = vector.broadcast %30 : vector<16x1x128xf32> to vector<16x16x128xf32>
    %32 = arith.subf %29, %31 : vector<16x16x128xf32>
    %33 = math.exp %32 : vector<16x16x128xf32>
    %34 = vector.shape_cast %9 : vector<16x128xf32> to vector<1x16x128xf32>
    %35 = vector.broadcast %34 : vector<1x16x128xf32> to vector<16x16x128xf32>
    %36 = arith.mulf %33, %35 : vector<16x16x128xf32>
    %cst_10 = arith.constant dense<0.000000e+00> : vector<16x128xf32>
    %37 = vector.multi_reduction <add>, %36, %cst_10 [1] : vector<16x16x128xf32> to vector<16x128xf32>
    %cst_11 = arith.constant dense<0.000000e+00> : vector<16x128xf32>
    %38 = vector.multi_reduction <add>, %33, %cst_11 [1] : vector<16x16x128xf32> to vector<16x128xf32>
    %39 = tpu.reciprocal %38 {approx = true} : vector<16x128xf32> -> vector<16x128xf32>
    %40 = arith.mulf %37, %39 : vector<16x128xf32>
    %41 = arith.addf %40, %1 : vector<16x128xf32>
    %cst_12 = arith.constant dense<0.000000e+00> : vector<128xf32>
    %42 = vector.multi_reduction <add>, %41, %cst_12 [0] : vector<16x128xf32> to vector<128xf32>
    %43 = vector.shape_cast %42 : vector<128xf32> to vector<1x128xf32>
    %cst_13 = arith.constant 1.600000e+01 : f32
    %44 = vector.broadcast %cst_13 : f32 to vector<1x128xf32>
    %45 = arith.divf %43, %44 : vector<1x128xf32>
    %46 = vector.broadcast %45 : vector<1x128xf32> to vector<16x128xf32>
    %47 = arith.subf %41, %46 : vector<16x128xf32>
    %48 = arith.mulf %47, %47 : vector<16x128xf32>
    %cst_14 = arith.constant dense<0.000000e+00> : vector<128xf32>
    %49 = vector.multi_reduction <add>, %48, %cst_14 [0] : vector<16x128xf32> to vector<128xf32>
    %50 = vector.shape_cast %49 : vector<128xf32> to vector<1x128xf32>
    %cst_15 = arith.constant 1.600000e+01 : f32
    %51 = vector.broadcast %cst_15 : f32 to vector<1x128xf32>
    %52 = arith.divf %50, %51 : vector<1x128xf32>
    %53 = vector.broadcast %45 : vector<1x128xf32> to vector<16x128xf32>
    %54 = arith.subf %41, %53 : vector<16x128xf32>
    %cst_16 = arith.constant 9.99999974E-6 : f32
    %55 = vector.broadcast %cst_16 : f32 to vector<1x128xf32>
    %56 = arith.addf %52, %55 : vector<1x128xf32>
    %57 = math.rsqrt %56 : vector<1x128xf32>
    %58 = vector.broadcast %57 : vector<1x128xf32> to vector<16x128xf32>
    %59 = arith.mulf %54, %58 : vector<16x128xf32>
    %c0_17 = arith.constant 0 : index
    %c0_18 = arith.constant 0 : index
    %60 = vector.load %arg4[%c0_17, %c0_18] : memref<16x1xf32, #tpu.memory_space<vmem>>, vector<16x1xf32>
    %61 = vector.broadcast %60 : vector<16x1xf32> to vector<16x128xf32>
    %62 = arith.mulf %59, %61 : vector<16x128xf32>
    %c0_19 = arith.constant 0 : index
    %c0_20 = arith.constant 0 : index
    %63 = vector.load %arg5[%c0_19, %c0_20] : memref<16x1xf32, #tpu.memory_space<vmem>>, vector<16x1xf32>
    %64 = vector.broadcast %63 : vector<16x1xf32> to vector<16x128xf32>
    %65 = arith.addf %62, %64 : vector<16x128xf32>
    %c0_21 = arith.constant 0 : index
    %c0_22 = arith.constant 0 : index
    %66 = vector.load %arg6[%c0_21, %c0_22] : memref<32x16xbf16, #tpu.memory_space<vmem>>, vector<32x16xbf16>
    %67 = arith.truncf %65 : vector<16x128xf32> to vector<16x128xbf16>
    %cst_23 = arith.constant dense<0.000000e+00> : vector<32x128xf32>
    %68 = tpu.matmul %66, %67, %cst_23 {dimension_numbers = #tpu.dot_dimension_numbers<[1], [0], [0], [1], [0, 0, 1, 1], [], []>} : vector<32x16xbf16>, vector<16x128xbf16>, vector<32x128xf32> -> vector<32x128xf32>
    %c0_24 = arith.constant 0 : index
    %c0_25 = arith.constant 0 : index
    %69 = vector.load %arg7[%c0_24, %c0_25] : memref<32x1xf32, #tpu.memory_space<vmem>>, vector<32x1xf32>
    %70 = vector.broadcast %69 : vector<32x1xf32> to vector<32x128xf32>
    %71 = arith.addf %68, %70 : vector<32x128xf32>
    %cst_26 = arith.constant 0.000000e+00 : f32
    %72 = vector.broadcast %cst_26 : f32 to vector<32x128xf32>
    %73 = arith.cmpf oge, %71, %72 : vector<32x128xf32>
    %cst_27 = arith.constant 5.000000e-01 : f32
    %74 = vector.broadcast %cst_27 : f32 to vector<32x128xf32>
    %75 = arith.mulf %74, %71 : vector<32x128xf32>
    %76 = arith.select %73, %71, %75 : vector<32x128xi1>, vector<32x128xf32>
    %cst_28 = arith.constant dense<0.000000e+00> : vector<128xf32>
    %77 = vector.multi_reduction <add>, %76, %cst_28 [0] : vector<32x128xf32> to vector<128xf32>
    %78 = vector.shape_cast %77 : vector<128xf32> to vector<1x128xf32>
    %cst_29 = arith.constant 3.200000e+01 : f32
    %79 = vector.broadcast %cst_29 : f32 to vector<1x128xf32>
    %80 = arith.divf %78, %79 : vector<1x128xf32>
    %81 = vector.broadcast %80 : vector<1x128xf32> to vector<32x128xf32>
    %82 = arith.subf %76, %81 : vector<32x128xf32>
    %83 = arith.mulf %82, %82 : vector<32x128xf32>
    %cst_30 = arith.constant dense<0.000000e+00> : vector<128xf32>
    %84 = vector.multi_reduction <add>, %83, %cst_30 [0] : vector<32x128xf32> to vector<128xf32>
    %85 = vector.shape_cast %84 : vector<128xf32> to vector<1x128xf32>
    %cst_31 = arith.constant 3.200000e+01 : f32
    %86 = vector.broadcast %cst_31 : f32 to vector<1x128xf32>
    %87 = arith.divf %85, %86 : vector<1x128xf32>
    %88 = vector.broadcast %80 : vector<1x128xf32> to vector<32x128xf32>
    %89 = arith.subf %76, %88 : vector<32x128xf32>
    %cst_32 = arith.constant 9.99999974E-6 : f32
    %90 = vector.broadcast %cst_32 : f32 to vector<1x128xf32>
    %91 = arith.addf %87, %90 : vector<1x128xf32>
    %92 = math.rsqrt %91 : vector<1x128xf32>
    %93 = vector.broadcast %92 : vector<1x128xf32> to vector<32x128xf32>
    %94 = arith.mulf %89, %93 : vector<32x128xf32>
    %c0_33 = arith.constant 0 : index
    %c0_34 = arith.constant 0 : index
    %95 = vector.load %arg8[%c0_33, %c0_34] : memref<32x1xf32, #tpu.memory_space<vmem>>, vector<32x1xf32>
    %96 = vector.broadcast %95 : vector<32x1xf32> to vector<32x128xf32>
    %97 = arith.mulf %94, %96 : vector<32x128xf32>
    %c0_35 = arith.constant 0 : index
    %c0_36 = arith.constant 0 : index
    %98 = vector.load %arg9[%c0_35, %c0_36] : memref<32x1xf32, #tpu.memory_space<vmem>>, vector<32x1xf32>
    %99 = vector.broadcast %98 : vector<32x1xf32> to vector<32x128xf32>
    %100 = arith.addf %97, %99 : vector<32x128xf32>
    %c0_37 = arith.constant 0 : index
    %c0_38 = arith.constant 0 : index
    %101 = vector.load %arg10[%c0_37, %c0_38] : memref<1x32xbf16, #tpu.memory_space<vmem>>, vector<1x32xbf16>
    %102 = arith.truncf %100 : vector<32x128xf32> to vector<32x128xbf16>
    %cst_39 = arith.constant dense<0.000000e+00> : vector<1x128xf32>
    %103 = tpu.matmul %101, %102, %cst_39 {dimension_numbers = #tpu.dot_dimension_numbers<[1], [0], [0], [1], [0, 0, 1, 1], [], []>} : vector<1x32xbf16>, vector<32x128xbf16>, vector<1x128xf32> -> vector<1x128xf32>
    %c0_40 = arith.constant 0 : index
    %104 = memref.load %arg11[%c0_40] : memref<1xf32, #tpu.memory_space<smem>>
    %105 = vector.broadcast %104 : f32 to vector<1x128xf32>
    %106 = arith.addf %103, %105 : vector<1x128xf32>
    %c0_41 = arith.constant 0 : index
    %c0_42 = arith.constant 0 : index
    %107 = vector.load %arg12[%c0_41, %c0_42] : memref<1x128xf32, #tpu.memory_space<vmem>>, vector<1x128xf32>
    tpu.vector_store %arg12[%c0_41, %c0_42], %106 {strides = array<i32>} : memref<1x128xf32, #tpu.memory_space<vmem>>, vector<1x128xf32>,
    return
  }
  func.func @transform_0(%arg0: i32) -> (i32, i32) {
    %c0_i32 = arith.constant 0 : i32
    %c0_i32_0 = arith.constant 0 : i32
    return %c0_i32, %arg0 : i32, i32
  }
  func.func @transform_1(%arg0: i32) -> (i32, i32) {
    %c0_i32 = arith.constant 0 : i32
    %c0_i32_0 = arith.constant 0 : i32
    %c0_i32_1 = arith.constant 0 : i32
    return %c0_i32, %c0_i32_0 : i32, i32
  }
  func.func @transform_2(%arg0: i32) -> (i32, i32) {
    %c0_i32 = arith.constant 0 : i32
    %c0_i32_0 = arith.constant 0 : i32
    %c0_i32_1 = arith.constant 0 : i32
    return %c0_i32, %c0_i32_0 : i32, i32
  }
  func.func @transform_3(%arg0: i32) -> (i32, i32) {
    %c0_i32 = arith.constant 0 : i32
    %c0_i32_0 = arith.constant 0 : i32
    %c0_i32_1 = arith.constant 0 : i32
    return %c0_i32, %c0_i32_0 : i32, i32
  }
  func.func @transform_4(%arg0: i32) -> (i32, i32) {
    %c0_i32 = arith.constant 0 : i32
    %c0_i32_0 = arith.constant 0 : i32
    %c0_i32_1 = arith.constant 0 : i32
    return %c0_i32, %c0_i32_0 : i32, i32
  }
  func.func @transform_5(%arg0: i32) -> (i32, i32) {
    %c0_i32 = arith.constant 0 : i32
    %c0_i32_0 = arith.constant 0 : i32
    %c0_i32_1 = arith.constant 0 : i32
    return %c0_i32, %c0_i32_0 : i32, i32
  }
  func.func @transform_6(%arg0: i32) -> (i32, i32) {
    %c0_i32 = arith.constant 0 : i32
    %c0_i32_0 = arith.constant 0 : i32
    %c0_i32_1 = arith.constant 0 : i32
    return %c0_i32, %c0_i32_0 : i32, i32
  }
  func.func @transform_7(%arg0: i32) -> (i32, i32) {
    %c0_i32 = arith.constant 0 : i32
    %c0_i32_0 = arith.constant 0 : i32
    %c0_i32_1 = arith.constant 0 : i32
    return %c0_i32, %c0_i32_0 : i32, i32
  }
  func.func @transform_8(%arg0: i32) -> (i32, i32) {
    %c0_i32 = arith.constant 0 : i32
    %c0_i32_0 = arith.constant 0 : i32
    %c0_i32_1 = arith.constant 0 : i32
    return %c0_i32, %c0_i32_0 : i32, i32
  }
  func.func @transform_9(%arg0: i32) -> (i32, i32) {
    %c0_i32 = arith.constant 0 : i32
    %c0_i32_0 = arith.constant 0 : i32
    %c0_i32_1 = arith.constant 0 : i32
    return %c0_i32, %c0_i32_0 : i32, i32
  }
  func.func @transform_10(%arg0: i32) -> i32 {
    %c0_i32 = arith.constant 0 : i32
    %c0_i32_0 = arith.constant 0 : i32
    return %c0_i32 : i32
  }
  func.func @transform_11(%arg0: i32) -> (i32, i32) {
    %c0_i32 = arith.constant 0 : i32
    %c0_i32_0 = arith.constant 0 : i32
    return %c0_i32, %arg0 : i32, i32
  }
}

module attributes {stable_mosaic.version = 11 : i64} {
  func.func @kernel(%arg0: i32, %arg1: memref<16x128xbf16, #tpu.memory_space<vmem>>, %arg2: memref<48x16xbf16, #tpu.memory_space<vmem>>, %arg3: memref<48x1xf32, #tpu.memory_space<vmem>>, %arg4: memref<16x1xf32, #tpu.memory_space<vmem>>, %arg5: memref<16x1xf32, #tpu.memory_space<vmem>>, %arg6: memref<32x16xbf16, #tpu.memory_space<vmem>>, %arg7: memref<32x1xf32, #tpu.memory_space<vmem>>, %arg8: memref<32x1xf32, #tpu.memory_space<vmem>>, %arg9: memref<32x1xf32, #tpu.memory_space<vmem>>, %arg10: memref<1x32xbf16, #tpu.memory_space<vmem>>, %arg11: memref<1xf32, #tpu.memory_space<smem>>, %arg12: memref<1x128xf32, #tpu.memory_space<vmem>>) attributes {dimension_semantics = [#tpu.dimension_semantics<parallel>], iteration_bounds = array<i64: 1>, scalar_prefetch = 0 : i64, scratch_operands = 0 : i64, tpu.core_type = #tpu.core_type<tc>, window_params = [{transform_indices = @transform_0, window_bounds = array<i64: 16, 128>}, {pipeline_mode = #tpu.pipeline_mode<synchronous>, transform_indices = @transform_1, window_bounds = array<i64: 48, 16>}, {pipeline_mode = #tpu.pipeline_mode<synchronous>, transform_indices = @transform_2, window_bounds = array<i64: 48, 1>}, {pipeline_mode = #tpu.pipeline_mode<synchronous>, transform_indices = @transform_3, window_bounds = array<i64: 16, 1>}, {pipeline_mode = #tpu.pipeline_mode<synchronous>, transform_indices = @transform_4, window_bounds = array<i64: 16, 1>}, {pipeline_mode = #tpu.pipeline_mode<synchronous>, transform_indices = @transform_5, window_bounds = array<i64: 32, 16>}, {pipeline_mode = #tpu.pipeline_mode<synchronous>, transform_indices = @transform_6, window_bounds = array<i64: 32, 1>}, {pipeline_mode = #tpu.pipeline_mode<synchronous>, transform_indices = @transform_7, window_bounds = array<i64: 32, 1>}, {pipeline_mode = #tpu.pipeline_mode<synchronous>, transform_indices = @transform_8, window_bounds = array<i64: 32, 1>}, {pipeline_mode = #tpu.pipeline_mode<synchronous>, transform_indices = @transform_9, window_bounds = array<i64: 1, 32>}, {transform_indices = @transform_10, window_bounds = array<i64: 1>}, {transform_indices = @transform_11, window_bounds = array<i64: 1, 128>}]} {
    %c0 = arith.constant 0 : index
    %c0_0 = arith.constant 0 : index
    %0 = vector.load %arg1[%c0, %c0_0] : memref<16x128xbf16, #tpu.memory_space<vmem>>, vector<16x128xbf16>
    %1 = arith.extf %0 : vector<16x128xbf16> to vector<16x128xf32>
    %c0_1 = arith.constant 0 : index
    %c0_2 = arith.constant 0 : index
    %2 = vector.load %arg2[%c0_1, %c0_2] : memref<48x16xbf16, #tpu.memory_space<vmem>>, vector<48x16xbf16>
    %cst = arith.constant dense<0.000000e+00> : vector<48x128xf32>
    %3 = tpu.matmul %2, %0, %cst {dimension_numbers = #tpu.dot_dimension_numbers<[1], [0], [0], [1], [0, 0, 1, 1], [], []>} : vector<48x16xbf16>, vector<16x128xbf16>, vector<48x128xf32> -> vector<48x128xf32>
    %c0_3 = arith.constant 0 : index
    %c0_4 = arith.constant 0 : index
    %4 = vector.load %arg3[%c0_3, %c0_4] : memref<48x1xf32, #tpu.memory_space<vmem>>, vector<48x1xf32>
    %5 = vector.broadcast %4 : vector<48x1xf32> to vector<48x128xf32>
    %6 = arith.addf %3, %5 : vector<48x128xf32>
    %7 = vector.extract_strided_slice %6 {offsets = [0, 0], sizes = [16, 128], strides = [1, 1]} : vector<48x128xf32> to vector<16x128xf32>
    %8 = vector.extract_strided_slice %6 {offsets = [16, 0], sizes = [16, 128], strides = [1, 1]} : vector<48x128xf32> to vector<16x128xf32>
    %9 = vector.extract_strided_slice %6 {offsets = [32, 0], sizes = [16, 128], strides = [1, 1]} : vector<48x128xf32> to vector<16x128xf32>
    %cst_5 = arith.constant dense<0xFF800000> : vector<128xf32>
    %10 = vector.multi_reduction <maximumf>, %8, %cst_5 [0] : vector<16x128xf32> to vector<128xf32>
    %11 = vector.shape_cast %10 : vector<128xf32> to vector<1x128xf32>
    %cst_6 = arith.constant dense<0x7F800000> : vector<128xf32>
    %12 = vector.multi_reduction <minimumf>, %8, %cst_6 [0] : vector<16x128xf32> to vector<128xf32>
    %13 = vector.shape_cast %12 : vector<128xf32> to vector<1x128xf32>
    %cst_7 = arith.constant 0.000000e+00 : f32
    %14 = vector.broadcast %cst_7 : f32 to vector<16x128xf32>
    %15 = arith.cmpf oge, %7, %14 : vector<16x128xf32>
    %16 = vector.broadcast %11 : vector<1x128xf32> to vector<16x128xf32>
    %17 = arith.mulf %7, %16 : vector<16x128xf32>
    %18 = vector.broadcast %13 : vector<1x128xf32> to vector<16x128xf32>
    %19 = arith.mulf %7, %18 : vector<16x128xf32>
    %20 = arith.select %15, %17, %19 : vector<16x128xi1>, vector<16x128xf32>
    %cst_8 = arith.constant 1.000000e+00 : f32
    %21 = vector.broadcast %cst_8 : f32 to vector<16x128xf32>
    %22 = arith.mulf %21, %20 : vector<16x128xf32>
    %23 = vector.shape_cast %7 : vector<16x128xf32> to vector<16x1x128xf32>
    %24 = vector.shape_cast %8 : vector<16x128xf32> to vector<1x16x128xf32>
    %25 = vector.broadcast %23 : vector<16x1x128xf32> to vector<16x16x128xf32>
    %26 = vector.broadcast %24 : vector<1x16x128xf32> to vector<16x16x128xf32>
    %27 = arith.mulf %25, %26 : vector<16x16x128xf32>
    %cst_9 = arith.constant 1.000000e+00 : f32
    %28 = vector.broadcast %cst_9 : f32 to vector<16x16x128xf32>
    %29 = arith.mulf %28, %27 : vector<16x16x128xf32>
    %30 = vector.shape_cast %22 : vector<16x128xf32> to vector<16x1x128xf32>
    %31 = vector.broadcast %30 : vector<16x1x128xf32> to vector<16x16x128xf32>
    %32 = arith.subf %29, %31 : vector<16x16x128xf32>
    %33 = math.exp %32 : vector<16x16x128xf32>
    %34 = vector.shape_cast %9 : vector<16x128xf32> to vector<1x16x128xf32>
    %35 = vector.broadcast %34 : vector<1x16x128xf32> to vector<16x16x128xf32>
    %36 = arith.mulf %33, %35 : vector<16x16x128xf32>
    %cst_10 = arith.constant dense<0.000000e+00> : vector<16x128xf32>
    %37 = vector.multi_reduction <add>, %36, %cst_10 [1] : vector<16x16x128xf32> to vector<16x128xf32>
    %cst_11 = arith.constant dense<0.000000e+00> : vector<16x128xf32>
    %38 = vector.multi_reduction <add>, %33, %cst_11 [1] : vector<16x16x128xf32> to vector<16x128xf32>
    %39 = tpu.reciprocal %38 {approx = true} : vector<16x128xf32> -> vector<16x128xf32>
    %40 = arith.mulf %37, %39 : vector<16x128xf32>
    %41 = arith.addf %40, %1 : vector<16x128xf32>
    %cst_12 = arith.constant dense<0.000000e+00> : vector<128xf32>
    %42 = vector.multi_reduction <add>, %41, %cst_12 [0] : vector<16x128xf32> to vector<128xf32>
    %43 = vector.shape_cast %42 : vector<128xf32> to vector<1x128xf32>
    %cst_13 = arith.constant 1.600000e+01 : f32
    %44 = vector.broadcast %cst_13 : f32 to vector<1x128xf32>
    %45 = arith.divf %43, %44 : vector<1x128xf32>
    %46 = vector.broadcast %45 : vector<1x128xf32> to vector<16x128xf32>
    %47 = arith.subf %41, %46 : vector<16x128xf32>
    %48 = arith.mulf %47, %47 : vector<16x128xf32>
    %cst_14 = arith.constant dense<0.000000e+00> : vector<128xf32>
    %49 = vector.multi_reduction <add>, %48, %cst_14 [0] : vector<16x128xf32> to vector<128xf32>
    %50 = vector.shape_cast %49 : vector<128xf32> to vector<1x128xf32>
    %cst_15 = arith.constant 1.600000e+01 : f32
    %51 = vector.broadcast %cst_15 : f32 to vector<1x128xf32>
    %52 = arith.divf %50, %51 : vector<1x128xf32>
    %53 = vector.broadcast %45 : vector<1x128xf32> to vector<16x128xf32>
    %54 = arith.subf %41, %53 : vector<16x128xf32>
    %cst_16 = arith.constant 9.99999974E-6 : f32
    %55 = vector.broadcast %cst_16 : f32 to vector<1x128xf32>
    %56 = arith.addf %52, %55 : vector<1x128xf32>
    %57 = math.rsqrt %56 : vector<1x128xf32>
    %58 = vector.broadcast %57 : vector<1x128xf32> to vector<16x128xf32>
    %59 = arith.mulf %54, %58 : vector<16x128xf32>
    %c0_17 = arith.constant 0 : index
    %c0_18 = arith.constant 0 : index
    %60 = vector.load %arg4[%c0_17, %c0_18] : memref<16x1xf32, #tpu.memory_space<vmem>>, vector<16x1xf32>
    %61 = vector.broadcast %60 : vector<16x1xf32> to vector<16x128xf32>
    %62 = arith.mulf %59, %61 : vector<16x128xf32>
    %c0_19 = arith.constant 0 : index
    %c0_20 = arith.constant 0 : index
    %63 = vector.load %arg5[%c0_19, %c0_20] : memref<16x1xf32, #tpu.memory_space<vmem>>, vector<16x1xf32>
    %64 = vector.broadcast %63 : vector<16x1xf32> to vector<16x128xf32>
    %65 = arith.addf %62, %64 : vector<16x128xf32>
    %c0_21 = arith.constant 0 : index
    %c0_22 = arith.constant 0 : index
    %66 = vector.load %arg6[%c0_21, %c0_22] : memref<32x16xbf16, #tpu.memory_space<vmem>>, vector<32x16xbf16>
    %67 = arith.truncf %65 : vector<16x128xf32> to vector<16x128xbf16>
    %cst_23 = arith.constant dense<0.000000e+00> : vector<32x128xf32>
    %68 = tpu.matmul %66, %67, %cst_23 {dimension_numbers = #tpu.dot_dimension_numbers<[1], [0], [0], [1], [0, 0, 1, 1], [], []>} : vector<32x16xbf16>, vector<16x128xbf16>, vector<32x128xf32> -> vector<32x128xf32>
    %c0_24 = arith.constant 0 : index
    %c0_25 = arith.constant 0 : index
    %69 = vector.load %arg7[%c0_24, %c0_25] : memref<32x1xf32, #tpu.memory_space<vmem>>, vector<32x1xf32>
    %70 = vector.broadcast %69 : vector<32x1xf32> to vector<32x128xf32>
    %71 = arith.addf %68, %70 : vector<32x128xf32>
    %cst_26 = arith.constant 0.000000e+00 : f32
    %72 = vector.broadcast %cst_26 : f32 to vector<32x128xf32>
    %73 = arith.cmpf oge, %71, %72 : vector<32x128xf32>
    %cst_27 = arith.constant 5.000000e-01 : f32
    %74 = vector.broadcast %cst_27 : f32 to vector<32x128xf32>
    %75 = arith.mulf %74, %71 : vector<32x128xf32>
    %76 = arith.select %73, %71, %75 : vector<32x128xi1>, vector<32x128xf32>
    %cst_28 = arith.constant dense<0.000000e+00> : vector<128xf32>
    %77 = vector.multi_reduction <add>, %76, %cst_28 [0] : vector<32x128xf32> to vector<128xf32>
    %78 = vector.shape_cast %77 : vector<128xf32> to vector<1x128xf32>
    %cst_29 = arith.constant 3.200000e+01 : f32
    %79 = vector.broadcast %cst_29 : f32 to vector<1x128xf32>
    %80 = arith.divf %78, %79 : vector<1x128xf32>
    %81 = vector.broadcast %80 : vector<1x128xf32> to vector<32x128xf32>
    %82 = arith.subf %76, %81 : vector<32x128xf32>
    %83 = arith.mulf %82, %82 : vector<32x128xf32>
    %cst_30 = arith.constant dense<0.000000e+00> : vector<128xf32>
    %84 = vector.multi_reduction <add>, %83, %cst_30 [0] : vector<32x128xf32> to vector<128xf32>
    %85 = vector.shape_cast %84 : vector<128xf32> to vector<1x128xf32>
    %cst_31 = arith.constant 3.200000e+01 : f32
    %86 = vector.broadcast %cst_31 : f32 to vector<1x128xf32>
    %87 = arith.divf %85, %86 : vector<1x128xf32>
    %88 = vector.broadcast %80 : vector<1x128xf32> to vector<32x128xf32>
    %89 = arith.subf %76, %88 : vector<32x128xf32>
    %cst_32 = arith.constant 9.99999974E-6 : f32
    %90 = vector.broadcast %cst_32 : f32 to vector<1x128xf32>
    %91 = arith.addf %87, %90 : vector<1x128xf32>
    %92 = math.rsqrt %91 : vector<1x128xf32>
    %93 = vector.broadcast %92 : vector<1x128xf32> to vector<32x128xf32>
    %94 = arith.mulf %89, %93 : vector<32x128xf32>
    %c0_33 = arith.constant 0 : index
    %c0_34 = arith.constant 0 : index
    %95 = vector.load %arg8[%c0_33, %c0_34] : memref<32x1xf32, #tpu.memory_space<vmem>>, vector<32x1xf32>
    %96 = vector.broadcast %95 : vector<32x1xf32> to vector<32x128xf32>
    %97 = arith.mulf %94, %96 : vector<32x128xf32>
    %c0_35 = arith.constant 0 : index
    %c0_36 = arith.constant 0 : index
    %98 = vector.load %arg9[%c0_35, %c0_36] : memref<32x1xf32, #tpu.memory_space<vmem>>, vector<32x1xf32>
    %99 = vector.broadcast %98 : vector<32x1xf32> to vector<32x128xf32>
    %100 = arith.addf %97, %99 : vector<32x128xf32>
    %c0_37 = arith.constant 0 : index
    %c0_38 = arith.constant 0 : index
    %101 = vector.load %arg10[%c0_37, %c0_38] : memref<1x32xbf16, #tpu.memory_space<vmem>>, vector<1x32xbf16>
    %102 = arith.truncf %100 : vector<32x128xf32> to vector<32x128xbf16>
    %cst_39 = arith.constant dense<0.000000e+00> : vector<1x128xf32>
    %103 = tpu.matmul %101, %102, %cst_39 {dimension_numbers = #tpu.dot_dimension_numbers<[1], [0], [0], [1], [0, 0, 1, 1], [], []>} : vector<1x32xbf16>, vector<32x128xbf16>, vector<1x128xf32> -> vector<1x128xf32>
    %c0_40 = arith.constant 0 : index
    %104 = memref.load %arg11[%c0_40] : memref<1xf32, #tpu.memory_space<smem>>
    %105 = vector.broadcast %104 : f32 to vector<1x128xf32>
    %106 = arith.addf %103, %105 : vector<1x128xf32>
    %c0_41 = arith.constant 0 : index
    %c0_42 = arith.constant 0 : index
    %107 = vector.load %arg12[%c0_41, %c0_42] : memref<1x128xf32, #tpu.memory_space<vmem>>, vector<1x128xf32>
    tpu.vector_store %arg12[%c0_41, %c0_42], %106 {strides = array<i32>} : memref<1x128xf32, #tpu.memory_space<vmem>>, vector<1x128xf32>,
    return
  }
  func.func @transform_0(%arg0: i32) -> (i32, i32) {
    %c0_i32 = arith.constant 0 : i32
    %c0_i32_0 = arith.constant 0 : i32
    return %c0_i32, %arg0 : i32, i32
  }
  func.func @transform_1(%arg0: i32) -> (i32, i32) {
    %c0_i32 = arith.constant 0 : i32
    %c0_i32_0 = arith.constant 0 : i32
    %c0_i32_1 = arith.constant 0 : i32
    return %c0_i32, %c0_i32_0 : i32, i32
  }
  func.func @transform_2(%arg0: i32) -> (i32, i32) {
    %c0_i32 = arith.constant 0 : i32
    %c0_i32_0 = arith.constant 0 : i32
    %c0_i32_1 = arith.constant 0 : i32
    return %c0_i32, %c0_i32_0 : i32, i32
  }
  func.func @transform_3(%arg0: i32) -> (i32, i32) {
    %c0_i32 = arith.constant 0 : i32
    %c0_i32_0 = arith.constant 0 : i32
    %c0_i32_1 = arith.constant 0 : i32
    return %c0_i32, %c0_i32_0 : i32, i32
  }
  func.func @transform_4(%arg0: i32) -> (i32, i32) {
    %c0_i32 = arith.constant 0 : i32
    %c0_i32_0 = arith.constant 0 : i32
    %c0_i32_1 = arith.constant 0 : i32
    return %c0_i32, %c0_i32_0 : i32, i32
  }
  func.func @transform_5(%arg0: i32) -> (i32, i32) {
    %c0_i32 = arith.constant 0 : i32
    %c0_i32_0 = arith.constant 0 : i32
    %c0_i32_1 = arith.constant 0 : i32
    return %c0_i32, %c0_i32_0 : i32, i32
  }
  func.func @transform_6(%arg0: i32) -> (i32, i32) {
    %c0_i32 = arith.constant 0 : i32
    %c0_i32_0 = arith.constant 0 : i32
    %c0_i32_1 = arith.constant 0 : i32
    return %c0_i32, %c0_i32_0 : i32, i32
  }
  func.func @transform_7(%arg0: i32) -> (i32, i32) {
    %c0_i32 = arith.constant 0 : i32
    %c0_i32_0 = arith.constant 0 : i32
    %c0_i32_1 = arith.constant 0 : i32
    return %c0_i32, %c0_i32_0 : i32, i32
  }
  func.func @transform_8(%arg0: i32) -> (i32, i32) {
    %c0_i32 = arith.constant 0 : i32
    %c0_i32_0 = arith.constant 0 : i32
    %c0_i32_1 = arith.constant 0 : i32
    return %c0_i32, %c0_i32_0 : i32, i32
  }
  func.func @transform_9(%arg0: i32) -> (i32, i32) {
    %c0_i32 = arith.constant 0 : i32
    %c0_i32_0 = arith.constant 0 : i32
    %c0_i32_1 = arith.constant 0 : i32
    return %c0_i32, %c0_i32_0 : i32, i32
  }
  func.func @transform_10(%arg0: i32) -> i32 {
    %c0_i32 = arith.constant 0 : i32
    %c0_i32_0 = arith.constant 0 : i32
    return %c0_i32 : i32
  }
  func.func @transform_11(%arg0: i32) -> (i32, i32) {
    %c0_i32 = arith.constant 0 : i32
    %c0_i32_0 = arith.constant 0 : i32
    return %c0_i32, %arg0 : i32, i32
  }
}

</mosaic_0001>

<bundles_post_ra>
// kernel: tpu_custom_call.1
= control target key start
LH: loop header
LB: loop body
LE: loop exit
PB: predicated region body
PF: predicated region fallthrough
CT: control target
= control target key end

     0   :  { %v2771_v1 = vmov 0.0   ;;  %vm1834_vm0 = vmmov 0   ;;  %vm108_vm1 = vcmask 130048   ;;  %v1835_v4 = vmov 0   ;;  %s2759_s0 = inlined_call_operand.vmem [shape: bf16[16,128], index: 0, kind: input, shape index: {}]   ;;  %s2760_s1 = inlined_call_operand.vmem [shape: bf16[48,16], index: 1, kind: input, shape index: {}]   ;;  %s2761_s2 = inlined_call_operand.vmem [shape: f32[48,1], index: 2, kind: input, shape index: {}]   ;;  %s2762_s3 = inlined_call_operand.vmem [shape: f32[16,1], index: 3, kind: input, shape index: {}]   ;;  %s2763_s4 = inlined_call_operand.vmem [shape: f32[16,1], index: 4, kind: input, shape index: {}]   ;;  %s2764_s5 = inlined_call_operand.vmem [shape: bf16[32,16], index: 5, kind: input, shape index: {}]   ;;  %s2765_s6 = inlined_call_operand.vmem [shape: f32[32,1], index: 6, kind: input, shape index: {}]   ;;  %s2766_s7 = inlined_call_operand.vmem [shape: f32[32,1], index: 7, kind: input, shape index: {}]   ;;  %s2767_s8 = inlined_call_operand.vmem [shape: f32[32,1], index: 8, kind: input, shape index: {}]   ;;  %s2768_s9 = inlined_call_operand.vmem [shape: bf16[1,32], index: 9, kind: input, shape index: {}]   ;;  %s2769_s10 = inlined_call_operand.<no memory space> [shape: f32[1], index: 10, kind: input, shape index: {}]   ;;  %s2770_s11 = inlined_call_operand.hbm [shape: f32[1,128], index: 11, kind: output, shape index: {}]  }
   0x1   :  { %v1901_v0 = vld [vmem:[%s2759_s0] sm:$0xff]   ;;  %1667 = vmatprep.subr.bf16.mxu0 %v2771_v1  ;;  %1669 = vmatprep.mubr.msk.bf16.mxu0 %vm1834_vm0, %v2771_v1  ;;  %v53_v3 = vld [vmem:[%s2761_s2 + $0x10] sm:$0xff]  ;;  %v54_v6 = vld [vmem:[%s2761_s2 + $0x18] sm:$0xff] }
   0x2   :  { %v1703_v2 = vld [vmem:[%s2760_s1] sm:$0xff]   ;;  %1668 = vmatpush3.bf16.msra.mxu0 %v1901_v0  ;;  %1700 = vset.pattern.permute.xlu0 %v1835_v4  ;;  %v52_v7 = vld [vmem:[%s2761_s2 + $0x8] sm:$0xff] }
   0x3   :  { %1701 = vset.pattern.permute.xlu1 %v1835_v4  ;;  %v51_v5 = vld [vmem:[%s2761_s2] sm:$0xff]  ;;  %69 = vperm.xlu0 %1700, %v53_v3   ;;  %v1704_v8 = vld [vmem:[%s2760_s1 + $0x8] sm:$0xff]  }
   0x4   :  { %59 = vperm.xlu1 %1701, %v51_v5   ;;  %v55_v9 = vld [vmem:[%s2761_s2 + $0x20] sm:$0xff]  ;;  %v56_v10 = vld [vmem:[%s2761_s2 + $0x28] sm:$0xff] }
   0x5   :  { %1670 = vmatmul.mubr.msk.bf16.vlgmr.msra.gmra.mrb[0].mxu0 %vm108_vm1, %v1703_v2 }
   0x6   :  { %1673 = vmatprep.mubr.msk.bf16.mxu0 %vm1834_vm0, %v2771_v1 }
   0x7   :  { %74 = vperm.xlu0 %1700, %v54_v6  }
   0x8   :  { %64 = vperm.xlu1 %1701, %v52_v7  }
   0x9   :  { %17 = vsyncpa [#allocation4], 0  ;;  %v1195_v11 = vld [vmem:[%s2762_s3] sm:$0xff]  ;;  %v1196_v12 = vld [vmem:[%s2762_s3 + $0x8] sm:$0xff]  ;;  %v1836_v28 = vmov 1966171168   ;;  %v203_v30 = vlaneseq }
   0xa   :  { %v1705_v13 = vld [vmem:[%s2760_s1 + $0x10] sm:$0xff]   ;;  %v1251_v14 = vld [vmem:[%s2763_s4] sm:$0xff]  ;;  %v1252_v15 = vld [vmem:[%s2763_s4 + $0x8] sm:$0xff]  ;;  %v201_v29 = vunpack.c.l.s4 %v1836_v28  ;;  %vm1038_vm4 = vcmask 1041409   ;;  %vm1041_vm5 = vcmask 1042434   ;;  %vm1044_vm6 = vcmask 1043459  }
   0xb   :  { %79 = vperm.xlu0 %1700, %v55_v9   ;;  %v1327_v16 = vld [vmem:[%s2765_s6] sm:$0xff]  ;;  %v1328_v17 = vld [vmem:[%s2765_s6 + $0x8] sm:$0xff]  ;;  %v1329_v18 = vld [vmem:[%s2765_s6 + $0x10] sm:$0xff]  ;;  %v204_v32 = vshrl.u32 %v203_v30, 7  ;;  %vm1047_vm7 = vcmask 1044484   ;;  %vm1050_vm8 = vcmask 1045509  }
   0xc   :  { %84 = vperm.xlu1 %1701, %v56_v10   ;;  %v1330_v19 = vld [vmem:[%s2765_s6 + $0x18] sm:$0xff]  ;;  %v1525_v20 = vld [vmem:[%s2766_s7] sm:$0xff]  ;;  %v1526_v21 = vld [vmem:[%s2766_s7 + $0x8] sm:$0xff]  ;;  %v202_v31 = vunpack.c.0.s8 %v201_v29  ;;  %vm1053_vm9 = vcmask 1046534   ;;  %vm1056_vm10 = vcmask 1047559   ;;  %vm1586_vm15 = vcmask 261120  }
   0xd   :  { %1674 = vmatmul.mubr.msk.bf16.gmra.mrb[4].mxu0 %vm108_vm1, %v1704_v8  ;;  %v1553_v22 = vld [vmem:[%s2767_s8] sm:$0xff]  ;;  %v1554_v23 = vld [vmem:[%s2767_s8 + $0x8] sm:$0xff]  ;;  %v1527_v24 = vld [vmem:[%s2766_s7 + $0x10] sm:$0xff]  ;;  %v2001_v47 = vsub.s32 0, %v204_v32  ;;  %s1837_s1 = smov [#allocation3]  }
   0xe   :  { %1677 = vmatprep.mubr.msk.bf16.mxu0 %vm1834_vm0, %v2771_v1  ;;  %v1528_v25 = vld [vmem:[%s2766_s7 + $0x18] sm:$0xff]  ;;  %v1555_v26 = vld [vmem:[%s2767_s8 + $0x10] sm:$0xff]  ;;  %v1989_v34 = vsub.s32 %v202_v31, %v204_v32  ;;  %s1637_s26 = sshll.u32 %s1837_s1, 4  ;;  %s1638_s26 = int_to_ptr.vmem [resolvable:$true] %s1637_s26 }
   0xf   :  { %1199 = vperm.xlu0 %1700, %v1195_v11   ;;  %v1556_v27 = vld [vmem:[%s2767_s8 + $0x18] sm:$0xff]  ;;  %2792 = vst [vmem:[#allocation6_spill] sm:$0xff] %v2001_v47  ;;  %s1809_s27 = scalar_lea.vmem %s1638_s26, 16  ;;  %s1813_s4 = scalar_lea.vmem %s1638_s26, 32 }
  0x10   :  { %1203 = vperm.xlu1 %1701, %v1196_v12   ;;  %p1810_p0 = scmp.ne.s32.totalorder %s1638_s26, %s1809_s27  ;;  %p1814_p1 = scmp.lt.s32.totalorder %s1638_s26, %s1638_s26 }
  0x11   :  { %p1815_p2 = scmp.lt.s32.totalorder %s1813_s4, %s1809_s27 }
  0x13   :  { %1255 = vperm.xlu0 %1700, %v1251_v14   ;;  %p1816_p3 = por %p1815_p2, %p1814_p1 }
  0x14   :  { %1259 = vperm.xlu1 %1701, %v1252_v15  }
  0x15   :  { %1678 = vmatmul.mubr.msk.bf16.gmra.mrb[8].mxu0 %vm108_vm1, %v1705_v13  ;;  %p1817_p4 = pnand %p1816_p3, %p1810_p0 }
  0x17   :  { %1333 = vperm.xlu0 %1700, %v1327_v16  }
  0x18   :  { %1338 = vperm.xlu1 %1701, %v1328_v17  }
  0x1b   :  { %1343 = vperm.xlu0 %1700, %v1329_v18  }
  0x1c   :  { %1348 = vperm.xlu1 %1701, %v1330_v19  }
  0x1f   :  { %1531 = vperm.xlu0 %1700, %v1525_v20  }
  0x20   :  { %1536 = vperm.xlu1 %1701, %v1526_v21  }
  0x23   :  { %1559 = vperm.xlu0 %1700, %v1553_v22  }
  0x24   :  { %1564 = vperm.xlu1 %1701, %v1554_v23  }
  0x27   :  { %1541 = vperm.xlu0 %1700, %v1527_v24  }
  0x28   :  { %1546 = vperm.xlu1 %1701, %v1528_v25  }
  0x2b   :  { %1569 = vperm.xlu0 %1700, %v1555_v26  }
  0x2c   :  { %1574 = vperm.xlu1 %1701, %v1556_v27  }
  0x82   :  { %v70_v54 = vpop.permute.xlu0 %69 }
  0x83   :  { %v60_v33 = vpop.permute.xlu1 %59 }
  0x86   :  { %v75_v19 = vpop.permute.xlu0 %74 }
  0x87   :  { %v65_v38 = vpop.permute.xlu1 %64 }
  0xd8   :  { %v152_v35 = vpop.f32.mrb[0].mxu0 }
  0xd9   :  { %v1991_v36 = vadd.f32 %v152_v35, %v60_v33  ;;  %v1671_v37 = vpop.f32.mrb[1].mxu0 }
  0xda   :  { %v155_v39 = vpop.f32.mrb[2].mxu0 }
  0xdb   :  { %v199_v40 = vcombine.high %v1991_v36, %v1991_v36  ;;  %v206_v41 = vrot.slane %v1991_v36, %v1989_v34  ;;  %v1997_v42 = vadd.f32 %v155_v39, %v65_v38  ;;  %v1672_v43 = vpop.f32.mrb[3].mxu0  ;;  %vm189_vm2 = vcmp.ge.f32.partialorder %v1991_v36, 0.0 }
  0xdd   :  { %v213_v44 = vrot.slane %v199_v40, %v1989_v34  ;;  %v214_v45 = vcombine.high %v206_v41, %v206_v41  ;;  %v222_v46 = vrot.slane %v206_v41, %v1989_v34  ;;  %v248_v48 = vcombine.high %v1997_v42, %v1997_v42 }
  0xde   :  { %v255_v49 = vrot.slane %v1997_v42, %v1989_v34  ;;  %vm190_vm3 = vcmp.ge.f32.partialorder %v1997_v42, 0.0 }
  0xdf   :  { %v215_v50 = vcombine.high %v213_v44, %v213_v44  ;;  %v229_v51 = vrot.slane %v213_v44, %v1989_v34  ;;  %v236_v52 = vrot.slane %v214_v45, %v1989_v34  ;;  %v244_v53 = vcombine.high %v222_v46, %v222_v46 }
  0xe0   :  { %v262_v55 = vrot.slane %v248_v48, %v1989_v34  ;;  %v263_v56 = vcombine.high %v255_v49, %v255_v49  ;;  %v271_v57 = vrot.slane %v255_v49, %v1989_v34  ;;  %v160_v58 = vpop.f32.mrb[4].mxu0  ;;  %v300_v63 = vrot.slane %v222_v46, %v2001_v47 }
  0xe1   :  { %v243_v59 = vrot.slane %v215_v50, %v1989_v34  ;;  %v245_v60 = vcombine.high %v229_v51, %v229_v51  ;;  %v246_v61 = vcombine.high %v236_v52, %v236_v52  ;;  %v1675_v62 = vpop.f32.mrb[5].mxu0  ;;  %v304_v2 = vrot.slane %v236_v52, %v2001_v47 }
  0xe2   :  { %v264_v3 = vcombine.high %v262_v55, %v262_v55  ;;  %v278_v4 = vrot.slane %v262_v55, %v1989_v34  ;;  %v163_v5 = vpop.f32.mrb[6].mxu0  ;;  %v308_v7 = vrot.slane %v244_v53, %v2001_v47  ;;  %v316_v9 = vrot.slane %v229_v51, %v2001_v47 }
  0xe3   :  { %v247_v6 = vcombine.high %v243_v59, %v243_v59  ;;  %v312_v8 = vrot.slane %v246_v61, %v2001_v47  ;;  %v1676_v10 = vpop.f32.mrb[7].mxu0  ;;  %v285_v11 = vrot.slane %v263_v56, %v1989_v34  ;;  %v293_v13 = vcombine.high %v271_v57, %v271_v57 }
  0xe4   :  { %v292_v12 = vrot.slane %v264_v3, %v1989_v34  ;;  %v294_v14 = vcombine.high %v278_v4, %v278_v4  ;;  %v320_v15 = vrot.slane %v243_v59, %v2001_v47  ;;  %v324_v16 = vrot.slane %v245_v60, %v2001_v47 }
  0xe5   :  { %v328_v17 = vrot.slane %v247_v6, %v2001_v47  ;;  %v161_v18 = vadd.f32 %v160_v58, %v70_v54  ;;  %v295_v20 = vcombine.high %v285_v11, %v285_v11  ;;  %v332_v22 = vrot.slane %v271_v57, %v2001_v47 }
  0xe6   :  { %v296_v21 = vcombine.high %v292_v12, %v292_v12  ;;  %v348_v23 = vrot.slane %v278_v4, %v2001_v47  ;;  %v336_v24 = vrot.slane %v285_v11, %v2001_v47  ;;  %v340_v25 = vrot.slane %v293_v13, %v2001_v47 }
  0xe7   :  { %v164_v26 = vadd.f32 %v163_v5, %v75_v19  ;;  %v2027_v27 = vmul.f32 %v300_v63, %v161_v18  ;;  %v352_v28 = vrot.slane %v292_v12, %v2001_v47  ;;  %v356_v29 = vrot.slane %v294_v14, %v2001_v47 }
  0xe8   :  { %v2031_v30 = vpop.f32.mrb[8].mxu0  ;;  %v2033_v31 = vmul.f32 %v304_v2, %v161_v18  ;;  %v2035_v32 = vmul.f32 %v308_v7, %v161_v18  ;;  %v344_v33 = vrot.slane %v295_v20, %v2001_v47  ;;  %v2046_v44 = vmul.f32 %v312_v8, %v161_v18 }
  0xe9   :  { %v1679_v35 = vpop.f32.mrb[9].mxu0  ;;  %v175_v37 = vmax.f32 %v161_v18, %v164_v26  ;;  %v182_v38 = vmin.f32 %v161_v18, %v164_v26  ;;  %v2038_v39 = vmul.f32 %v300_v63, %v164_v26  ;;  %v2042_v41 = vmul.f32 %v304_v2, %v164_v26 }
  0xea   :  { %v2040_v40 = vpop.f32.mrb[10].mxu0  ;;  %v2044_v43 = vmul.f32 %v308_v7, %v164_v26  ;;  %v2048_v45 = vmul.f32 %v312_v8, %v164_v26  ;;  %v360_v46 = vrot.slane %v296_v21, %v2001_v47  ;;  %v2051_v51 = vmul.f32 %v316_v9, %v161_v18 }
  0xeb   :  { %v1680_v48 = vpop.f32.mrb[11].mxu0  ;;  %v176_v49 = vrot.slane %v175_v37, 4  ;;  %v183_v50 = vrot.slane %v182_v38, 4  ;;  %v2053_v52 = vmul.f32 %v316_v9, %v164_v26  ;;  %v2055_v53 = vmul.f32 %v320_v15, %v161_v18 }
  0xec   :  { %v2057_v54 = vmul.f32 %v320_v15, %v164_v26  ;;  %v2059_v55 = vmul.f32 %v324_v16, %v161_v18  ;;  %v2061_v58 = vmul.f32 %v324_v16, %v164_v26  ;;  %v2063_v59 = vmul.f32 %v328_v17, %v161_v18 }
  0xed   :  { %v177_v56 = vmax.f32 %v175_v37, %v176_v49  ;;  %v184_v57 = vmin.f32 %v182_v38, %v183_v50  ;;  %v2065_v60 = vmul.f32 %v328_v17, %v164_v26  ;;  %v2067_v61 = vmul.f32 %v332_v22, %v161_v18 }
  0xee   :  { %v2069_v62 = vmul.f32 %v332_v22, %v164_v26  ;;  %v2071_v63 = vmul.f32 %v336_v24, %v161_v18  ;;  %v2073_v4 = vmul.f32 %v336_v24, %v164_v26  ;;  %v2075_v5 = vmul.f32 %v340_v25, %v161_v18 }
  0xef   :  { %v178_v2 = vrot.slane %v177_v56, 2  ;;  %v185_v3 = vrot.slane %v184_v57, 2  ;;  %v2077_v6 = vmul.f32 %v340_v25, %v164_v26  ;;  %v2079_v7 = vmul.f32 %v344_v33, %v161_v18 }
  0xf0   :  { %v2081_v8 = vmul.f32 %v344_v33, %v164_v26  ;;  %v2083_v9 = vmul.f32 %v348_v23, %v161_v18  ;;  %v2085_v12 = vmul.f32 %v348_v23, %v164_v26  ;;  %v2087_v13 = vmul.f32 %v352_v28, %v161_v18 }
  0xf1   :  { %v179_v10 = vmax.f32 %v177_v56, %v178_v2  ;;  %v186_v11 = vmin.f32 %v184_v57, %v185_v3  ;;  %v2089_v14 = vmul.f32 %v352_v28, %v164_v26  ;;  %v2091_v15 = vmul.f32 %v356_v29, %v161_v18 }
  0xf2   :  { %v2093_v16 = vmul.f32 %v356_v29, %v164_v26  ;;  %v2095_v17 = vmul.f32 %v360_v46, %v161_v18  ;;  %v2097_v21 = vmul.f32 %v360_v46, %v164_v26 }
  0xf3   :  { %v180_v19 = vrot.slane %v179_v10, 1  ;;  %v187_v20 = vrot.slane %v186_v11, 1 }
  0xf5   :  { %v181_v22 = vmax.f32 %v179_v10, %v180_v19  ;;  %v188_v24 = vmin.f32 %v186_v11, %v187_v20 }
  0xf7   :  { %v191_v25 = vmul.f32 %v181_v22, %v1991_v36  ;;  %v192_v23 = vmul.f32 %v181_v22, %v1997_v42  ;;  %v193_v33 = vmul.f32 %v188_v24, %v1991_v36  ;;  %v194_v28 = vmul.f32 %v188_v24, %v1997_v42 }
  0xf9   :  { %v195_v18 = vsel %vm189_vm2, %v191_v25, %v193_v33  ;;  %v196_v29 = vsel %vm190_vm3, %v192_v23, %v194_v28 }
  0xfa   :  { %v411_v35 = vcombine.high %v195_v18, %v195_v18  ;;  %v418_v26 = vrot.slane %v195_v18, %v1989_v34  ;;  %v460_v37 = vcombine.high %v196_v29, %v196_v29  ;;  %v467_v38 = vrot.slane %v196_v29, %v1989_v34 }
  0xfc   :  { %v425_v46 = vrot.slane %v411_v35, %v1989_v34  ;;  %v426_v48 = vcombine.high %v418_v26, %v418_v26  ;;  %v434_v49 = vrot.slane %v418_v26, %v1989_v34  ;;  %v474_v50 = vrot.slane %v460_v37, %v1989_v34 }
  0xfd   :  { %v475_v56 = vcombine.high %v467_v38, %v467_v38  ;;  %v483_v36 = vrot.slane %v467_v38, %v1989_v34 }
  0xfe   :  { %v427_v57 = vcombine.high %v425_v46, %v425_v46  ;;  %v441_v42 = vrot.slane %v425_v46, %v1989_v34  ;;  %v448_v2 = vrot.slane %v426_v48, %v1989_v34  ;;  %v456_v3 = vcombine.high %v434_v49, %v434_v49 }
  0xff   :  { %v476_v10 = vcombine.high %v474_v50, %v474_v50  ;;  %v490_v11 = vrot.slane %v474_v50, %v1989_v34  ;;  %v497_v19 = vrot.slane %v475_v56, %v1989_v34  ;;  %v505_v20 = vcombine.high %v483_v36, %v483_v36 }
 0x100   :  { %v455_v22 = vrot.slane %v427_v57, %v1989_v34  ;;  %v457_v24 = vcombine.high %v441_v42, %v441_v42  ;;  %v458_v25 = vcombine.high %v448_v2, %v448_v2  ;;  %v512_v23 = vrot.slane %v434_v49, %v2001_v47 }
 0x101   :  { %v504_v33 = vrot.slane %v476_v10, %v1989_v34  ;;  %v506_v28 = vcombine.high %v490_v11, %v490_v11  ;;  %v507_v18 = vcombine.high %v497_v19, %v497_v19  ;;  %v516_v29 = vrot.slane %v448_v2, %v2001_v47 }
 0x102   :  { %v459_v35 = vcombine.high %v455_v22, %v455_v22  ;;  %v520_v26 = vrot.slane %v456_v3, %v2001_v47  ;;  %v524_v37 = vrot.slane %v458_v25, %v2001_v47  ;;  %v2122_v38 = vrot.slane %v441_v42, %v2001_v47 }
 0x103   :  { %v508_v46 = vcombine.high %v504_v33, %v504_v33  ;;  %v2125_v48 = vrot.slane %v455_v22, %v2001_v47  ;;  %v2128_v49 = vrot.slane %v457_v24, %v2001_v47  ;;  %v2131_v34 = vrot.slane %v483_v36, %v2001_v47 }
 0x104   :  { %v2134_v50 = vrot.slane %v459_v35, %v2001_v47  ;;  %v2137_v56 = vrot.slane %v497_v19, %v2001_v47  ;;  %v2140_v57 = vrot.slane %v505_v20, %v2001_v47  ;;  %v2143_v42 = vrot.slane %v507_v18, %v2001_v47 }
 0x105   :  { %v2146_v2 = vrot.slane %v490_v11, %v2001_v47  ;;  %v2149_v3 = vrot.slane %v504_v33, %v2001_v47  ;;  %v2152_v36 = vrot.slane %v506_v28, %v2001_v47  ;;  %v2155_v10 = vrot.slane %v508_v46, %v2001_v47  ;;  %v85_v46 = vpop.permute.xlu1 %84 }
 0x106   :  { %v589_v19 = vsub.f32 %v2027_v27, %v512_v23  ;;  %v590_v20 = vsub.f32 %v2038_v39, %v512_v23  ;;  %v591_v22 = vsub.f32 %v2033_v31, %v516_v29  ;;  %v592_v24 = vsub.f32 %v2042_v41, %v516_v29 }
 0x107   :  { %v593_v11 = vsub.f32 %v2035_v32, %v520_v26  ;;  %v594_v25 = vsub.f32 %v2044_v43, %v520_v26  ;;  %v595_v33 = vsub.f32 %v2046_v44, %v524_v37  ;;  %v596_v28 = vsub.f32 %v2048_v45, %v524_v37 }
 0x108   :  { %v597_v18 = vsub.f32 %v2051_v51, %v2122_v38  ;;  %v598_v27 = vsub.f32 %v2053_v52, %v2122_v38  ;;  %v599_v39 = vsub.f32 %v2055_v53, %v2125_v48  ;;  %v600_v31 = vsub.f32 %v2057_v54, %v2125_v48 }
 0x109   :  { %v601_v32 = vsub.f32 %v2059_v55, %v2128_v49  ;;  %v602_v41 = vsub.f32 %v2061_v58, %v2128_v49  ;;  %v603_v43 = vsub.f32 %v2063_v59, %v2134_v50  ;;  %v604_v44 = vsub.f32 %v2065_v60, %v2134_v50  ;;  %v80_v59 = vpop.permute.xlu0 %79 }
 0x10a   :  { %v605_v45 = vsub.f32 %v2067_v61, %v2131_v34  ;;  %v606_v51 = vsub.f32 %v2069_v62, %v2131_v34  ;;  %v607_v52 = vsub.f32 %v2071_v63, %v2137_v56  ;;  %v608_v53 = vsub.f32 %v2073_v4, %v2137_v56 }
 0x10b   :  { %v609_v54 = vsub.f32 %v2075_v5, %v2140_v57  ;;  %v610_v55 = vsub.f32 %v2077_v6, %v2140_v57  ;;  %v621_v49 = vmul.f32 1.442695, %v589_v19  ;;  %v623_v1 = vmul.f32 1.442695, %v590_v20 }
 0x10c   :  { %v625_v29 = vmul.f32 1.442695, %v591_v22  ;;  %v627_v23 = vmul.f32 1.442695, %v592_v24  ;;  %v2214_v35 = vunpack.c.l.bf16 %v1901_v0  ;;  %v629_v26 = vmul.f32 1.442695, %v593_v11 }
 0x10d   :  { %1709 = vpow2.f32 %v621_v49  ;;  %v631_v37 = vmul.f32 1.442695, %v594_v25  ;;  %v633_v38 = vmul.f32 1.442695, %v595_v33  ;;  %v2217_v58 = vunpack.c.h.bf16 %v1901_v0 }
 0x10e   :  { %2793 = vst [vmem:[#allocation7_spill] sm:$0xff] %v2214_v35  ;;  %1711 = vpow2.f32 %v623_v1  ;;  %v2220_v48 = vadd.f32 %v2031_v30, %v80_v59  ;;  %v635_v19 = vmul.f32 1.442695, %v596_v28  ;;  %v2223_v20 = vadd.f32 %v2040_v40, %v85_v46 }
 0x10f   :  { %1713 = vpow2.f32 %v625_v29  ;;  %2794 = vst [vmem:[#allocation8_spill] sm:$0xff] %v2217_v58  ;;  %v637_v22 = vmul.f32 1.442695, %v597_v18  ;;  %v639_v24 = vmul.f32 1.442695, %v598_v27  ;;  %v2795_v5 = vsub.f32 %v2079_v7, %v2143_v42 }
 0x110   :  { %1715 = vpow2.f32 %v627_v23  ;;  %v641_v25 = vmul.f32 1.442695, %v599_v39  ;;  %v643_v28 = vmul.f32 1.442695, %v600_v31  ;;  %v645_v59 = vmul.f32 1.442695, %v601_v32 }
 0x111   :  { %1717 = vpow2.f32 %v629_v26  ;;  %v647_v29 = vmul.f32 1.442695, %v602_v41  ;;  %v651_v32 = vmul.f32 1.442695, %v604_v44  ;;  %v655_v60 = vmul.f32 1.442695, %v606_v51 }
 0x112   :  { %1719 = vpow2.f32 %v631_v37  ;;  %v657_v50 = vmul.f32 1.442695, %v607_v52  ;;  %v659_v61 = vmul.f32 1.442695, %v608_v53  ;;  %v661_v62 = vmul.f32 1.442695, %v609_v54 }
 0x113   :  { %1721 = vpow2.f32 %v633_v38  ;;  %v649_v38 = vmul.f32 1.442695, %v603_v43  ;;  %v653_v43 = vmul.f32 1.442695, %v605_v45  ;;  %v663_v4 = vmul.f32 1.442695, %v610_v55 }
 0x114   :  { %1723 = vpow2.f32 %v635_v19  ;;  %v665_v54 = vmul.f32 1.442695, %v2795_v5  ;;  %v2797_v57 = vsub.f32 %v2083_v9, %v2146_v2 }
 0x115   :  { %1725 = vpow2.f32 %v637_v22 }
 0x116   :  { %1727 = vpow2.f32 %v639_v24  ;;  %v669_v55 = vmul.f32 1.442695, %v2797_v57 }
 0x117   :  { %v1710_v37 = vpop.eup %1709  ;;  %1729 = vpow2.f32 %v641_v25 }
 0x118   :  { %v1712_v49 = vpop.eup %1711  ;;  %1731 = vpow2.f32 %v643_v28  ;;  %v685_v19 = vmul.f32 %v1710_v37, %v2220_v48 }
 0x119   :  { %v1714_v22 = vpop.eup %1713  ;;  %1733 = vpow2.f32 %v645_v59  ;;  %v686_v24 = vmul.f32 %v1712_v49, %v2223_v20  ;;  %v2247_v25 = vadd.f32 %v1712_v49, %v1710_v37  ;;  %v2796_v37 = vsub.f32 %v2081_v8, %v2143_v42 }
 0x11a   :  { %v1716_v46 = vpop.eup %1715  ;;  %1735 = vpow2.f32 %v647_v29  ;;  %v687_v44 = vmul.f32 %v1714_v22, %v2220_v48 }
 0x11b   :  { %v2256_v28 = vpop.eup %1717  ;;  %1737 = vpow2.f32 %v649_v38  ;;  %v688_v45 = vmul.f32 %v1716_v46, %v2223_v20  ;;  %v717_v59 = vadd.f32 %v686_v24, %v685_v19  ;;  %v2269_v34 = vadd.f32 %v1716_v46, %v1714_v22 }
 0x11c   :  { %v2262_v29 = vpop.eup %1719  ;;  %1739 = vpow2.f32 %v651_v32  ;;  %v689_v63 = vmul.f32 %v2256_v28, %v2220_v48  ;;  %v667_v38 = vmul.f32 1.442695, %v2796_v37  ;;  %v2799_v24 = vsub.f32 %v2087_v13, %v2149_v3 }
 0x11d   :  { %v2271_v51 = vpop.eup %1721  ;;  %1741 = vpow2.f32 %v653_v43  ;;  %v690_v56 = vmul.f32 %v2262_v29, %v2223_v20  ;;  %v724_v52 = vadd.f32 %v688_v45, %v687_v44  ;;  %v718_v32 = vrot.slane %v717_v59, 4 }
 0x11e   :  { %v2278_v53 = vpop.eup %1723  ;;  %1743 = vpow2.f32 %v655_v60  ;;  %v691_v46 = vmul.f32 %v2271_v51, %v2220_v48  ;;  %v2798_v43 = vsub.f32 %v2085_v12, %v2146_v2  ;;  %v673_v60 = vmul.f32 1.442695, %v2799_v24 }
 0x11f   :  { %v2288_v6 = vpop.eup %1725  ;;  %1745 = vpow2.f32 %v657_v50  ;;  %v692_v49 = vmul.f32 %v2278_v53, %v2223_v20  ;;  %v725_v42 = vrot.slane %v724_v52, 4  ;;  %v731_v19 = vadd.f32 %v690_v56, %v689_v63 }
 0x120   :  { %v2295_v7 = vpop.eup %1727  ;;  %1747 = vpow2.f32 %v659_v61  ;;  %v693_v8 = vmul.f32 %v2288_v6, %v2220_v48  ;;  %v671_v9 = vmul.f32 1.442695, %v2798_v43  ;;  %v2800_v12 = vsub.f32 %v2089_v14, %v2149_v3 }
 0x121   :  { %v2299_v22 = vpop.eup %1729  ;;  %1749 = vpow2.f32 %v661_v62  ;;  %v694_v50 = vmul.f32 %v2295_v7, %v2223_v20  ;;  %v732_v45 = vrot.slane %v731_v19, 4  ;;  %v738_v63 = vadd.f32 %v692_v49, %v691_v46 }
 0x122   :  { %v2309_v44 = vpop.eup %1731  ;;  %1751 = vpow2.f32 %v663_v4  ;;  %v695_v61 = vmul.f32 %v2299_v22, %v2220_v48  ;;  %v675_v2 = vmul.f32 1.442695, %v2800_v12  ;;  %v2801_v13 = vsub.f32 %v2091_v15, %v2152_v36 }
 0x123   :  { %v2313_v62 = vpop.eup %1733  ;;  %1753 = vpow2.f32 %v665_v54  ;;  %v696_v5 = vmul.f32 %v2309_v44, %v2223_v20  ;;  %v719_v46 = vadd.f32 %v718_v32, %v717_v59  ;;  %v726_v57 = vadd.f32 %v725_v42, %v724_v52 }
 0x124   :  { %v677_v56 = vmul.f32 1.442695, %v2801_v13  ;;  %v2323_v4 = vpop.eup %1735  ;;  %1755 = vpow2.f32 %v667_v38  ;;  %v697_v37 = vmul.f32 %v2313_v62, %v2220_v48  ;;  %v2802_v14 = vsub.f32 %v2093_v16, %v2152_v36 }
 0x125   :  { %v2327_v54 = vpop.eup %1737  ;;  %1757 = vpow2.f32 %v669_v55  ;;  %v698_v15 = vmul.f32 %v2323_v4, %v2223_v20  ;;  %v830_v49 = vrot.slane %v2247_v25, 4  ;;  %v733_v59 = vadd.f32 %v732_v45, %v731_v19 }
 0x126   :  { %v679_v3 = vmul.f32 1.442695, %v2802_v14  ;;  %v2335_v43 = vpop.eup %1739  ;;  %1759 = vpow2.f32 %v671_v9  ;;  %v699_v38 = vmul.f32 %v2327_v54, %v2220_v48  ;;  %v739_v52 = vrot.slane %v738_v63, 4 }
 0x127   :  { %v2339_v32 = vpop.eup %1741  ;;  %1761 = vpow2.f32 %v673_v60  ;;  %v2803_v16 = vsub.f32 %v2095_v17, %v2155_v10  ;;  %v2804_v55 = vsub.f32 %v2097_v21, %v2155_v10  ;;  %v700_v24 = vmul.f32 %v2335_v43, %v2223_v20 }
 0x128   :  { %v2349_v9 = vpop.eup %1743  ;;  %1763 = vpow2.f32 %v675_v2  ;;  %v701_v19 = vmul.f32 %v2339_v32, %v2220_v48  ;;  %v720_v45 = vrot.slane %v719_v46, 2  ;;  %v727_v12 = vrot.slane %v726_v57, 2 }
 0x129   :  { %v681_v36 = vmul.f32 1.442695, %v2803_v16  ;;  %v683_v42 = vmul.f32 1.442695, %v2804_v55  ;;  %v2353_v60 = vpop.eup %1745  ;;  %1765 = vpow2.f32 %v677_v56  ;;  %v702_v17 = vmul.f32 %v2349_v9, %v2223_v20 }
 0x12a   :  { %2805 = vst [vmem:[#allocation9_spill] sm:$0xff] %v2353_v60  ;;  %v745_v13 = vadd.f32 %v694_v50, %v693_v8  ;;  %v2358_v21 = vadd.f32 %v830_v49, %v2247_v25  ;;  %v2360_v10 = vpop.eup %1747  ;;  %1767 = vpow2.f32 %v679_v3  ;;  %v703_v2 = vmul.f32 %v2353_v60, %v2220_v48 }
 0x12b   :  { %2806 = vst [vmem:[#allocation10_spill] sm:$0xff] %v2360_v10  ;;  %v734_v14 = vrot.slane %v733_v59, 2  ;;  %v740_v16 = vadd.f32 %v739_v52, %v738_v63  ;;  %v2364_v55 = vpop.eup %1749  ;;  %1769 = vpow2.f32 %v681_v36  ;;  %v704_v56 = vmul.f32 %v2360_v10, %v2223_v20 }
 0x12c   :  { %2807 = vst [vmem:[#allocation11_spill] sm:$0xff] %v2364_v55  ;;  %v746_v41 = vrot.slane %v745_v13, 4  ;;  %v752_v31 = vadd.f32 %v696_v5, %v695_v61  ;;  %v2368_v8 = vpop.eup %1751  ;;  %1771 = vpow2.f32 %v683_v42  ;;  %v705_v25 = vmul.f32 %v2364_v55, %v2220_v48 }
 0x12d   :  { %2808 = vst [vmem:[#allocation12_spill] sm:$0xff] %v2368_v8  ;;  %v721_v50 = vadd.f32 %v720_v45, %v719_v46  ;;  %v728_v3 = vadd.f32 %v727_v12, %v726_v57  ;;  %v2372_v49 = vpop.eup %1753  ;;  %v706_v63 = vmul.f32 %v2368_v8, %v2223_v20  ;;  %v759_v26 = vadd.f32 %v698_v15, %v697_v37 }
 0x12e   :  { %2809 = vst [vmem:[#allocation13_spill] sm:$0xff] %v2372_v49  ;;  %v747_v52 = vadd.f32 %v746_v41, %v745_v13  ;;  %v753_v36 = vrot.slane %v752_v31, 4  ;;  %v2376_v39 = vpop.eup %1755  ;;  %v707_v61 = vmul.f32 %v2372_v49, %v2220_v48  ;;  %v735_v5 = vadd.f32 %v734_v14, %v733_v59 }
 0x12f   :  { %2810 = vst [vmem:[#allocation14_spill] sm:$0xff] %v2376_v39  ;;  %v766_v42 = vadd.f32 %v700_v24, %v699_v38  ;;  %v773_v23 = vadd.f32 %v702_v17, %v701_v19  ;;  %v2380_v27 = vpop.eup %1757  ;;  %v708_v46 = vmul.f32 %v2376_v39, %v2223_v20  ;;  %v741_v57 = vrot.slane %v740_v16, 2 }
 0x130   :  { %2811 = vst [vmem:[#allocation15_spill] sm:$0xff] %v2380_v27  ;;  %v748_v45 = vrot.slane %v747_v52, 2  ;;  %v760_v12 = vrot.slane %v759_v26, 4  ;;  %v2384_v18 = vpop.eup %1759  ;;  %v709_v41 = vmul.f32 %v2380_v27, %v2220_v48  ;;  %v780_v13 = vadd.f32 %v704_v56, %v703_v2 }
 0x131   :  { %2812 = vst [vmem:[#allocation16_spill] sm:$0xff] %v2384_v18  ;;  %v767_v37 = vrot.slane %v766_v42, 4  ;;  %v774_v15 = vrot.slane %v773_v23, 4  ;;  %v2388_v40 = vpop.eup %1761  ;;  %v710_v38 = vmul.f32 %v2384_v18, %v2223_v20  ;;  %v722_v59 = vrot.slane %v721_v50, 1 }
 0x132   :  { %2813 = vst [vmem:[#allocation17_spill] sm:$0xff] %v2388_v40  ;;  %v754_v24 = vadd.f32 %v753_v36, %v752_v31  ;;  %v761_v19 = vadd.f32 %v760_v12, %v759_v26  ;;  %v2392_v17 = vpop.eup %1763  ;;  %v711_v14 = vmul.f32 %v2388_v40, %v2220_v48  ;;  %v781_v0 = vrot.slane %v780_v13, 4 }
 0x133   :  { %2814 = vst [vmem:[#allocation18_spill] sm:$0xff] %v2392_v17  ;;  %v768_v33 = vadd.f32 %v767_v37, %v766_v42  ;;  %v775_v30 = vadd.f32 %v774_v15, %v773_v23  ;;  %v2396_v11 = vpop.eup %1765  ;;  %v712_v2 = vmul.f32 %v2392_v17, %v2223_v20  ;;  %v729_v56 = vrot.slane %v728_v3, 1 }
 0x134   :  { %2815 = vst [vmem:[#allocation19_spill] sm:$0xff] %v2396_v11  ;;  %v736_v1 = vrot.slane %v735_v5, 1  ;;  %v837_v47 = vrot.slane %v2269_v34, 4  ;;  %v2401_v58 = vpop.eup %1767  ;;  %v713_v26 = vmul.f32 %v2396_v11, %v2220_v48  ;;  %v742_v31 = vadd.f32 %v741_v57, %v740_v16 }
 0x135   :  { %2816 = vst [vmem:[#allocation20_spill] sm:$0xff] %v2401_v58  ;;  %v749_v36 = vadd.f32 %v748_v45, %v747_v52  ;;  %v782_v12 = vadd.f32 %v781_v0, %v780_v13  ;;  %v2405_v42 = vpop.eup %1769  ;;  %v714_v23 = vmul.f32 %v2401_v58, %v2223_v20  ;;  %v2409_v37 = vadd.f32 %v722_v59, %v721_v50 }
 0x136   :  { %2817 = vst [vmem:[#allocation21_spill] sm:$0xff] %v2405_v42  ;;  %v755_v15 = vrot.slane %v754_v24, 2  ;;  %v832_v35 = vrot.slane %v2358_v21, 2  ;;  %v2412_v17 = vpop.eup %1771  ;;  %v715_v40 = vmul.f32 %v2405_v42, %v2220_v48  ;;  %v762_v18 = vrot.slane %v761_v19, 2 }
 0x137   :  { %2818 = vst [vmem:[#allocation22_spill] sm:$0xff] %v2409_v37  ;;  %v769_v11 = vrot.slane %v768_v33, 2  ;;  %v776_v16 = vrot.slane %v775_v30, 2  ;;  %v716_v0 = vmul.f32 %v2412_v17, %v2223_v20  ;;  %v2418_v52 = vadd.f32 %v729_v56, %v728_v3 }
 0x138   :  { %v2420_v57 = vadd.f32 %v736_v1, %v735_v5  ;;  %v787_v50 = vadd.f32 %v706_v63, %v705_v25  ;;  %v743_v45 = vrot.slane %v742_v31, 1  ;;  %v750_v13 = vrot.slane %v749_v36, 1 }
 0x139   :  { %v783_v59 = vrot.slane %v782_v12, 2  ;;  %v794_v37 = vadd.f32 %v708_v46, %v707_v61  ;;  %v756_v58 = vadd.f32 %v755_v15, %v754_v24  ;;  %v801_v39 = vadd.f32 %v710_v38, %v709_v41 }
 0x13a   :  { %2819 = vst [vmem:[#allocation23_spill] sm:$0xff] %v2420_v57  ;;  %v788_v27 = vrot.slane %v787_v50, 4  ;;  %v808_v49 = vadd.f32 %v712_v2, %v711_v14  ;;  %v763_v48 = vadd.f32 %v762_v18, %v761_v19  ;;  %v770_v42 = vadd.f32 %v769_v11, %v768_v33 }
 0x13b   :  { %v777_v8 = vadd.f32 %v776_v16, %v775_v30  ;;  %v795_v55 = vrot.slane %v794_v37, 4  ;;  %v802_v60 = vrot.slane %v801_v39, 4  ;;  %v815_v3 = vadd.f32 %v714_v23, %v713_v26 }
 0x13c   :  { %v789_v10 = vadd.f32 %v788_v27, %v787_v50  ;;  %v809_v20 = vrot.slane %v808_v49, 4  ;;  %v784_v56 = vadd.f32 %v783_v59, %v782_v12  ;;  %v822_v5 = vadd.f32 %v716_v0, %v715_v40 }
 0x13d   :  { %v796_v1 = vadd.f32 %v795_v55, %v794_v37  ;;  %v833_v25 = vadd.f32 %v832_v35, %v2358_v21  ;;  %v757_v63 = vrot.slane %v756_v58, 1  ;;  %v803_v61 = vadd.f32 %v802_v60, %v801_v39 }
 0x13e   :  { %v790_v57 = vrot.slane %v789_v10, 2  ;;  %v810_v46 = vadd.f32 %v809_v20, %v808_v49  ;;  %v2423_v24 = vadd.f32 %v743_v45, %v742_v31  ;;  %v816_v18 = vrot.slane %v815_v3, 4 }
 0x13f   :  { %v797_v41 = vrot.slane %v796_v1, 2  ;;  %v838_v11 = vadd.f32 %v837_v47, %v2269_v34  ;;  %v764_v30 = vrot.slane %v763_v48, 1  ;;  %v771_v33 = vrot.slane %v770_v42, 1 }
 0x140   :  { %v778_v27 = vrot.slane %v777_v8, 1  ;;  %v823_v38 = vrot.slane %v822_v5, 4  ;;  %v2426_v19 = vadd.f32 %v750_v13, %v749_v36  ;;  %v785_v55 = vrot.slane %v784_v56, 1 }
 0x141   :  { %v834_v40 = vrot.slane %v833_v25, 1  ;;  %v839_v14 = vrot.slane %v838_v11, 2  ;;  %v2428_v35 = vadd.f32 %v757_v63, %v756_v58  ;;  %v2430_v21 = vadd.f32 %v790_v57, %v789_v10 }
 0x142   :  { %v804_v39 = vrot.slane %v803_v61, 2  ;;  %v811_v60 = vrot.slane %v810_v46, 2  ;;  %v2432_v49 = vadd.f32 %v797_v41, %v796_v1  ;;  %v2434_v2 = vadd.f32 %v816_v18, %v815_v3 }
 0x143   :  { %v840_v47 = vadd.f32 %v839_v14, %v838_v11  ;;  %v843_v34 = vadd.f32 %v2262_v29, %v2256_v28  ;;  %v2438_v26 = vadd.f32 %v764_v30, %v763_v48  ;;  %v2440_v31 = vadd.f32 %v771_v33, %v770_v42 }
 0x144   :  { %v2442_v36 = vadd.f32 %v778_v27, %v777_v8  ;;  %v2444_v58 = vadd.f32 %v823_v38, %v822_v5  ;;  %v2446_v10 = vadd.f32 %v785_v55, %v784_v56  ;;  %v2448_v12 = vadd.f32 %v834_v40, %v833_v25 }
 0x145   :  { %v841_v23 = vrot.slane %v840_v47, 1  ;;  %v844_v37 = vrot.slane %v843_v34, 4  ;;  %v792_v15 = vrot.slane %v2430_v21, 1  ;;  %v2451_v16 = vadd.f32 %v804_v39, %v803_v61 }
 0x146   :  { %v2453_v0 = vadd.f32 %v811_v60, %v810_v46  ;;  %v850_v28 = vadd.f32 %v2278_v53, %v2271_v51  ;;  %v799_v29 = vrot.slane %v2432_v49, 1  ;;  %v818_v8 = vrot.slane %v2434_v2, 2 }
 0x147   :  { %v845_v42 = vadd.f32 %v844_v37, %v843_v34  ;;  %v857_v57 = vadd.f32 %v2295_v7, %v2288_v6  ;;  %v825_v50 = vrot.slane %v2444_v58, 2  ;;  %v864_v13 = vadd.f32 %v2309_v44, %v2299_v22  ;;  %v2820_v22 = vld [vmem:[#allocation9_spill] sm:$0xff]  ;;  %v2821_v44 = vld [vmem:[#allocation10_spill] sm:$0xff]  ;;  %v2822_v37 = vld [vmem:[#allocation11_spill] sm:$0xff] }
 0x148   :  { %v851_v45 = vrot.slane %v850_v28, 4  ;;  %v871_v59 = vadd.f32 %v2323_v4, %v2313_v62  ;;  %v2466_v48 = vadd.f32 %v841_v23, %v840_v47  ;;  %v878_v20 = vadd.f32 %v2335_v43, %v2327_v54 }
 0x149   :  { %v846_v51 = vrot.slane %v845_v42, 2  ;;  %v858_v53 = vrot.slane %v857_v57, 4  ;;  %v865_v56 = vrot.slane %v864_v13, 4  ;;  %v885_v6 = vadd.f32 %v2349_v9, %v2339_v32 }
 0x14a   :  { %v852_v3 = vadd.f32 %v851_v45, %v850_v28  ;;  %v872_v1 = vrot.slane %v871_v59, 4  ;;  %v879_v25 = vrot.slane %v878_v20, 4  ;;  %v892_v63 = vadd.f32 %v2821_v44, %v2820_v22  ;;  %v2823_v28 = vld [vmem:[#allocation12_spill] sm:$0xff] }
 0x14b   :  { %v847_v7 = vadd.f32 %v846_v51, %v845_v42  ;;  %v859_v5 = vadd.f32 %v858_v53, %v857_v57  ;;  %v866_v4 = vadd.f32 %v865_v56, %v864_v13  ;;  %v886_v46 = vrot.slane %v885_v6, 4 }
 0x14c   :  { %v853_v62 = vrot.slane %v852_v3, 2  ;;  %v873_v61 = vadd.f32 %v872_v1, %v871_v59  ;;  %v880_v11 = vadd.f32 %v879_v25, %v878_v20  ;;  %v893_v54 = vrot.slane %v892_v63, 4 }
 0x14d   :  { %v848_v41 = vrot.slane %v847_v7, 1  ;;  %v860_v18 = vrot.slane %v859_v5, 2  ;;  %v867_v30 = vrot.slane %v866_v4, 2  ;;  %v887_v27 = vadd.f32 %v886_v46, %v885_v6 }
 0x14e   :  { %v854_v43 = vadd.f32 %v853_v62, %v852_v3  ;;  %v874_v33 = vrot.slane %v873_v61, 2  ;;  %v881_v9 = vrot.slane %v880_v11, 2  ;;  %v894_v55 = vadd.f32 %v893_v54, %v892_v63  ;;  %v2826_v62 = vld [vmem:[#allocation15_spill] sm:$0xff] }
 0x14f   :  { %v849_v38 = vadd.f32 %v848_v41, %v847_v7  ;;  %v861_v32 = vadd.f32 %v860_v18, %v859_v5  ;;  %v868_v14 = vadd.f32 %v867_v30, %v866_v4  ;;  %v888_v60 = vrot.slane %v887_v27, 2  ;;  %v2824_v7 = vld [vmem:[#allocation13_spill] sm:$0xff]  ;;  %v2825_v5 = vld [vmem:[#allocation14_spill] sm:$0xff]  ;;  %v2827_v4 = vld [vmem:[#allocation16_spill] sm:$0xff] }
 0x150   :  { %v855_v40 = vrot.slane %v854_v43, 1  ;;  %v875_v39 = vadd.f32 %v874_v33, %v873_v61  ;;  %v882_v34 = vadd.f32 %v881_v9, %v880_v11  ;;  %v895_v23 = vrot.slane %v894_v55, 2  ;;  %v2828_v18 = vld [vmem:[#allocation17_spill] sm:$0xff]  ;;  %v2829_v11 = vld [vmem:[#allocation18_spill] sm:$0xff]  ;;  %v2831_v30 = vld [vmem:[#allocation20_spill] sm:$0xff] }
 0x151   :  { %v862_v47 = vrot.slane %v861_v32, 1  ;;  %v899_v42 = vadd.f32 %v2823_v28, %v2822_v37  ;;  %v869_v45 = vrot.slane %v868_v14, 1  ;;  %v889_v59 = vadd.f32 %v888_v60, %v887_v27 }
 0x152   :  { %v856_v57 = vadd.f32 %v855_v40, %v854_v43  ;;  %v876_v13 = vrot.slane %v875_v39, 1  ;;  %v883_v53 = vrot.slane %v882_v34, 1  ;;  %v896_v20 = vadd.f32 %v895_v23, %v894_v55  ;;  %v2830_v43 = vld [vmem:[#allocation19_spill] sm:$0xff]  ;;  %v2832_v55 = vld [vmem:[#allocation21_spill] sm:$0xff] }
 0x153   :  { %v863_v51 = vadd.f32 %v862_v47, %v861_v32  ;;  %v900_v3 = vrot.slane %v899_v42, 4  ;;  %v870_v56 = vadd.f32 %v869_v45, %v868_v14  ;;  %v890_v6 = vrot.slane %v889_v59, 1 }
 0x154   :  { %v877_v1 = vadd.f32 %v876_v13, %v875_v39  ;;  %v906_v25 = vadd.f32 %v2825_v5, %v2824_v7  ;;  %v884_v22 = vadd.f32 %v883_v53, %v882_v34  ;;  %v897_v44 = vrot.slane %v896_v20, 1 }
 0x155   :  { %v901_v63 = vadd.f32 %v900_v3, %v899_v42  ;;  %v913_v61 = vadd.f32 %v2827_v4, %v2826_v62  ;;  %v891_v46 = vadd.f32 %v890_v6, %v889_v59  ;;  %v920_v54 = vadd.f32 %v2829_v11, %v2828_v18  ;;  %v2833_v11 = vld [vmem:[#allocation22_spill] sm:$0xff] }
 0x156   :  { %v907_v41 = vrot.slane %v906_v25, 4  ;;  %v927_v33 = vadd.f32 %v2831_v30, %v2830_v43  ;;  %v898_v27 = vadd.f32 %v897_v44, %v896_v20  ;;  %v934_v40 = vadd.f32 %v2412_v17, %v2832_v55  ;;  %v2835_v55 = vld [vmem:[#allocation7_spill] sm:$0xff] }
 0x157   :  { %v902_v32 = vrot.slane %v901_v63, 2  ;;  %v914_v9 = vrot.slane %v913_v61, 4  ;;  %v921_v39 = vrot.slane %v920_v54, 4  ;;  %1773 = vrcp.f32 %v2448_v12 }
 0x158   :  { %v908_v14 = vadd.f32 %v907_v41, %v906_v25  ;;  %v928_v60 = vrot.slane %v927_v33, 4  ;;  %v935_v23 = vrot.slane %v934_v40, 4  ;;  %1775 = vrcp.f32 %v2466_v48  ;;  %v1706_v48 = vld [vmem:[%s2764_s5] sm:$0xff]  }
 0x159   :  { %v903_v47 = vadd.f32 %v902_v32, %v901_v63  ;;  %v915_v34 = vadd.f32 %v914_v9, %v913_v61  ;;  %v922_v28 = vadd.f32 %v921_v39, %v920_v54  ;;  %1777 = vrcp.f32 %v849_v38  ;;  %1683 = vmatprep.mubr.msk.bf16.mxu1 %vm108_vm1, %v1706_v48  ;;  %v2834_v32 = vld [vmem:[#allocation23_spill] sm:$0xff] }
 0x15a   :  { %v909_v37 = vrot.slane %v908_v14, 2  ;;  %v929_v42 = vadd.f32 %v928_v60, %v927_v33  ;;  %v936_v59 = vadd.f32 %v935_v23, %v934_v40  ;;  %1779 = vrcp.f32 %v856_v57 }
 0x15b   :  { %v904_v45 = vrot.slane %v903_v47, 1  ;;  %v916_v13 = vrot.slane %v915_v34, 2  ;;  %v923_v17 = vrot.slane %v922_v28, 2  ;;  %1781 = vrcp.f32 %v863_v51 }
 0x15c   :  { %v910_v53 = vadd.f32 %v909_v37, %v908_v14  ;;  %v930_v20 = vrot.slane %v929_v42, 2  ;;  %v937_v12 = vrot.slane %v936_v59, 2  ;;  %1783 = vrcp.f32 %v870_v56 }
 0x15d   :  { %v905_v3 = vadd.f32 %v904_v45, %v903_v47  ;;  %v917_v6 = vadd.f32 %v916_v13, %v915_v34  ;;  %v924_v5 = vadd.f32 %v923_v17, %v922_v28  ;;  %1785 = vrcp.f32 %v877_v1 }
 0x15e   :  { %v911_v7 = vrot.slane %v910_v53, 1  ;;  %v931_v25 = vadd.f32 %v930_v20, %v929_v42  ;;  %v2494_v38 = vadd.f32 %v792_v15, %v2430_v21  ;;  %v938_v44 = vadd.f32 %v937_v12, %v936_v59 }
 0x15f   :  { %v918_v57 = vrot.slane %v917_v6, 1  ;;  %1787 = vrcp.f32 %v884_v22  ;;  %v925_v56 = vrot.slane %v924_v5, 1  ;;  %v819_v1 = vadd.f32 %v818_v8, %v2434_v2 }
 0x160   :  { %v912_v51 = vadd.f32 %v911_v7, %v910_v53  ;;  %v932_v63 = vrot.slane %v931_v25, 1  ;;  %1789 = vrcp.f32 %v891_v46  ;;  %v939_v4 = vrot.slane %v938_v44, 1 }
 0x161   :  { %v919_v62 = vadd.f32 %v918_v57, %v917_v6  ;;  %1791 = vrcp.f32 %v898_v27  ;;  %v1774_v21 = vpop.eup %1773  ;;  %v806_v15 = vrot.slane %v2451_v16, 1  ;;  %v926_v22 = vadd.f32 %v925_v56, %v924_v5 }
 0x162   :  { %v933_v61 = vadd.f32 %v932_v63, %v931_v25  ;;  %1793 = vrcp.f32 %v905_v3  ;;  %v1776_v41 = vpop.eup %1775  ;;  %v813_v18 = vrot.slane %v2453_v0, 1  ;;  %v940_v46 = vadd.f32 %v939_v4, %v938_v44  ;;  %v2843_v4 = vld [vmem:[#allocation8_spill] sm:$0xff] }
 0x163   :  { %1795 = vrcp.f32 %v912_v51  ;;  %v957_v54 = vmul.f32 %v1774_v21, %v2833_v11  ;;  %v1778_v2 = vpop.eup %1777  ;;  %v800_v8 = vadd.f32 %v799_v29, %v2432_v49  ;;  %v826_v43 = vadd.f32 %v825_v50, %v2444_v58 }
 0x164   :  { %1797 = vrcp.f32 %v919_v62  ;;  %v958_v30 = vmul.f32 %v1776_v41, %v2418_v52  ;;  %v1780_v33 = vpop.eup %1779  ;;  %v820_v27 = vrot.slane %v819_v1, 1  ;;  %v959_v9 = vmul.f32 %v1778_v2, %v2834_v32 }
 0x165   :  { %1799 = vrcp.f32 %v926_v22  ;;  %v2512_v40 = vadd.f32 %v957_v54, %v2835_v55  ;;  %v1782_v14 = vpop.eup %1781  ;;  %v807_v49 = vadd.f32 %v806_v15, %v2451_v16  ;;  %v960_v29 = vmul.f32 %v1780_v33, %v2423_v24 }
 0x166   :  { %1801 = vrcp.f32 %v933_v61  ;;  %v2836_v58 = vrot.slane %v2835_v55, 1  ;;  %v1784_v52 = vpop.eup %1783  ;;  %v814_v39 = vadd.f32 %v813_v18, %v2453_v0  ;;  %v961_v60 = vmul.f32 %v1782_v14, %v2426_v19 }
 0x167   :  { %1803 = vrcp.f32 %v940_v46  ;;  %v2837_v47 = vrot.slane %v2835_v55, 2  ;;  %v1786_v23 = vpop.eup %1785  ;;  %v827_v37 = vrot.slane %v826_v43, 1  ;;  %v962_v16 = vmul.f32 %v1784_v52, %v2428_v35 }
 0x168   :  { %v2518_v50 = vadd.f32 %v2836_v58, %v958_v30  ;;  %v2838_v24 = vrot.slane %v2835_v55, 3  ;;  %v821_v13 = vadd.f32 %v820_v27, %v819_v1  ;;  %v963_v0 = vmul.f32 %v1786_v23, %v2438_v26 }
 0x169   :  { %v2524_v34 = vadd.f32 %v2837_v47, %v959_v9  ;;  %v1788_v45 = vpop.eup %1787  ;;  %v2839_v19 = vrot.slane %v2835_v55, 4  ;;  %v2840_v35 = vrot.slane %v2835_v55, 5  ;;  %v2841_v7 = vrot.slane %v2835_v55, 6 }
 0x16a   :  { %v2529_v28 = vadd.f32 %v2838_v24, %v960_v29  ;;  %v1037_v42 = vrot.slane %v2518_v50, 7  ;;  %v1790_v17 = vpop.eup %1789  ;;  %v964_v20 = vmul.f32 %v1788_v45, %v2440_v31  ;;  %v2842_v51 = vrot.slane %v2835_v55, 7 }
 0x16b   :  { %v2535_v59 = vadd.f32 %v2839_v19, %v961_v60  ;;  %v1040_v53 = vrot.slane %v2524_v34, 6  ;;  %v2541_v3 = vadd.f32 %v2840_v35, %v962_v16  ;;  %v1792_v48 = vpop.eup %1791  ;;  %v965_v26 = vmul.f32 %v1790_v17, %v2442_v36 }
 0x16c   :  { %v1039_v6 = vsel %vm1038_vm4, %v1037_v42, %v2512_v40  ;;  %v1043_v12 = vrot.slane %v2529_v28, 5  ;;  %v2549_v5 = vadd.f32 %v2841_v7, %v963_v0  ;;  %v1794_v57 = vpop.eup %1793  ;;  %v966_v44 = vmul.f32 %v1792_v48, %v2446_v10 }
 0x16d   :  { %v1042_v25 = vsel %vm1041_vm5, %v1040_v53, %v1039_v6  ;;  %v1046_v31 = vrot.slane %v2535_v59, 4  ;;  %v1012_v56 = vadd.f32 %v2842_v51, %v964_v20  ;;  %v1049_v1 = vrot.slane %v2541_v3, 3  ;;  %v1796_v62 = vpop.eup %1795 }
 0x16e   :  { %v1045_v63 = vsel %vm1044_vm6, %v1043_v12, %v1042_v25  ;;  %v967_v36 = vmul.f32 %v1794_v57, %v2494_v38  ;;  %v1013_v21 = vadd.f32 %v965_v26, %v2843_v4  ;;  %v1052_v22 = vrot.slane %v2549_v5, 2  ;;  %v1798_v61 = vpop.eup %1797 }
 0x16f   :  { %v1048_v15 = vsel %vm1047_vm7, %v1046_v31, %v1045_v63  ;;  %v968_v41 = vmul.f32 %v1796_v62, %v800_v8  ;;  %v2844_v10 = vrot.slane %v2843_v4, 1  ;;  %v1055_v11 = vrot.slane %v1012_v56, 1  ;;  %v1800_v54 = vpop.eup %1799  ;;  %v2851_v62 = vld [vmem:[#allocation6_spill] sm:$0xff] }
 0x170   :  { %v1051_v46 = vsel %vm1050_vm8, %v1049_v1, %v1048_v15  ;;  %v828_v2 = vadd.f32 %v827_v37, %v826_v43  ;;  %v969_v30 = vmul.f32 %v1798_v61, %v807_v49  ;;  %v2845_v33 = vrot.slane %v2843_v4, 2  ;;  %v1802_v32 = vpop.eup %1801 }
 0x171   :  { %v1014_v18 = vadd.f32 %v2844_v10, %v966_v44  ;;  %v1054_v27 = vsel %vm1053_vm9, %v1052_v22, %v1051_v46  ;;  %v970_v9 = vmul.f32 %v1800_v54, %v814_v39  ;;  %v2846_v55 = vrot.slane %v2843_v4, 3  ;;  %v1804_v58 = vpop.eup %1803 }
 0x172   :  { %v1015_v38 = vadd.f32 %v2845_v33, %v967_v36  ;;  %v1057_v8 = vsel %vm1056_vm10, %v1055_v11, %v1054_v27  ;;  %v971_v52 = vmul.f32 %v1802_v32, %v821_v13  ;;  %v2847_v60 = vrot.slane %v2843_v4, 4 }
 0x173   :  { %v1016_v14 = vadd.f32 %v2846_v55, %v968_v41  ;;  %v1058_v29 = vrot.slane %v1014_v18, 7  ;;  %v972_v49 = vmul.f32 %v1804_v58, %v828_v2  ;;  %v2848_v23 = vrot.slane %v2843_v4, 5 }
 0x174   :  { %v1017_v47 = vadd.f32 %v2847_v60, %v969_v30  ;;  %v1060_v43 = vrot.slane %v1015_v38, 6  ;;  %v2849_v39 = vrot.slane %v2843_v4, 6  ;;  %v2850_v19 = vrot.slane %v2843_v4, 7 }
 0x175   :  { %v1018_v37 = vadd.f32 %v2848_v23, %v970_v9  ;;  %v1059_v16 = vsel %vm1038_vm4, %v1058_v29, %v1013_v21  ;;  %v1062_v24 = vrot.slane %v1016_v14, 5 }
 0x176   :  { %v1019_v42 = vadd.f32 %v2849_v39, %v971_v52  ;;  %v1061_v45 = vsel %vm1041_vm5, %v1060_v43, %v1059_v16  ;;  %v1064_v0 = vrot.slane %v1017_v47, 4  ;;  %v1020_v13 = vadd.f32 %v2850_v19, %v972_v49 }
 0x177   :  { %v1063_v53 = vsel %vm1044_vm6, %v1062_v24, %v1061_v45  ;;  %v1066_v17 = vrot.slane %v1018_v37, 3 }
 0x178   :  { %v1065_v20 = vsel %vm1047_vm7, %v1064_v0, %v1063_v53  ;;  %v1068_v35 = vrot.slane %v1019_v42, 2  ;;  %v1070_v12 = vrot.slane %v1020_v13, 1 }
 0x179   :  { %v1067_v6 = vsel %vm1050_vm8, %v1066_v17, %v1065_v20 }
 0x17a   :  { %v1069_v48 = vsel %vm1053_vm9, %v1068_v35, %v1067_v6 }
 0x17b   :  { %v1071_v26 = vsel %vm1056_vm10, %v1070_v12, %v1069_v48 }
 0x17c   :  { %v1074_v7 = vadd.f32 %v1071_v26, %v1057_v8 }
 0x17e   :  { %v1075_v25 = vrot.slane %v1074_v7, 4 }
 0x180   :  { %v1076_v31 = vadd.f32 %v1075_v25, %v1074_v7 }
 0x182   :  { %v1077_v57 = vrot.slane %v1076_v31, 2 }
 0x184   :  { %v1078_v44 = vadd.f32 %v1077_v57, %v1076_v31 }
 0x186   :  { %v1079_v51 = vrot.slane %v1078_v44, 1 }
 0x188   :  { %v1080_v63 = vadd.f32 %v1079_v51, %v1078_v44 }
 0x18a   :  { %v1082_v1 = vmul.f32 0.0625, %v1080_v63 }
 0x18c   :  { %v1086_v36 = vrot.slane %v1082_v1, %v2851_v62 }
 0x18e   :  { %v2588_v4 = vsub.f32 %v2512_v40, %v1086_v36  ;;  %v2591_v15 = vsub.f32 %v2518_v50, %v1086_v36  ;;  %v2594_v22 = vsub.f32 %v2524_v34, %v1086_v36  ;;  %v2597_v61 = vsub.f32 %v2529_v28, %v1086_v36 }
 0x18f   :  { %v2600_v41 = vsub.f32 %v2535_v59, %v1086_v36  ;;  %v2603_v10 = vsub.f32 %v2541_v3, %v1086_v36  ;;  %v2606_v46 = vsub.f32 %v2549_v5, %v1086_v36  ;;  %v2608_v40 = vsub.f32 %v1012_v56, %v1086_v36 }
 0x190   :  { %v2610_v11 = vsub.f32 %v1013_v21, %v1086_v36  ;;  %v2612_v50 = vsub.f32 %v1014_v18, %v1086_v36  ;;  %v2614_v34 = vsub.f32 %v1015_v38, %v1086_v36  ;;  %v2616_v54 = vsub.f32 %v1016_v14, %v1086_v36 }
 0x191   :  { %v2618_v28 = vsub.f32 %v1017_v47, %v1086_v36  ;;  %v2620_v59 = vsub.f32 %v1018_v37, %v1086_v36  ;;  %v2622_v2 = vsub.f32 %v1019_v42, %v1086_v36  ;;  %v2624_v3 = vsub.f32 %v1020_v13, %v1086_v36 }
 0x192   :  { %v1104_v5 = vmul.f32 %v2591_v15, %v2591_v15  ;;  %v1105_v56 = vmul.f32 %v2594_v22, %v2594_v22  ;;  %v1103_v21 = vmul.f32 %v2588_v4, %v2588_v4  ;;  %v1106_v18 = vmul.f32 %v2597_v61, %v2597_v61 }
 0x193   :  { %v1112_v30 = vmul.f32 %v2612_v50, %v2612_v50  ;;  %v1113_v33 = vmul.f32 %v2614_v34, %v2614_v34  ;;  %v1107_v38 = vmul.f32 %v2600_v41, %v2600_v41  ;;  %v1108_v27 = vmul.f32 %v2603_v10, %v2603_v10 }
 0x194   :  { %v1109_v32 = vmul.f32 %v2606_v46, %v2606_v46  ;;  %v1114_v9 = vmul.f32 %v2616_v54, %v2616_v54  ;;  %v1110_v55 = vmul.f32 %v2608_v40, %v2608_v40  ;;  %v1115_v14 = vmul.f32 %v2618_v28, %v2618_v28 }
 0x195   :  { %v1135_v8 = vrot.slane %v1104_v5, 7  ;;  %v1137_v29 = vrot.slane %v1105_v56, 6  ;;  %v1111_v58 = vmul.f32 %v2610_v11, %v2610_v11  ;;  %v1116_v52 = vmul.f32 %v2620_v59, %v2620_v59 }
 0x196   :  { %v1117_v60 = vmul.f32 %v2622_v2, %v2622_v2  ;;  %v1149_v47 = vrot.slane %v1112_v30, 7  ;;  %v1118_v43 = vmul.f32 %v2624_v3, %v2624_v3  ;;  %v1139_v23 = vrot.slane %v1106_v18, 5 }
 0x197   :  { %v1136_v49 = vsel %vm1038_vm4, %v1135_v8, %v1103_v21  ;;  %v1151_v37 = vrot.slane %v1113_v33, 6  ;;  %v1141_v24 = vrot.slane %v1107_v38, 4  ;;  %v1153_v42 = vrot.slane %v1114_v9, 5  ;;  %v1200_v38 = vpop.permute.xlu0 %1199 }
 0x198   :  { %v1138_v16 = vsel %vm1041_vm5, %v1137_v29, %v1136_v49  ;;  %v1150_v39 = vsel %vm1038_vm4, %v1149_v47, %v1111_v58  ;;  %v1143_v0 = vrot.slane %v1108_v27, 3  ;;  %v1155_v13 = vrot.slane %v1115_v14, 4  ;;  %v2672_v27 = vpop.permute.xlu1 %1203 }
 0x199   :  { %v1140_v45 = vsel %vm1044_vm6, %v1139_v23, %v1138_v16  ;;  %v1152_v19 = vsel %vm1041_vm5, %v1151_v37, %v1150_v39  ;;  %v1145_v17 = vrot.slane %v1109_v32, 2  ;;  %v1157_v35 = vrot.slane %v1116_v52, 3 }
 0x19a   :  { %v1142_v53 = vsel %vm1047_vm7, %v1141_v24, %v1140_v45  ;;  %v1154_v20 = vsel %vm1044_vm6, %v1153_v42, %v1152_v19  ;;  %v1147_v12 = vrot.slane %v1110_v55, 1  ;;  %v1159_v26 = vrot.slane %v1117_v60, 2 }
 0x19b   :  { %v1144_v6 = vsel %vm1050_vm8, %v1143_v0, %v1142_v53  ;;  %v1156_v48 = vsel %vm1047_vm7, %v1155_v13, %v1154_v20  ;;  %v1161_v31 = vrot.slane %v1118_v43, 1  ;;  %v1205_v32 = vrot.slane %v1200_v38, 1  ;;  %v2674_v14 = vpop.permute.xlu0 %1255 }
 0x19c   :  { %v1146_v7 = vsel %vm1053_vm9, %v1145_v17, %v1144_v6  ;;  %v1158_v25 = vsel %vm1050_vm8, %v1157_v35, %v1156_v48  ;;  %v1206_v9 = vrot.slane %v1200_v38, 2  ;;  %v1207_v55 = vrot.slane %v1200_v38, 3  ;;  %v2680_v60 = vpop.permute.xlu1 %1259 }
 0x19d   :  { %v1148_v57 = vsel %vm1056_vm10, %v1147_v12, %v1146_v7  ;;  %v1160_v44 = vsel %vm1053_vm9, %v1159_v26, %v1158_v25  ;;  %v1261_v8 = vrot.slane %v2674_v14, 1  ;;  %v1212_v29 = vrot.slane %v2672_v27, 1 }
 0x19e   :  { %v1162_v51 = vsel %vm1056_vm10, %v1161_v31, %v1160_v44  ;;  %v1213_v58 = vrot.slane %v2672_v27, 2  ;;  %v1214_v52 = vrot.slane %v2672_v27, 3  ;;  %v1262_v47 = vrot.slane %v2674_v14, 2 }
 0x19f   :  { %v1165_v63 = vadd.f32 %v1162_v51, %v1148_v57  ;;  %v1268_v43 = vrot.slane %v2680_v60, 1  ;;  %v1269_v49 = vrot.slane %v2680_v60, 2  ;;  %v1208_v23 = vrot.slane %v1200_v38, 4 }
 0x1a0   :  { %v1209_v16 = vrot.slane %v1200_v38, 5  ;;  %v1210_v24 = vrot.slane %v1200_v38, 6  ;;  %v1211_v39 = vrot.slane %v1200_v38, 7  ;;  %v1263_v42 = vrot.slane %v2674_v14, 3 }
 0x1a1   :  { %v1166_v1 = vrot.slane %v1165_v63, 4  ;;  %v1264_v0 = vrot.slane %v2674_v14, 4  ;;  %v1265_v19 = vrot.slane %v2674_v14, 5  ;;  %v1266_v13 = vrot.slane %v2674_v14, 6 }
 0x1a2   :  { %v1215_v53 = vrot.slane %v2672_v27, 4  ;;  %v1216_v17 = vrot.slane %v2672_v27, 5  ;;  %v1217_v20 = vrot.slane %v2672_v27, 6  ;;  %v1267_v35 = vrot.slane %v2674_v14, 7 }
 0x1a3   :  { %v1167_v36 = vadd.f32 %v1166_v1, %v1165_v63 }
 0x1a5   :  { %v1168_v5 = vrot.slane %v1167_v36, 2 }
 0x1a7   :  { %v1169_v56 = vadd.f32 %v1168_v5, %v1167_v36 }
 0x1a9   :  { %v1170_v21 = vrot.slane %v1169_v56, 1 }
 0x1ab   :  { %v1171_v18 = vadd.f32 %v1170_v21, %v1169_v56 }
 0x1ad   :  { %v1172_v30 = vmul.f32 0.0625, %v1171_v18 }
 0x1af   :  { %v1173_v33 = vadd.f32 1e-05, %v1172_v30 }
 0x1b1   :  { %1805 = vrsqrt.f32 %v1173_v33 }
 0x1bb   :  { %v1806_v37 = vpop.eup %1805 }
 0x1bc   :  { %v1178_v45 = vrot.slane %v1806_v37, %v2851_v62 }
 0x1be   :  { %v1179_v6 = vmul.f32 %v1178_v45, %v2588_v4  ;;  %v1180_v12 = vmul.f32 %v1178_v45, %v2591_v15  ;;  %v1181_v62 = vmul.f32 %v1178_v45, %v2594_v22  ;;  %v1182_v48 = vmul.f32 %v1178_v45, %v2597_v61 }
 0x1bf   :  { %v1183_v26 = vmul.f32 %v1178_v45, %v2600_v41  ;;  %v1184_v7 = vmul.f32 %v1178_v45, %v2603_v10  ;;  %v1185_v25 = vmul.f32 %v1178_v45, %v2606_v46  ;;  %v1186_v31 = vmul.f32 %v1178_v45, %v2608_v40 }
 0x1c0   :  { %v1187_v57 = vmul.f32 %v1178_v45, %v2610_v11  ;;  %v1188_v44 = vmul.f32 %v1178_v45, %v2612_v50  ;;  %v1189_v4 = vmul.f32 %v1178_v45, %v2614_v34  ;;  %v1190_v15 = vmul.f32 %v1178_v45, %v2616_v54 }
 0x1c1   :  { %v1191_v22 = vmul.f32 %v1178_v45, %v2618_v28  ;;  %v1192_v61 = vmul.f32 %v1178_v45, %v2620_v59  ;;  %v1193_v41 = vmul.f32 %v1178_v45, %v2622_v2  ;;  %v1194_v10 = vmul.f32 %v1178_v45, %v2624_v3 }
 0x1c2   :  { %v1218_v46 = vrot.slane %v2672_v27, 7  ;;  %v1236_v51 = vmul.f32 %v1205_v32, %v1180_v12  ;;  %v1237_v40 = vmul.f32 %v1206_v9, %v1181_v62  ;;  %v1270_v11 = vrot.slane %v2680_v60, 3 }
 0x1c3   :  { %v1271_v50 = vrot.slane %v2680_v60, 4  ;;  %v1272_v34 = vrot.slane %v2680_v60, 5  ;;  %v1273_v54 = vrot.slane %v2680_v60, 6  ;;  %v1274_v28 = vrot.slane %v2680_v60, 7 }
 0x1c4   :  { %v1235_v63 = vmul.f32 %v1200_v38, %v1179_v6  ;;  %v1238_v59 = vmul.f32 %v1207_v55, %v1182_v48  ;;  %v1244_v1 = vmul.f32 %v1212_v29, %v1188_v44  ;;  %v1245_v2 = vmul.f32 %v1213_v58, %v1189_v4 }
 0x1c5   :  { %v1239_v36 = vmul.f32 %v1208_v23, %v1183_v26  ;;  %v1240_v3 = vmul.f32 %v1209_v16, %v1184_v7  ;;  %v1241_v5 = vmul.f32 %v1210_v24, %v1185_v25  ;;  %v1246_v56 = vmul.f32 %v1214_v52, %v1190_v15 }
 0x1c6   :  { %v1242_v21 = vmul.f32 %v1211_v39, %v1186_v31  ;;  %v1247_v18 = vmul.f32 %v1215_v53, %v1191_v22  ;;  %v1292_v30 = vadd.f32 %v1261_v8, %v1236_v51  ;;  %v1293_v33 = vadd.f32 %v1262_v47, %v1237_v40 }
 0x1c7   :  { %v1243_v32 = vmul.f32 %v2672_v27, %v1187_v57  ;;  %v1248_v9 = vmul.f32 %v1216_v17, %v1192_v61  ;;  %v1249_v37 = vmul.f32 %v1217_v20, %v1193_v41  ;;  %v1250_v45 = vmul.f32 %v1218_v46, %v1194_v10 }
 0x1c8   :  { %v1291_v12 = vadd.f32 %v2674_v14, %v1235_v63  ;;  %v1294_v62 = vadd.f32 %v1263_v42, %v1238_v59  ;;  %v1300_v38 = vadd.f32 %v1268_v43, %v1244_v1  ;;  %v1301_v55 = vadd.f32 %v1269_v49, %v1245_v2 }
 0x1c9   :  { %v1295_v29 = vadd.f32 %v1264_v0, %v1239_v36  ;;  %v1296_v58 = vadd.f32 %v1265_v19, %v1240_v3  ;;  %v1297_v23 = vadd.f32 %v1266_v13, %v1241_v5  ;;  %v1302_v16 = vadd.f32 %v1270_v11, %v1246_v56 }
 0x1ca   :  { %v1298_v24 = vadd.f32 %v1267_v35, %v1242_v21  ;;  %v1303_v52 = vadd.f32 %v1271_v50, %v1247_v18  ;;  %v1312_v39 = vpack.c.bf16 %v1292_v30, %v1292_v30  ;;  %v1313_v53 = vpack.c.bf16 %v1293_v33, %v1293_v33 }
 0x1cb   :  { %v1299_v8 = vadd.f32 %v2680_v60, %v1243_v32  ;;  %v1304_v47 = vadd.f32 %v1272_v34, %v1248_v9  ;;  %v1305_v27 = vadd.f32 %v1273_v54, %v1249_v37  ;;  %v1306_v17 = vadd.f32 %v1274_v28, %v1250_v45 }
 0x1cc   :  { %v1311_v20 = vpack.c.bf16 %v1291_v12, %v1291_v12  ;;  %v1314_v6 = vpack.c.bf16 %v1294_v62, %v1294_v62  ;;  %v1320_v48 = vpack.c.bf16 %v1300_v38, %v1300_v38  ;;  %v1321_v14 = vpack.c.bf16 %v1301_v55, %v1301_v55 }
 0x1cd   :  { %v1315_v42 = vpack.c.bf16 %v1295_v29, %v1295_v29  ;;  %v1316_v43 = vpack.c.bf16 %v1296_v58, %v1296_v58  ;;  %v1317_v49 = vpack.c.bf16 %v1297_v23, %v1297_v23  ;;  %v1322_v0 = vpack.c.bf16 %v1302_v16, %v1302_v16 }
 0x1ce   :  { %v1318_v19 = vpack.c.bf16 %v1298_v24, %v1298_v24  ;;  %v1323_v13 = vpack.c.bf16 %v1303_v52, %v1303_v52  ;;  %v1378_v26 = vunpack.c.l.b16 %v1312_v39  ;;  %v1379_v35 = vunpack.c.l.b16 %v1313_v53  ;;  %v1707_v53 = vld [vmem:[%s2764_s5 + $0x8] sm:$0xff]  }
 0x1cf   :  { %v1319_v7 = vpack.c.bf16 %v1299_v8, %v1299_v8  ;;  %v1324_v25 = vpack.c.bf16 %v1304_v47, %v1304_v47  ;;  %v1325_v31 = vpack.c.bf16 %v1305_v27, %v1305_v27  ;;  %v1326_v57 = vpack.c.bf16 %v1306_v17, %v1306_v17  ;;  %v1334_v47 = vpop.permute.xlu0 %1333  ;;  %v1339_v27 = vpop.permute.xlu1 %1338 }
 0x1d0   :  { %v1377_v60 = vunpack.c.l.b16 %v1311_v20  ;;  %v1380_v44 = vunpack.c.l.b16 %v1314_v6  ;;  %v1386_v4 = vunpack.c.l.b16 %v1320_v48  ;;  %v1387_v15 = vunpack.c.l.b16 %v1321_v14 }
 0x1d1   :  { %v1381_v22 = vunpack.c.l.b16 %v1315_v42  ;;  %v1382_v61 = vunpack.c.l.b16 %v1316_v43  ;;  %v1383_v41 = vunpack.c.l.b16 %v1317_v49  ;;  %v1388_v10 = vunpack.c.l.b16 %v1322_v0 }
 0x1d2   :  { %v1384_v46 = vunpack.c.l.b16 %v1318_v19  ;;  %v1389_v51 = vunpack.c.l.b16 %v1323_v13  ;;  %v1393_v40 = vrot.slane %v1378_v26, 7  ;;  %v1395_v11 = vrot.slane %v1379_v35, 6 }
 0x1d3   :  { %v1385_v50 = vunpack.c.l.b16 %v1319_v7  ;;  %v1390_v34 = vunpack.c.l.b16 %v1324_v25  ;;  %v1391_v54 = vunpack.c.l.b16 %v1325_v31  ;;  %v1407_v28 = vrot.slane %v1386_v4, 7  ;;  %v1344_v20 = vpop.permute.xlu0 %1343  ;;  %v1349_v43 = vpop.permute.xlu1 %1348 }
 0x1d4   :  { %v1392_v63 = vunpack.c.l.b16 %v1326_v57  ;;  %v1394_v59 = vsel %vm1038_vm4, %v1393_v40, %v1377_v60  ;;  %v1397_v1 = vrot.slane %v1380_v44, 5  ;;  %v1409_v2 = vrot.slane %v1387_v15, 6 }
 0x1d5   :  { %v1396_v36 = vsel %vm1041_vm5, %v1395_v11, %v1394_v59  ;;  %v1399_v3 = vrot.slane %v1381_v22, 4  ;;  %v1408_v5 = vsel %vm1038_vm4, %v1407_v28, %v1385_v50  ;;  %v1411_v56 = vrot.slane %v1388_v10, 5 }
 0x1d6   :  { %v1398_v21 = vsel %vm1044_vm6, %v1397_v1, %v1396_v36  ;;  %v1401_v18 = vrot.slane %v1382_v61, 3  ;;  %v1410_v30 = vsel %vm1041_vm5, %v1409_v2, %v1408_v5  ;;  %v1413_v33 = vrot.slane %v1389_v51, 4 }
 0x1d7   :  { %v1400_v32 = vsel %vm1047_vm7, %v1399_v3, %v1398_v21  ;;  %v1403_v9 = vrot.slane %v1383_v41, 2  ;;  %v1412_v37 = vsel %vm1044_vm6, %v1411_v56, %v1410_v30  ;;  %v1415_v45 = vrot.slane %v1390_v34, 3 }
 0x1d8   :  { %v1402_v12 = vsel %vm1050_vm8, %v1401_v18, %v1400_v32  ;;  %v1405_v62 = vrot.slane %v1384_v46, 1  ;;  %v1414_v38 = vsel %vm1047_vm7, %v1413_v33, %v1412_v37  ;;  %v1417_v55 = vrot.slane %v1391_v54, 2  ;;  %v1532_v32 = vpop.permute.xlu0 %1531 }
 0x1d9   :  { %v1404_v29 = vsel %vm1053_vm9, %v1403_v9, %v1402_v12  ;;  %v1416_v58 = vsel %vm1050_vm8, %v1415_v45, %v1414_v38  ;;  %v1419_v23 = vrot.slane %v1392_v63, 1  ;;  %v2852_v8 = vmov 0.0   ;;  %v1537_v9 = vpop.permute.xlu1 %1536 }
 0x1da   :  { %v1406_v16 = vsel %vm1056_vm10, %v1405_v62, %v1404_v29  ;;  %v1418_v24 = vsel %vm1053_vm9, %v1417_v55, %v1416_v58 }
 0x1db   :  { %v1420_v52 = vsel %vm1056_vm10, %v1419_v23, %v1418_v24 }
 0x1dc   :  { %v1421_v39 = vpack.c.b16 %v1420_v52, %v1406_v16  ;;  %v1560_v12 = vpop.permute.xlu0 %1559 }
 0x1dd   :  { %v1565_v62 = vpop.permute.xlu1 %1564 }
 0x1de   :  { %1681 = vmatprep.subr.bf16.mxu1 %v1421_v39 }
 0x1df   :  { %1682 = vmatpush3.bf16.msra.mxu1 %v1421_v39 }
 0x1e0   :  { %1687 = vmatprep.subr.bf16.mxu1 %v2852_v8  ;;  %v1542_v38 = vpop.permute.xlu0 %1541 }
 0x1e1   :  { %v1547_v55 = vpop.permute.xlu1 %1546 }
 0x1e2   :  { %1684 = vmatmul.mubr.msk.bf16.vlgmr.msra.gmra.mrb[0].mxu1 %vm108_vm1, %v1707_v53 }
 0x1e3   :  { %1691 = vmatprep.mubr.msk.bf16.mxu1 %vm1834_vm0, %v2852_v8 }
 0x2b5   :  { %v1685_v17 = vpop.f32.mrb[0].mxu1 }
 0x2b6   :  { %v1463_v6 = vpop.f32.mrb[1].mxu1  ;;  %v1472_v48 = vadd.f32 %v1685_v17, %v1344_v20  ;;  %v1575_v17 = vpop.permute.xlu1 %1574 }
 0x2b7   :  { %v1464_v14 = vadd.f32 %v1463_v6, %v1334_v47  ;;  %v1686_v42 = vpop.f32.mrb[2].mxu1 }
 0x2b8   :  { %v1466_v49 = vpop.f32.mrb[3].mxu1  ;;  %v1475_v19 = vadd.f32 %v1686_v42, %v1349_v43  ;;  %v1484_v26 = vmul.f32 0.5, %v1472_v48  ;;  %vm1480_vm13 = vcmp.ge.f32.partialorder %v1472_v48, 0.0 }
 0x2b9   :  { %v1482_v0 = vmul.f32 0.5, %v1464_v14  ;;  %v1467_v13 = vadd.f32 %v1466_v49, %v1339_v27  ;;  %vm1478_vm11 = vcmp.ge.f32.partialorder %v1464_v14, 0.0  ;;  %v1570_v27 = vpop.permute.xlu0 %1569  ;;  %v1581_v49 = vld [vmem:[%s2768_s9] sm:$0x1] }
 0x2ba   :  { %v1485_v25 = vmul.f32 0.5, %v1475_v19  ;;  %vm1481_vm14 = vcmp.ge.f32.partialorder %v1475_v19, 0.0  ;;  %v1488_v60 = vsel %vm1480_vm13, %v1472_v48, %v1484_v26 }
 0x2bb   :  { %vm1479_vm12 = vcmp.ge.f32.partialorder %v1467_v13, 0.0  ;;  %v1483_v35 = vmul.f32 0.5, %v1467_v13  ;;  %v1486_v7 = vsel %vm1478_vm11, %v1464_v14, %v1482_v0  ;;  %v1585_v0 = vstv %s2769_s10 }
 0x2bc   :  { %v1489_v4 = vsel %vm1481_vm14, %v1475_v19, %v1485_v25 }
 0x2bd   :  { %v1487_v31 = vsel %vm1479_vm12, %v1467_v13, %v1483_v35 }
 0x2be   :  { %v1490_v57 = vadd.f32 %v1487_v31, %v1486_v7 }
 0x2c0   :  { %v1491_v44 = vadd.f32 %v1490_v57, %v1488_v60 }
 0x2c2   :  { %v1492_v15 = vadd.f32 %v1491_v44, %v1489_v4 }
 0x2c4   :  { %v1493_v22 = vrot.slane %v1492_v15, 4 }
 0x2c6   :  { %v1494_v61 = vadd.f32 %v1493_v22, %v1492_v15 }
 0x2c8   :  { %v1495_v41 = vrot.slane %v1494_v61, 2 }
 0x2ca   :  { %v1496_v10 = vadd.f32 %v1495_v41, %v1494_v61 }
 0x2cc   :  { %v1497_v46 = vrot.slane %v1496_v10, 1 }
 0x2ce   :  { %v1498_v51 = vadd.f32 %v1497_v46, %v1496_v10 }
 0x2d0   :  { %v1500_v40 = vmul.f32 0.03125, %v1498_v51 }
 0x2d2   :  { %v1501_v11 = vsub.f32 %v1486_v7, %v1500_v40  ;;  %v1502_v50 = vsub.f32 %v1487_v31, %v1500_v40  ;;  %v1503_v34 = vsub.f32 %v1488_v60, %v1500_v40  ;;  %v1504_v54 = vsub.f32 %v1489_v4, %v1500_v40 }
 0x2d4   :  { %v1505_v28 = vmul.f32 %v1501_v11, %v1501_v11  ;;  %v1506_v63 = vmul.f32 %v1502_v50, %v1502_v50  ;;  %v1507_v59 = vmul.f32 %v1503_v34, %v1503_v34  ;;  %v1508_v2 = vmul.f32 %v1504_v54, %v1504_v54 }
 0x2d6   :  { %v1509_v1 = vadd.f32 %v1506_v63, %v1505_v28 }
 0x2d8   :  { %v1510_v36 = vadd.f32 %v1509_v1, %v1507_v59 }
 0x2da   :  { %v1511_v3 = vadd.f32 %v1510_v36, %v1508_v2 }
 0x2dc   :  { %v1512_v5 = vrot.slane %v1511_v3, 4 }
 0x2de   :  { %v1513_v56 = vadd.f32 %v1512_v5, %v1511_v3 }
 0x2e0   :  { %v1514_v21 = vrot.slane %v1513_v56, 2 }
 0x2e2   :  { %v1515_v18 = vadd.f32 %v1514_v21, %v1513_v56 }
 0x2e4   :  { %v1516_v30 = vrot.slane %v1515_v18, 1 }
 0x2e6   :  { %v1517_v33 = vadd.f32 %v1516_v30, %v1515_v18 }
 0x2e8   :  { %v1518_v37 = vmul.f32 0.03125, %v1517_v33 }
 0x2ea   :  { %v1519_v45 = vadd.f32 1e-05, %v1518_v37 }
 0x2ec   :  { %1807 = vrsqrt.f32 %v1519_v45 }
 0x2f6   :  { %v1808_v29 = vpop.eup %1807 }
 0x2f7   :  { %v1522_v58 = vmul.f32 %v1808_v29, %v1502_v50  ;;  %v1521_v23 = vmul.f32 %v1808_v29, %v1501_v11  ;;  %v1523_v16 = vmul.f32 %v1808_v29, %v1503_v34  ;;  %v1524_v24 = vmul.f32 %v1808_v29, %v1504_v54 }
 0x2f9   :  { %v1550_v52 = vmul.f32 %v1537_v9, %v1522_v58  ;;  %v1549_v39 = vmul.f32 %v1532_v32, %v1521_v23  ;;  %v1551_v53 = vmul.f32 %v1542_v38, %v1523_v16  ;;  %v1552_v47 = vmul.f32 %v1547_v55, %v1524_v24 }
 0x2fb   :  { %v1577_v20 = vadd.f32 %v1560_v12, %v1549_v39  ;;  %v1578_v6 = vadd.f32 %v1565_v62, %v1550_v52  ;;  %v1579_v48 = vadd.f32 %v1570_v27, %v1551_v53  ;;  %v1580_v14 = vadd.f32 %v1575_v17, %v1552_v47 }
 0x2fd   :  { %v1582_v42 = vpack.c.bf16 %v1578_v6, %v1577_v20  ;;  %v1583_v43 = vpack.c.bf16 %v1580_v14, %v1579_v48 }
 0x2ff   :  { %1688 = vmatpush3.bf16.msra.mxu1 %v1582_v42 }
 0x300   :  { %1689 = vmatprep.subr.bf16.mxu1 %v2852_v8 }
 0x303   :  { %1690 = vmatpush3.bf16.msra.mxu1 %v1583_v43 }
 0x306   :  { %1692 = vmatmul.mubr.msk.bf16.vlgmr.msra.gmra.mrb[4].mxu1 %vm1586_vm15, %v1581_v49 }
 0x3d9   :  { %v1624_v19 = vpop.f32.mrb[4].mxu1 }
 0x3da   :  { %v1625_v13 = vadd.f32 %v1624_v19, %v1585_v0  ;;  %v1693_v26 = vpop.f32.mrb[5].mxu1 }
 0x3db   :  { %v1627_v35 = vpop.f32.mrb[6].mxu1 }
 0x3dc   :  { %1630 = vst [vmem:[#allocation3] sm:$0x1] %v1625_v13  ;;  %v1694_v8 = vpop.f32.mrb[7].mxu1 }
 0x3dd   :  { %1820 = shalt.err (!%p1817_p4)
}
 0x3de   :  { %s1821_s10 = scalar_lea.hbm %s2770_s11, 16 }
 0x3df   :  { %p1822_p5 = scmp.ne.s32.totalorder %s2770_s11, %s1821_s10  ;;  %p1825_p6 = scmp.lt.u32.totalorder %s1821_s10, %s2770_s11 }
 0x3e1   :  { %p1827_p7 = pnand %p1825_p6, %p1822_p5 }
 0x3e3   :  { %1830 = shalt.err (!%p1827_p7)
}
 0x3e4   :  { %1640 = dma.vmem_to_hbm [thread:$0]  %s1638_s26, 16, %s2770_s11, [#allocation4]  }
 0x3e5   :  { %1831 = dma.done.wait [#allocation4], 16  }
 0x3e6   :  { %1832 = vsyncadd [#allocation4], 4294967280 }
 0x3e7   :  { %1644 = vsyncpa [#allocation4], 1 }

// kernel: tpu_custom_call.1
= control target key start
LH: loop header
LB: loop body
LE: loop exit
PB: predicated region body
PF: predicated region fallthrough
CT: control target
= control target key end

     0   :  { %v2771_v1 = vmov 0.0   ;;  %vm1834_vm0 = vmmov 0   ;;  %vm108_vm1 = vcmask 130048   ;;  %v1835_v4 = vmov 0   ;;  %s2759_s0 = inlined_call_operand.vmem [shape: bf16[16,128], index: 0, kind: input, shape index: {}]   ;;  %s2760_s1 = inlined_call_operand.vmem [shape: bf16[48,16], index: 1, kind: input, shape index: {}]   ;;  %s2761_s2 = inlined_call_operand.vmem [shape: f32[48,1], index: 2, kind: input, shape index: {}]   ;;  %s2762_s3 = inlined_call_operand.vmem [shape: f32[16,1], index: 3, kind: input, shape index: {}]   ;;  %s2763_s4 = inlined_call_operand.vmem [shape: f32[16,1], index: 4, kind: input, shape index: {}]   ;;  %s2764_s5 = inlined_call_operand.vmem [shape: bf16[32,16], index: 5, kind: input, shape index: {}]   ;;  %s2765_s6 = inlined_call_operand.vmem [shape: f32[32,1], index: 6, kind: input, shape index: {}]   ;;  %s2766_s7 = inlined_call_operand.vmem [shape: f32[32,1], index: 7, kind: input, shape index: {}]   ;;  %s2767_s8 = inlined_call_operand.vmem [shape: f32[32,1], index: 8, kind: input, shape index: {}]   ;;  %s2768_s9 = inlined_call_operand.vmem [shape: bf16[1,32], index: 9, kind: input, shape index: {}]   ;;  %s2769_s10 = inlined_call_operand.<no memory space> [shape: f32[1], index: 10, kind: input, shape index: {}]   ;;  %s2770_s11 = inlined_call_operand.hbm [shape: f32[1,128], index: 11, kind: output, shape index: {}]  }
   0x1   :  { %v1901_v0 = vld [vmem:[%s2759_s0] sm:$0xff]   ;;  %1667 = vmatprep.subr.bf16.mxu0 %v2771_v1  ;;  %1669 = vmatprep.mubr.msk.bf16.mxu0 %vm1834_vm0, %v2771_v1  ;;  %v53_v3 = vld [vmem:[%s2761_s2 + $0x10] sm:$0xff]  ;;  %v54_v6 = vld [vmem:[%s2761_s2 + $0x18] sm:$0xff] }
   0x2   :  { %v1703_v2 = vld [vmem:[%s2760_s1] sm:$0xff]   ;;  %1668 = vmatpush3.bf16.msra.mxu0 %v1901_v0  ;;  %1700 = vset.pattern.permute.xlu0 %v1835_v4  ;;  %v52_v7 = vld [vmem:[%s2761_s2 + $0x8] sm:$0xff] }
   0x3   :  { %1701 = vset.pattern.permute.xlu1 %v1835_v4  ;;  %v51_v5 = vld [vmem:[%s2761_s2] sm:$0xff]  ;;  %69 = vperm.xlu0 %1700, %v53_v3   ;;  %v1704_v8 = vld [vmem:[%s2760_s1 + $0x8] sm:$0xff]  }
   0x4   :  { %59 = vperm.xlu1 %1701, %v51_v5   ;;  %v55_v9 = vld [vmem:[%s2761_s2 + $0x20] sm:$0xff]  ;;  %v56_v10 = vld [vmem:[%s2761_s2 + $0x28] sm:$0xff] }
   0x5   :  { %1670 = vmatmul.mubr.msk.bf16.vlgmr.msra.gmra.mrb[0].mxu0 %vm108_vm1, %v1703_v2 }
   0x6   :  { %1673 = vmatprep.mubr.msk.bf16.mxu0 %vm1834_vm0, %v2771_v1 }
   0x7   :  { %74 = vperm.xlu0 %1700, %v54_v6  }
   0x8   :  { %64 = vperm.xlu1 %1701, %v52_v7  }
   0x9   :  { %17 = vsyncpa [#allocation4], 0  ;;  %v1195_v11 = vld [vmem:[%s2762_s3] sm:$0xff]  ;;  %v1196_v12 = vld [vmem:[%s2762_s3 + $0x8] sm:$0xff]  ;;  %v1836_v28 = vmov 1966171168   ;;  %v203_v30 = vlaneseq }
   0xa   :  { %v1705_v13 = vld [vmem:[%s2760_s1 + $0x10] sm:$0xff]   ;;  %v1251_v14 = vld [vmem:[%s2763_s4] sm:$0xff]  ;;  %v1252_v15 = vld [vmem:[%s2763_s4 + $0x8] sm:$0xff]  ;;  %v201_v29 = vunpack.c.l.s4 %v1836_v28  ;;  %vm1038_vm4 = vcmask 1041409   ;;  %vm1041_vm5 = vcmask 1042434   ;;  %vm1044_vm6 = vcmask 1043459  }
   0xb   :  { %79 = vperm.xlu0 %1700, %v55_v9   ;;  %v1327_v16 = vld [vmem:[%s2765_s6] sm:$0xff]  ;;  %v1328_v17 = vld [vmem:[%s2765_s6 + $0x8] sm:$0xff]  ;;  %v1329_v18 = vld [vmem:[%s2765_s6 + $0x10] sm:$0xff]  ;;  %v204_v32 = vshrl.u32 %v203_v30, 7  ;;  %vm1047_vm7 = vcmask 1044484   ;;  %vm1050_vm8 = vcmask 1045509  }
   0xc   :  { %84 = vperm.xlu1 %1701, %v56_v10   ;;  %v1330_v19 = vld [vmem:[%s2765_s6 + $0x18] sm:$0xff]  ;;  %v1525_v20 = vld [vmem:[%s2766_s7] sm:$0xff]  ;;  %v1526_v21 = vld [vmem:[%s2766_s7 + $0x8] sm:$0xff]  ;;  %v202_v31 = vunpack.c.0.s8 %v201_v29  ;;  %vm1053_vm9 = vcmask 1046534   ;;  %vm1056_vm10 = vcmask 1047559   ;;  %vm1586_vm15 = vcmask 261120  }
   0xd   :  { %1674 = vmatmul.mubr.msk.bf16.gmra.mrb[4].mxu0 %vm108_vm1, %v1704_v8  ;;  %v1553_v22 = vld [vmem:[%s2767_s8] sm:$0xff]  ;;  %v1554_v23 = vld [vmem:[%s2767_s8 + $0x8] sm:$0xff]  ;;  %v1527_v24 = vld [vmem:[%s2766_s7 + $0x10] sm:$0xff]  ;;  %v2001_v47 = vsub.s32 0, %v204_v32  ;;  %s1837_s1 = smov [#allocation3]  }
   0xe   :  { %1677 = vmatprep.mubr.msk.bf16.mxu0 %vm1834_vm0, %v2771_v1  ;;  %v1528_v25 = vld [vmem:[%s2766_s7 + $0x18] sm:$0xff]  ;;  %v1555_v26 = vld [vmem:[%s2767_s8 + $0x10] sm:$0xff]  ;;  %v1989_v34 = vsub.s32 %v202_v31, %v204_v32  ;;  %s1637_s26 = sshll.u32 %s1837_s1, 4  ;;  %s1638_s26 = int_to_ptr.vmem [resolvable:$true] %s1637_s26 }
   0xf   :  { %1199 = vperm.xlu0 %1700, %v1195_v11   ;;  %v1556_v27 = vld [vmem:[%s2767_s8 + $0x18] sm:$0xff]  ;;  %2792 = vst [vmem:[#allocation6_spill] sm:$0xff] %v2001_v47  ;;  %s1809_s27 = scalar_lea.vmem %s1638_s26, 16  ;;  %s1813_s4 = scalar_lea.vmem %s1638_s26, 32 }
  0x10   :  { %1203 = vperm.xlu1 %1701, %v1196_v12   ;;  %p1810_p0 = scmp.ne.s32.totalorder %s1638_s26, %s1809_s27  ;;  %p1814_p1 = scmp.lt.s32.totalorder %s1638_s26, %s1638_s26 }
  0x11   :  { %p1815_p2 = scmp.lt.s32.totalorder %s1813_s4, %s1809_s27 }
  0x13   :  { %1255 = vperm.xlu0 %1700, %v1251_v14   ;;  %p1816_p3 = por %p1815_p2, %p1814_p1 }
  0x14   :  { %1259 = vperm.xlu1 %1701, %v1252_v15  }
  0x15   :  { %1678 = vmatmul.mubr.msk.bf16.gmra.mrb[8].mxu0 %vm108_vm1, %v1705_v13  ;;  %p1817_p4 = pnand %p1816_p3, %p1810_p0 }
  0x17   :  { %1333 = vperm.xlu0 %1700, %v1327_v16  }
  0x18   :  { %1338 = vperm.xlu1 %1701, %v1328_v17  }
  0x1b   :  { %1343 = vperm.xlu0 %1700, %v1329_v18  }
  0x1c   :  { %1348 = vperm.xlu1 %1701, %v1330_v19  }
  0x1f   :  { %1531 = vperm.xlu0 %1700, %v1525_v20  }
  0x20   :  { %1536 = vperm.xlu1 %1701, %v1526_v21  }
  0x23   :  { %1559 = vperm.xlu0 %1700, %v1553_v22  }
  0x24   :  { %1564 = vperm.xlu1 %1701, %v1554_v23  }
  0x27   :  { %1541 = vperm.xlu0 %1700, %v1527_v24  }
  0x28   :  { %1546 = vperm.xlu1 %1701, %v1528_v25  }
  0x2b   :  { %1569 = vperm.xlu0 %1700, %v1555_v26  }
  0x2c   :  { %1574 = vperm.xlu1 %1701, %v1556_v27  }
  0x82   :  { %v70_v54 = vpop.permute.xlu0 %69 }
  0x83   :  { %v60_v33 = vpop.permute.xlu1 %59 }
  0x86   :  { %v75_v19 = vpop.permute.xlu0 %74 }
  0x87   :  { %v65_v38 = vpop.permute.xlu1 %64 }
  0xd8   :  { %v152_v35 = vpop.f32.mrb[0].mxu0 }
  0xd9   :  { %v1991_v36 = vadd.f32 %v152_v35, %v60_v33  ;;  %v1671_v37 = vpop.f32.mrb[1].mxu0 }
  0xda   :  { %v155_v39 = vpop.f32.mrb[2].mxu0 }
  0xdb   :  { %v199_v40 = vcombine.high %v1991_v36, %v1991_v36  ;;  %v206_v41 = vrot.slane %v1991_v36, %v1989_v34  ;;  %v1997_v42 = vadd.f32 %v155_v39, %v65_v38  ;;  %v1672_v43 = vpop.f32.mrb[3].mxu0  ;;  %vm189_vm2 = vcmp.ge.f32.partialorder %v1991_v36, 0.0 }
  0xdd   :  { %v213_v44 = vrot.slane %v199_v40, %v1989_v34  ;;  %v214_v45 = vcombine.high %v206_v41, %v206_v41  ;;  %v222_v46 = vrot.slane %v206_v41, %v1989_v34  ;;  %v248_v48 = vcombine.high %v1997_v42, %v1997_v42 }
  0xde   :  { %v255_v49 = vrot.slane %v1997_v42, %v1989_v34  ;;  %vm190_vm3 = vcmp.ge.f32.partialorder %v1997_v42, 0.0 }
  0xdf   :  { %v215_v50 = vcombine.high %v213_v44, %v213_v44  ;;  %v229_v51 = vrot.slane %v213_v44, %v1989_v34  ;;  %v236_v52 = vrot.slane %v214_v45, %v1989_v34  ;;  %v244_v53 = vcombine.high %v222_v46, %v222_v46 }
  0xe0   :  { %v262_v55 = vrot.slane %v248_v48, %v1989_v34  ;;  %v263_v56 = vcombine.high %v255_v49, %v255_v49  ;;  %v271_v57 = vrot.slane %v255_v49, %v1989_v34  ;;  %v160_v58 = vpop.f32.mrb[4].mxu0  ;;  %v300_v63 = vrot.slane %v222_v46, %v2001_v47 }
  0xe1   :  { %v243_v59 = vrot.slane %v215_v50, %v1989_v34  ;;  %v245_v60 = vcombine.high %v229_v51, %v229_v51  ;;  %v246_v61 = vcombine.high %v236_v52, %v236_v52  ;;  %v1675_v62 = vpop.f32.mrb[5].mxu0  ;;  %v304_v2 = vrot.slane %v236_v52, %v2001_v47 }
  0xe2   :  { %v264_v3 = vcombine.high %v262_v55, %v262_v55  ;;  %v278_v4 = vrot.slane %v262_v55, %v1989_v34  ;;  %v163_v5 = vpop.f32.mrb[6].mxu0  ;;  %v308_v7 = vrot.slane %v244_v53, %v2001_v47  ;;  %v316_v9 = vrot.slane %v229_v51, %v2001_v47 }
  0xe3   :  { %v247_v6 = vcombine.high %v243_v59, %v243_v59  ;;  %v312_v8 = vrot.slane %v246_v61, %v2001_v47  ;;  %v1676_v10 = vpop.f32.mrb[7].mxu0  ;;  %v285_v11 = vrot.slane %v263_v56, %v1989_v34  ;;  %v293_v13 = vcombine.high %v271_v57, %v271_v57 }
  0xe4   :  { %v292_v12 = vrot.slane %v264_v3, %v1989_v34  ;;  %v294_v14 = vcombine.high %v278_v4, %v278_v4  ;;  %v320_v15 = vrot.slane %v243_v59, %v2001_v47  ;;  %v324_v16 = vrot.slane %v245_v60, %v2001_v47 }
  0xe5   :  { %v328_v17 = vrot.slane %v247_v6, %v2001_v47  ;;  %v161_v18 = vadd.f32 %v160_v58, %v70_v54  ;;  %v295_v20 = vcombine.high %v285_v11, %v285_v11  ;;  %v332_v22 = vrot.slane %v271_v57, %v2001_v47 }
  0xe6   :  { %v296_v21 = vcombine.high %v292_v12, %v292_v12  ;;  %v348_v23 = vrot.slane %v278_v4, %v2001_v47  ;;  %v336_v24 = vrot.slane %v285_v11, %v2001_v47  ;;  %v340_v25 = vrot.slane %v293_v13, %v2001_v47 }
  0xe7   :  { %v164_v26 = vadd.f32 %v163_v5, %v75_v19  ;;  %v2027_v27 = vmul.f32 %v300_v63, %v161_v18  ;;  %v352_v28 = vrot.slane %v292_v12, %v2001_v47  ;;  %v356_v29 = vrot.slane %v294_v14, %v2001_v47 }
  0xe8   :  { %v2031_v30 = vpop.f32.mrb[8].mxu0  ;;  %v2033_v31 = vmul.f32 %v304_v2, %v161_v18  ;;  %v2035_v32 = vmul.f32 %v308_v7, %v161_v18  ;;  %v344_v33 = vrot.slane %v295_v20, %v2001_v47  ;;  %v2046_v44 = vmul.f32 %v312_v8, %v161_v18 }
  0xe9   :  { %v1679_v35 = vpop.f32.mrb[9].mxu0  ;;  %v175_v37 = vmax.f32 %v161_v18, %v164_v26  ;;  %v182_v38 = vmin.f32 %v161_v18, %v164_v26  ;;  %v2038_v39 = vmul.f32 %v300_v63, %v164_v26  ;;  %v2042_v41 = vmul.f32 %v304_v2, %v164_v26 }
  0xea   :  { %v2040_v40 = vpop.f32.mrb[10].mxu0  ;;  %v2044_v43 = vmul.f32 %v308_v7, %v164_v26  ;;  %v2048_v45 = vmul.f32 %v312_v8, %v164_v26  ;;  %v360_v46 = vrot.slane %v296_v21, %v2001_v47  ;;  %v2051_v51 = vmul.f32 %v316_v9, %v161_v18 }
  0xeb   :  { %v1680_v48 = vpop.f32.mrb[11].mxu0  ;;  %v176_v49 = vrot.slane %v175_v37, 4  ;;  %v183_v50 = vrot.slane %v182_v38, 4  ;;  %v2053_v52 = vmul.f32 %v316_v9, %v164_v26  ;;  %v2055_v53 = vmul.f32 %v320_v15, %v161_v18 }
  0xec   :  { %v2057_v54 = vmul.f32 %v320_v15, %v164_v26  ;;  %v2059_v55 = vmul.f32 %v324_v16, %v161_v18  ;;  %v2061_v58 = vmul.f32 %v324_v16, %v164_v26  ;;  %v2063_v59 = vmul.f32 %v328_v17, %v161_v18 }
  0xed   :  { %v177_v56 = vmax.f32 %v175_v37, %v176_v49  ;;  %v184_v57 = vmin.f32 %v182_v38, %v183_v50  ;;  %v2065_v60 = vmul.f32 %v328_v17, %v164_v26  ;;  %v2067_v61 = vmul.f32 %v332_v22, %v161_v18 }
  0xee   :  { %v2069_v62 = vmul.f32 %v332_v22, %v164_v26  ;;  %v2071_v63 = vmul.f32 %v336_v24, %v161_v18  ;;  %v2073_v4 = vmul.f32 %v336_v24, %v164_v26  ;;  %v2075_v5 = vmul.f32 %v340_v25, %v161_v18 }
  0xef   :  { %v178_v2 = vrot.slane %v177_v56, 2  ;;  %v185_v3 = vrot.slane %v184_v57, 2  ;;  %v2077_v6 = vmul.f32 %v340_v25, %v164_v26  ;;  %v2079_v7 = vmul.f32 %v344_v33, %v161_v18 }
  0xf0   :  { %v2081_v8 = vmul.f32 %v344_v33, %v164_v26  ;;  %v2083_v9 = vmul.f32 %v348_v23, %v161_v18  ;;  %v2085_v12 = vmul.f32 %v348_v23, %v164_v26  ;;  %v2087_v13 = vmul.f32 %v352_v28, %v161_v18 }
  0xf1   :  { %v179_v10 = vmax.f32 %v177_v56, %v178_v2  ;;  %v186_v11 = vmin.f32 %v184_v57, %v185_v3  ;;  %v2089_v14 = vmul.f32 %v352_v28, %v164_v26  ;;  %v2091_v15 = vmul.f32 %v356_v29, %v161_v18 }
  0xf2   :  { %v2093_v16 = vmul.f32 %v356_v29, %v164_v26  ;;  %v2095_v17 = vmul.f32 %v360_v46, %v161_v18  ;;  %v2097_v21 = vmul.f32 %v360_v46, %v164_v26 }
  0xf3   :  { %v180_v19 = vrot.slane %v179_v10, 1  ;;  %v187_v20 = vrot.slane %v186_v11, 1 }
  0xf5   :  { %v181_v22 = vmax.f32 %v179_v10, %v180_v19  ;;  %v188_v24 = vmin.f32 %v186_v11, %v187_v20 }
  0xf7   :  { %v191_v25 = vmul.f32 %v181_v22, %v1991_v36  ;;  %v192_v23 = vmul.f32 %v181_v22, %v1997_v42  ;;  %v193_v33 = vmul.f32 %v188_v24, %v1991_v36  ;;  %v194_v28 = vmul.f32 %v188_v24, %v1997_v42 }
  0xf9   :  { %v195_v18 = vsel %vm189_vm2, %v191_v25, %v193_v33  ;;  %v196_v29 = vsel %vm190_vm3, %v192_v23, %v194_v28 }
  0xfa   :  { %v411_v35 = vcombine.high %v195_v18, %v195_v18  ;;  %v418_v26 = vrot.slane %v195_v18, %v1989_v34  ;;  %v460_v37 = vcombine.high %v196_v29, %v196_v29  ;;  %v467_v38 = vrot.slane %v196_v29, %v1989_v34 }
  0xfc   :  { %v425_v46 = vrot.slane %v411_v35, %v1989_v34  ;;  %v426_v48 = vcombine.high %v418_v26, %v418_v26  ;;  %v434_v49 = vrot.slane %v418_v26, %v1989_v34  ;;  %v474_v50 = vrot.slane %v460_v37, %v1989_v34 }
  0xfd   :  { %v475_v56 = vcombine.high %v467_v38, %v467_v38  ;;  %v483_v36 = vrot.slane %v467_v38, %v1989_v34 }
  0xfe   :  { %v427_v57 = vcombine.high %v425_v46, %v425_v46  ;;  %v441_v42 = vrot.slane %v425_v46, %v1989_v34  ;;  %v448_v2 = vrot.slane %v426_v48, %v1989_v34  ;;  %v456_v3 = vcombine.high %v434_v49, %v434_v49 }
  0xff   :  { %v476_v10 = vcombine.high %v474_v50, %v474_v50  ;;  %v490_v11 = vrot.slane %v474_v50, %v1989_v34  ;;  %v497_v19 = vrot.slane %v475_v56, %v1989_v34  ;;  %v505_v20 = vcombine.high %v483_v36, %v483_v36 }
 0x100   :  { %v455_v22 = vrot.slane %v427_v57, %v1989_v34  ;;  %v457_v24 = vcombine.high %v441_v42, %v441_v42  ;;  %v458_v25 = vcombine.high %v448_v2, %v448_v2  ;;  %v512_v23 = vrot.slane %v434_v49, %v2001_v47 }
 0x101   :  { %v504_v33 = vrot.slane %v476_v10, %v1989_v34  ;;  %v506_v28 = vcombine.high %v490_v11, %v490_v11  ;;  %v507_v18 = vcombine.high %v497_v19, %v497_v19  ;;  %v516_v29 = vrot.slane %v448_v2, %v2001_v47 }
 0x102   :  { %v459_v35 = vcombine.high %v455_v22, %v455_v22  ;;  %v520_v26 = vrot.slane %v456_v3, %v2001_v47  ;;  %v524_v37 = vrot.slane %v458_v25, %v2001_v47  ;;  %v2122_v38 = vrot.slane %v441_v42, %v2001_v47 }
 0x103   :  { %v508_v46 = vcombine.high %v504_v33, %v504_v33  ;;  %v2125_v48 = vrot.slane %v455_v22, %v2001_v47  ;;  %v2128_v49 = vrot.slane %v457_v24, %v2001_v47  ;;  %v2131_v34 = vrot.slane %v483_v36, %v2001_v47 }
 0x104   :  { %v2134_v50 = vrot.slane %v459_v35, %v2001_v47  ;;  %v2137_v56 = vrot.slane %v497_v19, %v2001_v47  ;;  %v2140_v57 = vrot.slane %v505_v20, %v2001_v47  ;;  %v2143_v42 = vrot.slane %v507_v18, %v2001_v47 }
 0x105   :  { %v2146_v2 = vrot.slane %v490_v11, %v2001_v47  ;;  %v2149_v3 = vrot.slane %v504_v33, %v2001_v47  ;;  %v2152_v36 = vrot.slane %v506_v28, %v2001_v47  ;;  %v2155_v10 = vrot.slane %v508_v46, %v2001_v47  ;;  %v85_v46 = vpop.permute.xlu1 %84 }
 0x106   :  { %v589_v19 = vsub.f32 %v2027_v27, %v512_v23  ;;  %v590_v20 = vsub.f32 %v2038_v39, %v512_v23  ;;  %v591_v22 = vsub.f32 %v2033_v31, %v516_v29  ;;  %v592_v24 = vsub.f32 %v2042_v41, %v516_v29 }
 0x107   :  { %v593_v11 = vsub.f32 %v2035_v32, %v520_v26  ;;  %v594_v25 = vsub.f32 %v2044_v43, %v520_v26  ;;  %v595_v33 = vsub.f32 %v2046_v44, %v524_v37  ;;  %v596_v28 = vsub.f32 %v2048_v45, %v524_v37 }
 0x108   :  { %v597_v18 = vsub.f32 %v2051_v51, %v2122_v38  ;;  %v598_v27 = vsub.f32 %v2053_v52, %v2122_v38  ;;  %v599_v39 = vsub.f32 %v2055_v53, %v2125_v48  ;;  %v600_v31 = vsub.f32 %v2057_v54, %v2125_v48 }
 0x109   :  { %v601_v32 = vsub.f32 %v2059_v55, %v2128_v49  ;;  %v602_v41 = vsub.f32 %v2061_v58, %v2128_v49  ;;  %v603_v43 = vsub.f32 %v2063_v59, %v2134_v50  ;;  %v604_v44 = vsub.f32 %v2065_v60, %v2134_v50  ;;  %v80_v59 = vpop.permute.xlu0 %79 }
 0x10a   :  { %v605_v45 = vsub.f32 %v2067_v61, %v2131_v34  ;;  %v606_v51 = vsub.f32 %v2069_v62, %v2131_v34  ;;  %v607_v52 = vsub.f32 %v2071_v63, %v2137_v56  ;;  %v608_v53 = vsub.f32 %v2073_v4, %v2137_v56 }
 0x10b   :  { %v609_v54 = vsub.f32 %v2075_v5, %v2140_v57  ;;  %v610_v55 = vsub.f32 %v2077_v6, %v2140_v57  ;;  %v621_v49 = vmul.f32 1.442695, %v589_v19  ;;  %v623_v1 = vmul.f32 1.442695, %v590_v20 }
 0x10c   :  { %v625_v29 = vmul.f32 1.442695, %v591_v22  ;;  %v627_v23 = vmul.f32 1.442695, %v592_v24  ;;  %v2214_v35 = vunpack.c.l.bf16 %v1901_v0  ;;  %v629_v26 = vmul.f32 1.442695, %v593_v11 }
 0x10d   :  { %1709 = vpow2.f32 %v621_v49  ;;  %v631_v37 = vmul.f32 1.442695, %v594_v25  ;;  %v633_v38 = vmul.f32 1.442695, %v595_v33  ;;  %v2217_v58 = vunpack.c.h.bf16 %v1901_v0 }
 0x10e   :  { %2793 = vst [vmem:[#allocation7_spill] sm:$0xff] %v2214_v35  ;;  %1711 = vpow2.f32 %v623_v1  ;;  %v2220_v48 = vadd.f32 %v2031_v30, %v80_v59  ;;  %v635_v19 = vmul.f32 1.442695, %v596_v28  ;;  %v2223_v20 = vadd.f32 %v2040_v40, %v85_v46 }
 0x10f   :  { %1713 = vpow2.f32 %v625_v29  ;;  %2794 = vst [vmem:[#allocation8_spill] sm:$0xff] %v2217_v58  ;;  %v637_v22 = vmul.f32 1.442695, %v597_v18  ;;  %v639_v24 = vmul.f32 1.442695, %v598_v27  ;;  %v2795_v5 = vsub.f32 %v2079_v7, %v2143_v42 }
 0x110   :  { %1715 = vpow2.f32 %v627_v23  ;;  %v641_v25 = vmul.f32 1.442695, %v599_v39  ;;  %v643_v28 = vmul.f32 1.442695, %v600_v31  ;;  %v645_v59 = vmul.f32 1.442695, %v601_v32 }
 0x111   :  { %1717 = vpow2.f32 %v629_v26  ;;  %v647_v29 = vmul.f32 1.442695, %v602_v41  ;;  %v651_v32 = vmul.f32 1.442695, %v604_v44  ;;  %v655_v60 = vmul.f32 1.442695, %v606_v51 }
 0x112   :  { %1719 = vpow2.f32 %v631_v37  ;;  %v657_v50 = vmul.f32 1.442695, %v607_v52  ;;  %v659_v61 = vmul.f32 1.442695, %v608_v53  ;;  %v661_v62 = vmul.f32 1.442695, %v609_v54 }
 0x113   :  { %1721 = vpow2.f32 %v633_v38  ;;  %v649_v38 = vmul.f32 1.442695, %v603_v43  ;;  %v653_v43 = vmul.f32 1.442695, %v605_v45  ;;  %v663_v4 = vmul.f32 1.442695, %v610_v55 }
 0x114   :  { %1723 = vpow2.f32 %v635_v19  ;;  %v665_v54 = vmul.f32 1.442695, %v2795_v5  ;;  %v2797_v57 = vsub.f32 %v2083_v9, %v2146_v2 }
 0x115   :  { %1725 = vpow2.f32 %v637_v22 }
 0x116   :  { %1727 = vpow2.f32 %v639_v24  ;;  %v669_v55 = vmul.f32 1.442695, %v2797_v57 }
 0x117   :  { %v1710_v37 = vpop.eup %1709  ;;  %1729 = vpow2.f32 %v641_v25 }
 0x118   :  { %v1712_v49 = vpop.eup %1711  ;;  %1731 = vpow2.f32 %v643_v28  ;;  %v685_v19 = vmul.f32 %v1710_v37, %v2220_v48 }
 0x119   :  { %v1714_v22 = vpop.eup %1713  ;;  %1733 = vpow2.f32 %v645_v59  ;;  %v686_v24 = vmul.f32 %v1712_v49, %v2223_v20  ;;  %v2247_v25 = vadd.f32 %v1712_v49, %v1710_v37  ;;  %v2796_v37 = vsub.f32 %v2081_v8, %v2143_v42 }
 0x11a   :  { %v1716_v46 = vpop.eup %1715  ;;  %1735 = vpow2.f32 %v647_v29  ;;  %v687_v44 = vmul.f32 %v1714_v22, %v2220_v48 }
 0x11b   :  { %v2256_v28 = vpop.eup %1717  ;;  %1737 = vpow2.f32 %v649_v38  ;;  %v688_v45 = vmul.f32 %v1716_v46, %v2223_v20  ;;  %v717_v59 = vadd.f32 %v686_v24, %v685_v19  ;;  %v2269_v34 = vadd.f32 %v1716_v46, %v1714_v22 }
 0x11c   :  { %v2262_v29 = vpop.eup %1719  ;;  %1739 = vpow2.f32 %v651_v32  ;;  %v689_v63 = vmul.f32 %v2256_v28, %v2220_v48  ;;  %v667_v38 = vmul.f32 1.442695, %v2796_v37  ;;  %v2799_v24 = vsub.f32 %v2087_v13, %v2149_v3 }
 0x11d   :  { %v2271_v51 = vpop.eup %1721  ;;  %1741 = vpow2.f32 %v653_v43  ;;  %v690_v56 = vmul.f32 %v2262_v29, %v2223_v20  ;;  %v724_v52 = vadd.f32 %v688_v45, %v687_v44  ;;  %v718_v32 = vrot.slane %v717_v59, 4 }
 0x11e   :  { %v2278_v53 = vpop.eup %1723  ;;  %1743 = vpow2.f32 %v655_v60  ;;  %v691_v46 = vmul.f32 %v2271_v51, %v2220_v48  ;;  %v2798_v43 = vsub.f32 %v2085_v12, %v2146_v2  ;;  %v673_v60 = vmul.f32 1.442695, %v2799_v24 }
 0x11f   :  { %v2288_v6 = vpop.eup %1725  ;;  %1745 = vpow2.f32 %v657_v50  ;;  %v692_v49 = vmul.f32 %v2278_v53, %v2223_v20  ;;  %v725_v42 = vrot.slane %v724_v52, 4  ;;  %v731_v19 = vadd.f32 %v690_v56, %v689_v63 }
 0x120   :  { %v2295_v7 = vpop.eup %1727  ;;  %1747 = vpow2.f32 %v659_v61  ;;  %v693_v8 = vmul.f32 %v2288_v6, %v2220_v48  ;;  %v671_v9 = vmul.f32 1.442695, %v2798_v43  ;;  %v2800_v12 = vsub.f32 %v2089_v14, %v2149_v3 }
 0x121   :  { %v2299_v22 = vpop.eup %1729  ;;  %1749 = vpow2.f32 %v661_v62  ;;  %v694_v50 = vmul.f32 %v2295_v7, %v2223_v20  ;;  %v732_v45 = vrot.slane %v731_v19, 4  ;;  %v738_v63 = vadd.f32 %v692_v49, %v691_v46 }
 0x122   :  { %v2309_v44 = vpop.eup %1731  ;;  %1751 = vpow2.f32 %v663_v4  ;;  %v695_v61 = vmul.f32 %v2299_v22, %v2220_v48  ;;  %v675_v2 = vmul.f32 1.442695, %v2800_v12  ;;  %v2801_v13 = vsub.f32 %v2091_v15, %v2152_v36 }
 0x123   :  { %v2313_v62 = vpop.eup %1733  ;;  %1753 = vpow2.f32 %v665_v54  ;;  %v696_v5 = vmul.f32 %v2309_v44, %v2223_v20  ;;  %v719_v46 = vadd.f32 %v718_v32, %v717_v59  ;;  %v726_v57 = vadd.f32 %v725_v42, %v724_v52 }
 0x124   :  { %v677_v56 = vmul.f32 1.442695, %v2801_v13  ;;  %v2323_v4 = vpop.eup %1735  ;;  %1755 = vpow2.f32 %v667_v38  ;;  %v697_v37 = vmul.f32 %v2313_v62, %v2220_v48  ;;  %v2802_v14 = vsub.f32 %v2093_v16, %v2152_v36 }
 0x125   :  { %v2327_v54 = vpop.eup %1737  ;;  %1757 = vpow2.f32 %v669_v55  ;;  %v698_v15 = vmul.f32 %v2323_v4, %v2223_v20  ;;  %v830_v49 = vrot.slane %v2247_v25, 4  ;;  %v733_v59 = vadd.f32 %v732_v45, %v731_v19 }
 0x126   :  { %v679_v3 = vmul.f32 1.442695, %v2802_v14  ;;  %v2335_v43 = vpop.eup %1739  ;;  %1759 = vpow2.f32 %v671_v9  ;;  %v699_v38 = vmul.f32 %v2327_v54, %v2220_v48  ;;  %v739_v52 = vrot.slane %v738_v63, 4 }
 0x127   :  { %v2339_v32 = vpop.eup %1741  ;;  %1761 = vpow2.f32 %v673_v60  ;;  %v2803_v16 = vsub.f32 %v2095_v17, %v2155_v10  ;;  %v2804_v55 = vsub.f32 %v2097_v21, %v2155_v10  ;;  %v700_v24 = vmul.f32 %v2335_v43, %v2223_v20 }
 0x128   :  { %v2349_v9 = vpop.eup %1743  ;;  %1763 = vpow2.f32 %v675_v2  ;;  %v701_v19 = vmul.f32 %v2339_v32, %v2220_v48  ;;  %v720_v45 = vrot.slane %v719_v46, 2  ;;  %v727_v12 = vrot.slane %v726_v57, 2 }
 0x129   :  { %v681_v36 = vmul.f32 1.442695, %v2803_v16  ;;  %v683_v42 = vmul.f32 1.442695, %v2804_v55  ;;  %v2353_v60 = vpop.eup %1745  ;;  %1765 = vpow2.f32 %v677_v56  ;;  %v702_v17 = vmul.f32 %v2349_v9, %v2223_v20 }
 0x12a   :  { %2805 = vst [vmem:[#allocation9_spill] sm:$0xff] %v2353_v60  ;;  %v745_v13 = vadd.f32 %v694_v50, %v693_v8  ;;  %v2358_v21 = vadd.f32 %v830_v49, %v2247_v25  ;;  %v2360_v10 = vpop.eup %1747  ;;  %1767 = vpow2.f32 %v679_v3  ;;  %v703_v2 = vmul.f32 %v2353_v60, %v2220_v48 }
 0x12b   :  { %2806 = vst [vmem:[#allocation10_spill] sm:$0xff] %v2360_v10  ;;  %v734_v14 = vrot.slane %v733_v59, 2  ;;  %v740_v16 = vadd.f32 %v739_v52, %v738_v63  ;;  %v2364_v55 = vpop.eup %1749  ;;  %1769 = vpow2.f32 %v681_v36  ;;  %v704_v56 = vmul.f32 %v2360_v10, %v2223_v20 }
 0x12c   :  { %2807 = vst [vmem:[#allocation11_spill] sm:$0xff] %v2364_v55  ;;  %v746_v41 = vrot.slane %v745_v13, 4  ;;  %v752_v31 = vadd.f32 %v696_v5, %v695_v61  ;;  %v2368_v8 = vpop.eup %1751  ;;  %1771 = vpow2.f32 %v683_v42  ;;  %v705_v25 = vmul.f32 %v2364_v55, %v2220_v48 }
 0x12d   :  { %2808 = vst [vmem:[#allocation12_spill] sm:$0xff] %v2368_v8  ;;  %v721_v50 = vadd.f32 %v720_v45, %v719_v46  ;;  %v728_v3 = vadd.f32 %v727_v12, %v726_v57  ;;  %v2372_v49 = vpop.eup %1753  ;;  %v706_v63 = vmul.f32 %v2368_v8, %v2223_v20  ;;  %v759_v26 = vadd.f32 %v698_v15, %v697_v37 }
 0x12e   :  { %2809 = vst [vmem:[#allocation13_spill] sm:$0xff] %v2372_v49  ;;  %v747_v52 = vadd.f32 %v746_v41, %v745_v13  ;;  %v753_v36 = vrot.slane %v752_v31, 4  ;;  %v2376_v39 = vpop.eup %1755  ;;  %v707_v61 = vmul.f32 %v2372_v49, %v2220_v48  ;;  %v735_v5 = vadd.f32 %v734_v14, %v733_v59 }
 0x12f   :  { %2810 = vst [vmem:[#allocation14_spill] sm:$0xff] %v2376_v39  ;;  %v766_v42 = vadd.f32 %v700_v24, %v699_v38  ;;  %v773_v23 = vadd.f32 %v702_v17, %v701_v19  ;;  %v2380_v27 = vpop.eup %1757  ;;  %v708_v46 = vmul.f32 %v2376_v39, %v2223_v20  ;;  %v741_v57 = vrot.slane %v740_v16, 2 }
 0x130   :  { %2811 = vst [vmem:[#allocation15_spill] sm:$0xff] %v2380_v27  ;;  %v748_v45 = vrot.slane %v747_v52, 2  ;;  %v760_v12 = vrot.slane %v759_v26, 4  ;;  %v2384_v18 = vpop.eup %1759  ;;  %v709_v41 = vmul.f32 %v2380_v27, %v2220_v48  ;;  %v780_v13 = vadd.f32 %v704_v56, %v703_v2 }
 0x131   :  { %2812 = vst [vmem:[#allocation16_spill] sm:$0xff] %v2384_v18  ;;  %v767_v37 = vrot.slane %v766_v42, 4  ;;  %v774_v15 = vrot.slane %v773_v23, 4  ;;  %v2388_v40 = vpop.eup %1761  ;;  %v710_v38 = vmul.f32 %v2384_v18, %v2223_v20  ;;  %v722_v59 = vrot.slane %v721_v50, 1 }
 0x132   :  { %2813 = vst [vmem:[#allocation17_spill] sm:$0xff] %v2388_v40  ;;  %v754_v24 = vadd.f32 %v753_v36, %v752_v31  ;;  %v761_v19 = vadd.f32 %v760_v12, %v759_v26  ;;  %v2392_v17 = vpop.eup %1763  ;;  %v711_v14 = vmul.f32 %v2388_v40, %v2220_v48  ;;  %v781_v0 = vrot.slane %v780_v13, 4 }
 0x133   :  { %2814 = vst [vmem:[#allocation18_spill] sm:$0xff] %v2392_v17  ;;  %v768_v33 = vadd.f32 %v767_v37, %v766_v42  ;;  %v775_v30 = vadd.f32 %v774_v15, %v773_v23  ;;  %v2396_v11 = vpop.eup %1765  ;;  %v712_v2 = vmul.f32 %v2392_v17, %v2223_v20  ;;  %v729_v56 = vrot.slane %v728_v3, 1 }
 0x134   :  { %2815 = vst [vmem:[#allocation19_spill] sm:$0xff] %v2396_v11  ;;  %v736_v1 = vrot.slane %v735_v5, 1  ;;  %v837_v47 = vrot.slane %v2269_v34, 4  ;;  %v2401_v58 = vpop.eup %1767  ;;  %v713_v26 = vmul.f32 %v2396_v11, %v2220_v48  ;;  %v742_v31 = vadd.f32 %v741_v57, %v740_v16 }
 0x135   :  { %2816 = vst [vmem:[#allocation20_spill] sm:$0xff] %v2401_v58  ;;  %v749_v36 = vadd.f32 %v748_v45, %v747_v52  ;;  %v782_v12 = vadd.f32 %v781_v0, %v780_v13  ;;  %v2405_v42 = vpop.eup %1769  ;;  %v714_v23 = vmul.f32 %v2401_v58, %v2223_v20  ;;  %v2409_v37 = vadd.f32 %v722_v59, %v721_v50 }
 0x136   :  { %2817 = vst [vmem:[#allocation21_spill] sm:$0xff] %v2405_v42  ;;  %v755_v15 = vrot.slane %v754_v24, 2  ;;  %v832_v35 = vrot.slane %v2358_v21, 2  ;;  %v2412_v17 = vpop.eup %1771  ;;  %v715_v40 = vmul.f32 %v2405_v42, %v2220_v48  ;;  %v762_v18 = vrot.slane %v761_v19, 2 }
 0x137   :  { %2818 = vst [vmem:[#allocation22_spill] sm:$0xff] %v2409_v37  ;;  %v769_v11 = vrot.slane %v768_v33, 2  ;;  %v776_v16 = vrot.slane %v775_v30, 2  ;;  %v716_v0 = vmul.f32 %v2412_v17, %v2223_v20  ;;  %v2418_v52 = vadd.f32 %v729_v56, %v728_v3 }
 0x138   :  { %v2420_v57 = vadd.f32 %v736_v1, %v735_v5  ;;  %v787_v50 = vadd.f32 %v706_v63, %v705_v25  ;;  %v743_v45 = vrot.slane %v742_v31, 1  ;;  %v750_v13 = vrot.slane %v749_v36, 1 }
 0x139   :  { %v783_v59 = vrot.slane %v782_v12, 2  ;;  %v794_v37 = vadd.f32 %v708_v46, %v707_v61  ;;  %v756_v58 = vadd.f32 %v755_v15, %v754_v24  ;;  %v801_v39 = vadd.f32 %v710_v38, %v709_v41 }
 0x13a   :  { %2819 = vst [vmem:[#allocation23_spill] sm:$0xff] %v2420_v57  ;;  %v788_v27 = vrot.slane %v787_v50, 4  ;;  %v808_v49 = vadd.f32 %v712_v2, %v711_v14  ;;  %v763_v48 = vadd.f32 %v762_v18, %v761_v19  ;;  %v770_v42 = vadd.f32 %v769_v11, %v768_v33 }
 0x13b   :  { %v777_v8 = vadd.f32 %v776_v16, %v775_v30  ;;  %v795_v55 = vrot.slane %v794_v37, 4  ;;  %v802_v60 = vrot.slane %v801_v39, 4  ;;  %v815_v3 = vadd.f32 %v714_v23, %v713_v26 }
 0x13c   :  { %v789_v10 = vadd.f32 %v788_v27, %v787_v50  ;;  %v809_v20 = vrot.slane %v808_v49, 4  ;;  %v784_v56 = vadd.f32 %v783_v59, %v782_v12  ;;  %v822_v5 = vadd.f32 %v716_v0, %v715_v40 }
 0x13d   :  { %v796_v1 = vadd.f32 %v795_v55, %v794_v37  ;;  %v833_v25 = vadd.f32 %v832_v35, %v2358_v21  ;;  %v757_v63 = vrot.slane %v756_v58, 1  ;;  %v803_v61 = vadd.f32 %v802_v60, %v801_v39 }
 0x13e   :  { %v790_v57 = vrot.slane %v789_v10, 2  ;;  %v810_v46 = vadd.f32 %v809_v20, %v808_v49  ;;  %v2423_v24 = vadd.f32 %v743_v45, %v742_v31  ;;  %v816_v18 = vrot.slane %v815_v3, 4 }
 0x13f   :  { %v797_v41 = vrot.slane %v796_v1, 2  ;;  %v838_v11 = vadd.f32 %v837_v47, %v2269_v34  ;;  %v764_v30 = vrot.slane %v763_v48, 1  ;;  %v771_v33 = vrot.slane %v770_v42, 1 }
 0x140   :  { %v778_v27 = vrot.slane %v777_v8, 1  ;;  %v823_v38 = vrot.slane %v822_v5, 4  ;;  %v2426_v19 = vadd.f32 %v750_v13, %v749_v36  ;;  %v785_v55 = vrot.slane %v784_v56, 1 }
 0x141   :  { %v834_v40 = vrot.slane %v833_v25, 1  ;;  %v839_v14 = vrot.slane %v838_v11, 2  ;;  %v2428_v35 = vadd.f32 %v757_v63, %v756_v58  ;;  %v2430_v21 = vadd.f32 %v790_v57, %v789_v10 }
 0x142   :  { %v804_v39 = vrot.slane %v803_v61, 2  ;;  %v811_v60 = vrot.slane %v810_v46, 2  ;;  %v2432_v49 = vadd.f32 %v797_v41, %v796_v1  ;;  %v2434_v2 = vadd.f32 %v816_v18, %v815_v3 }
 0x143   :  { %v840_v47 = vadd.f32 %v839_v14, %v838_v11  ;;  %v843_v34 = vadd.f32 %v2262_v29, %v2256_v28  ;;  %v2438_v26 = vadd.f32 %v764_v30, %v763_v48  ;;  %v2440_v31 = vadd.f32 %v771_v33, %v770_v42 }
 0x144   :  { %v2442_v36 = vadd.f32 %v778_v27, %v777_v8  ;;  %v2444_v58 = vadd.f32 %v823_v38, %v822_v5  ;;  %v2446_v10 = vadd.f32 %v785_v55, %v784_v56  ;;  %v2448_v12 = vadd.f32 %v834_v40, %v833_v25 }
 0x145   :  { %v841_v23 = vrot.slane %v840_v47, 1  ;;  %v844_v37 = vrot.slane %v843_v34, 4  ;;  %v792_v15 = vrot.slane %v2430_v21, 1  ;;  %v2451_v16 = vadd.f32 %v804_v39, %v803_v61 }
 0x146   :  { %v2453_v0 = vadd.f32 %v811_v60, %v810_v46  ;;  %v850_v28 = vadd.f32 %v2278_v53, %v2271_v51  ;;  %v799_v29 = vrot.slane %v2432_v49, 1  ;;  %v818_v8 = vrot.slane %v2434_v2, 2 }
 0x147   :  { %v845_v42 = vadd.f32 %v844_v37, %v843_v34  ;;  %v857_v57 = vadd.f32 %v2295_v7, %v2288_v6  ;;  %v825_v50 = vrot.slane %v2444_v58, 2  ;;  %v864_v13 = vadd.f32 %v2309_v44, %v2299_v22  ;;  %v2820_v22 = vld [vmem:[#allocation9_spill] sm:$0xff]  ;;  %v2821_v44 = vld [vmem:[#allocation10_spill] sm:$0xff]  ;;  %v2822_v37 = vld [vmem:[#allocation11_spill] sm:$0xff] }
 0x148   :  { %v851_v45 = vrot.slane %v850_v28, 4  ;;  %v871_v59 = vadd.f32 %v2323_v4, %v2313_v62  ;;  %v2466_v48 = vadd.f32 %v841_v23, %v840_v47  ;;  %v878_v20 = vadd.f32 %v2335_v43, %v2327_v54 }
 0x149   :  { %v846_v51 = vrot.slane %v845_v42, 2  ;;  %v858_v53 = vrot.slane %v857_v57, 4  ;;  %v865_v56 = vrot.slane %v864_v13, 4  ;;  %v885_v6 = vadd.f32 %v2349_v9, %v2339_v32 }
 0x14a   :  { %v852_v3 = vadd.f32 %v851_v45, %v850_v28  ;;  %v872_v1 = vrot.slane %v871_v59, 4  ;;  %v879_v25 = vrot.slane %v878_v20, 4  ;;  %v892_v63 = vadd.f32 %v2821_v44, %v2820_v22  ;;  %v2823_v28 = vld [vmem:[#allocation12_spill] sm:$0xff] }
 0x14b   :  { %v847_v7 = vadd.f32 %v846_v51, %v845_v42  ;;  %v859_v5 = vadd.f32 %v858_v53, %v857_v57  ;;  %v866_v4 = vadd.f32 %v865_v56, %v864_v13  ;;  %v886_v46 = vrot.slane %v885_v6, 4 }
 0x14c   :  { %v853_v62 = vrot.slane %v852_v3, 2  ;;  %v873_v61 = vadd.f32 %v872_v1, %v871_v59  ;;  %v880_v11 = vadd.f32 %v879_v25, %v878_v20  ;;  %v893_v54 = vrot.slane %v892_v63, 4 }
 0x14d   :  { %v848_v41 = vrot.slane %v847_v7, 1  ;;  %v860_v18 = vrot.slane %v859_v5, 2  ;;  %v867_v30 = vrot.slane %v866_v4, 2  ;;  %v887_v27 = vadd.f32 %v886_v46, %v885_v6 }
 0x14e   :  { %v854_v43 = vadd.f32 %v853_v62, %v852_v3  ;;  %v874_v33 = vrot.slane %v873_v61, 2  ;;  %v881_v9 = vrot.slane %v880_v11, 2  ;;  %v894_v55 = vadd.f32 %v893_v54, %v892_v63  ;;  %v2826_v62 = vld [vmem:[#allocation15_spill] sm:$0xff] }
 0x14f   :  { %v849_v38 = vadd.f32 %v848_v41, %v847_v7  ;;  %v861_v32 = vadd.f32 %v860_v18, %v859_v5  ;;  %v868_v14 = vadd.f32 %v867_v30, %v866_v4  ;;  %v888_v60 = vrot.slane %v887_v27, 2  ;;  %v2824_v7 = vld [vmem:[#allocation13_spill] sm:$0xff]  ;;  %v2825_v5 = vld [vmem:[#allocation14_spill] sm:$0xff]  ;;  %v2827_v4 = vld [vmem:[#allocation16_spill] sm:$0xff] }
 0x150   :  { %v855_v40 = vrot.slane %v854_v43, 1  ;;  %v875_v39 = vadd.f32 %v874_v33, %v873_v61  ;;  %v882_v34 = vadd.f32 %v881_v9, %v880_v11  ;;  %v895_v23 = vrot.slane %v894_v55, 2  ;;  %v2828_v18 = vld [vmem:[#allocation17_spill] sm:$0xff]  ;;  %v2829_v11 = vld [vmem:[#allocation18_spill] sm:$0xff]  ;;  %v2831_v30 = vld [vmem:[#allocation20_spill] sm:$0xff] }
 0x151   :  { %v862_v47 = vrot.slane %v861_v32, 1  ;;  %v899_v42 = vadd.f32 %v2823_v28, %v2822_v37  ;;  %v869_v45 = vrot.slane %v868_v14, 1  ;;  %v889_v59 = vadd.f32 %v888_v60, %v887_v27 }
 0x152   :  { %v856_v57 = vadd.f32 %v855_v40, %v854_v43  ;;  %v876_v13 = vrot.slane %v875_v39, 1  ;;  %v883_v53 = vrot.slane %v882_v34, 1  ;;  %v896_v20 = vadd.f32 %v895_v23, %v894_v55  ;;  %v2830_v43 = vld [vmem:[#allocation19_spill] sm:$0xff]  ;;  %v2832_v55 = vld [vmem:[#allocation21_spill] sm:$0xff] }
 0x153   :  { %v863_v51 = vadd.f32 %v862_v47, %v861_v32  ;;  %v900_v3 = vrot.slane %v899_v42, 4  ;;  %v870_v56 = vadd.f32 %v869_v45, %v868_v14  ;;  %v890_v6 = vrot.slane %v889_v59, 1 }
 0x154   :  { %v877_v1 = vadd.f32 %v876_v13, %v875_v39  ;;  %v906_v25 = vadd.f32 %v2825_v5, %v2824_v7  ;;  %v884_v22 = vadd.f32 %v883_v53, %v882_v34  ;;  %v897_v44 = vrot.slane %v896_v20, 1 }
 0x155   :  { %v901_v63 = vadd.f32 %v900_v3, %v899_v42  ;;  %v913_v61 = vadd.f32 %v2827_v4, %v2826_v62  ;;  %v891_v46 = vadd.f32 %v890_v6, %v889_v59  ;;  %v920_v54 = vadd.f32 %v2829_v11, %v2828_v18  ;;  %v2833_v11 = vld [vmem:[#allocation22_spill] sm:$0xff] }
 0x156   :  { %v907_v41 = vrot.slane %v906_v25, 4  ;;  %v927_v33 = vadd.f32 %v2831_v30, %v2830_v43  ;;  %v898_v27 = vadd.f32 %v897_v44, %v896_v20  ;;  %v934_v40 = vadd.f32 %v2412_v17, %v2832_v55  ;;  %v2835_v55 = vld [vmem:[#allocation7_spill] sm:$0xff] }
 0x157   :  { %v902_v32 = vrot.slane %v901_v63, 2  ;;  %v914_v9 = vrot.slane %v913_v61, 4  ;;  %v921_v39 = vrot.slane %v920_v54, 4  ;;  %1773 = vrcp.f32 %v2448_v12 }
 0x158   :  { %v908_v14 = vadd.f32 %v907_v41, %v906_v25  ;;  %v928_v60 = vrot.slane %v927_v33, 4  ;;  %v935_v23 = vrot.slane %v934_v40, 4  ;;  %1775 = vrcp.f32 %v2466_v48  ;;  %v1706_v48 = vld [vmem:[%s2764_s5] sm:$0xff]  }
 0x159   :  { %v903_v47 = vadd.f32 %v902_v32, %v901_v63  ;;  %v915_v34 = vadd.f32 %v914_v9, %v913_v61  ;;  %v922_v28 = vadd.f32 %v921_v39, %v920_v54  ;;  %1777 = vrcp.f32 %v849_v38  ;;  %1683 = vmatprep.mubr.msk.bf16.mxu1 %vm108_vm1, %v1706_v48  ;;  %v2834_v32 = vld [vmem:[#allocation23_spill] sm:$0xff] }
 0x15a   :  { %v909_v37 = vrot.slane %v908_v14, 2  ;;  %v929_v42 = vadd.f32 %v928_v60, %v927_v33  ;;  %v936_v59 = vadd.f32 %v935_v23, %v934_v40  ;;  %1779 = vrcp.f32 %v856_v57 }
 0x15b   :  { %v904_v45 = vrot.slane %v903_v47, 1  ;;  %v916_v13 = vrot.slane %v915_v34, 2  ;;  %v923_v17 = vrot.slane %v922_v28, 2  ;;  %1781 = vrcp.f32 %v863_v51 }
 0x15c   :  { %v910_v53 = vadd.f32 %v909_v37, %v908_v14  ;;  %v930_v20 = vrot.slane %v929_v42, 2  ;;  %v937_v12 = vrot.slane %v936_v59, 2  ;;  %1783 = vrcp.f32 %v870_v56 }
 0x15d   :  { %v905_v3 = vadd.f32 %v904_v45, %v903_v47  ;;  %v917_v6 = vadd.f32 %v916_v13, %v915_v34  ;;  %v924_v5 = vadd.f32 %v923_v17, %v922_v28  ;;  %1785 = vrcp.f32 %v877_v1 }
 0x15e   :  { %v911_v7 = vrot.slane %v910_v53, 1  ;;  %v931_v25 = vadd.f32 %v930_v20, %v929_v42  ;;  %v2494_v38 = vadd.f32 %v792_v15, %v2430_v21  ;;  %v938_v44 = vadd.f32 %v937_v12, %v936_v59 }
 0x15f   :  { %v918_v57 = vrot.slane %v917_v6, 1  ;;  %1787 = vrcp.f32 %v884_v22  ;;  %v925_v56 = vrot.slane %v924_v5, 1  ;;  %v819_v1 = vadd.f32 %v818_v8, %v2434_v2 }
 0x160   :  { %v912_v51 = vadd.f32 %v911_v7, %v910_v53  ;;  %v932_v63 = vrot.slane %v931_v25, 1  ;;  %1789 = vrcp.f32 %v891_v46  ;;  %v939_v4 = vrot.slane %v938_v44, 1 }
 0x161   :  { %v919_v62 = vadd.f32 %v918_v57, %v917_v6  ;;  %1791 = vrcp.f32 %v898_v27  ;;  %v1774_v21 = vpop.eup %1773  ;;  %v806_v15 = vrot.slane %v2451_v16, 1  ;;  %v926_v22 = vadd.f32 %v925_v56, %v924_v5 }
 0x162   :  { %v933_v61 = vadd.f32 %v932_v63, %v931_v25  ;;  %1793 = vrcp.f32 %v905_v3  ;;  %v1776_v41 = vpop.eup %1775  ;;  %v813_v18 = vrot.slane %v2453_v0, 1  ;;  %v940_v46 = vadd.f32 %v939_v4, %v938_v44  ;;  %v2843_v4 = vld [vmem:[#allocation8_spill] sm:$0xff] }
 0x163   :  { %1795 = vrcp.f32 %v912_v51  ;;  %v957_v54 = vmul.f32 %v1774_v21, %v2833_v11  ;;  %v1778_v2 = vpop.eup %1777  ;;  %v800_v8 = vadd.f32 %v799_v29, %v2432_v49  ;;  %v826_v43 = vadd.f32 %v825_v50, %v2444_v58 }
 0x164   :  { %1797 = vrcp.f32 %v919_v62  ;;  %v958_v30 = vmul.f32 %v1776_v41, %v2418_v52  ;;  %v1780_v33 = vpop.eup %1779  ;;  %v820_v27 = vrot.slane %v819_v1, 1  ;;  %v959_v9 = vmul.f32 %v1778_v2, %v2834_v32 }
 0x165   :  { %1799 = vrcp.f32 %v926_v22  ;;  %v2512_v40 = vadd.f32 %v957_v54, %v2835_v55  ;;  %v1782_v14 = vpop.eup %1781  ;;  %v807_v49 = vadd.f32 %v806_v15, %v2451_v16  ;;  %v960_v29 = vmul.f32 %v1780_v33, %v2423_v24 }
 0x166   :  { %1801 = vrcp.f32 %v933_v61  ;;  %v2836_v58 = vrot.slane %v2835_v55, 1  ;;  %v1784_v52 = vpop.eup %1783  ;;  %v814_v39 = vadd.f32 %v813_v18, %v2453_v0  ;;  %v961_v60 = vmul.f32 %v1782_v14, %v2426_v19 }
 0x167   :  { %1803 = vrcp.f32 %v940_v46  ;;  %v2837_v47 = vrot.slane %v2835_v55, 2  ;;  %v1786_v23 = vpop.eup %1785  ;;  %v827_v37 = vrot.slane %v826_v43, 1  ;;  %v962_v16 = vmul.f32 %v1784_v52, %v2428_v35 }
 0x168   :  { %v2518_v50 = vadd.f32 %v2836_v58, %v958_v30  ;;  %v2838_v24 = vrot.slane %v2835_v55, 3  ;;  %v821_v13 = vadd.f32 %v820_v27, %v819_v1  ;;  %v963_v0 = vmul.f32 %v1786_v23, %v2438_v26 }
 0x169   :  { %v2524_v34 = vadd.f32 %v2837_v47, %v959_v9  ;;  %v1788_v45 = vpop.eup %1787  ;;  %v2839_v19 = vrot.slane %v2835_v55, 4  ;;  %v2840_v35 = vrot.slane %v2835_v55, 5  ;;  %v2841_v7 = vrot.slane %v2835_v55, 6 }
 0x16a   :  { %v2529_v28 = vadd.f32 %v2838_v24, %v960_v29  ;;  %v1037_v42 = vrot.slane %v2518_v50, 7  ;;  %v1790_v17 = vpop.eup %1789  ;;  %v964_v20 = vmul.f32 %v1788_v45, %v2440_v31  ;;  %v2842_v51 = vrot.slane %v2835_v55, 7 }
 0x16b   :  { %v2535_v59 = vadd.f32 %v2839_v19, %v961_v60  ;;  %v1040_v53 = vrot.slane %v2524_v34, 6  ;;  %v2541_v3 = vadd.f32 %v2840_v35, %v962_v16  ;;  %v1792_v48 = vpop.eup %1791  ;;  %v965_v26 = vmul.f32 %v1790_v17, %v2442_v36 }
 0x16c   :  { %v1039_v6 = vsel %vm1038_vm4, %v1037_v42, %v2512_v40  ;;  %v1043_v12 = vrot.slane %v2529_v28, 5  ;;  %v2549_v5 = vadd.f32 %v2841_v7, %v963_v0  ;;  %v1794_v57 = vpop.eup %1793  ;;  %v966_v44 = vmul.f32 %v1792_v48, %v2446_v10 }
 0x16d   :  { %v1042_v25 = vsel %vm1041_vm5, %v1040_v53, %v1039_v6  ;;  %v1046_v31 = vrot.slane %v2535_v59, 4  ;;  %v1012_v56 = vadd.f32 %v2842_v51, %v964_v20  ;;  %v1049_v1 = vrot.slane %v2541_v3, 3  ;;  %v1796_v62 = vpop.eup %1795 }
 0x16e   :  { %v1045_v63 = vsel %vm1044_vm6, %v1043_v12, %v1042_v25  ;;  %v967_v36 = vmul.f32 %v1794_v57, %v2494_v38  ;;  %v1013_v21 = vadd.f32 %v965_v26, %v2843_v4  ;;  %v1052_v22 = vrot.slane %v2549_v5, 2  ;;  %v1798_v61 = vpop.eup %1797 }
 0x16f   :  { %v1048_v15 = vsel %vm1047_vm7, %v1046_v31, %v1045_v63  ;;  %v968_v41 = vmul.f32 %v1796_v62, %v800_v8  ;;  %v2844_v10 = vrot.slane %v2843_v4, 1  ;;  %v1055_v11 = vrot.slane %v1012_v56, 1  ;;  %v1800_v54 = vpop.eup %1799  ;;  %v2851_v62 = vld [vmem:[#allocation6_spill] sm:$0xff] }
 0x170   :  { %v1051_v46 = vsel %vm1050_vm8, %v1049_v1, %v1048_v15  ;;  %v828_v2 = vadd.f32 %v827_v37, %v826_v43  ;;  %v969_v30 = vmul.f32 %v1798_v61, %v807_v49  ;;  %v2845_v33 = vrot.slane %v2843_v4, 2  ;;  %v1802_v32 = vpop.eup %1801 }
 0x171   :  { %v1014_v18 = vadd.f32 %v2844_v10, %v966_v44  ;;  %v1054_v27 = vsel %vm1053_vm9, %v1052_v22, %v1051_v46  ;;  %v970_v9 = vmul.f32 %v1800_v54, %v814_v39  ;;  %v2846_v55 = vrot.slane %v2843_v4, 3  ;;  %v1804_v58 = vpop.eup %1803 }
 0x172   :  { %v1015_v38 = vadd.f32 %v2845_v33, %v967_v36  ;;  %v1057_v8 = vsel %vm1056_vm10, %v1055_v11, %v1054_v27  ;;  %v971_v52 = vmul.f32 %v1802_v32, %v821_v13  ;;  %v2847_v60 = vrot.slane %v2843_v4, 4 }
 0x173   :  { %v1016_v14 = vadd.f32 %v2846_v55, %v968_v41  ;;  %v1058_v29 = vrot.slane %v1014_v18, 7  ;;  %v972_v49 = vmul.f32 %v1804_v58, %v828_v2  ;;  %v2848_v23 = vrot.slane %v2843_v4, 5 }
 0x174   :  { %v1017_v47 = vadd.f32 %v2847_v60, %v969_v30  ;;  %v1060_v43 = vrot.slane %v1015_v38, 6  ;;  %v2849_v39 = vrot.slane %v2843_v4, 6  ;;  %v2850_v19 = vrot.slane %v2843_v4, 7 }
 0x175   :  { %v1018_v37 = vadd.f32 %v2848_v23, %v970_v9  ;;  %v1059_v16 = vsel %vm1038_vm4, %v1058_v29, %v1013_v21  ;;  %v1062_v24 = vrot.slane %v1016_v14, 5 }
 0x176   :  { %v1019_v42 = vadd.f32 %v2849_v39, %v971_v52  ;;  %v1061_v45 = vsel %vm1041_vm5, %v1060_v43, %v1059_v16  ;;  %v1064_v0 = vrot.slane %v1017_v47, 4  ;;  %v1020_v13 = vadd.f32 %v2850_v19, %v972_v49 }
 0x177   :  { %v1063_v53 = vsel %vm1044_vm6, %v1062_v24, %v1061_v45  ;;  %v1066_v17 = vrot.slane %v1018_v37, 3 }
 0x178   :  { %v1065_v20 = vsel %vm1047_vm7, %v1064_v0, %v1063_v53  ;;  %v1068_v35 = vrot.slane %v1019_v42, 2  ;;  %v1070_v12 = vrot.slane %v1020_v13, 1 }
 0x179   :  { %v1067_v6 = vsel %vm1050_vm8, %v1066_v17, %v1065_v20 }
 0x17a   :  { %v1069_v48 = vsel %vm1053_vm9, %v1068_v35, %v1067_v6 }
 0x17b   :  { %v1071_v26 = vsel %vm1056_vm10, %v1070_v12, %v1069_v48 }
 0x17c   :  { %v1074_v7 = vadd.f32 %v1071_v26, %v1057_v8 }
 0x17e   :  { %v1075_v25 = vrot.slane %v1074_v7, 4 }
 0x180   :  { %v1076_v31 = vadd.f32 %v1075_v25, %v1074_v7 }
 0x182   :  { %v1077_v57 = vrot.slane %v1076_v31, 2 }
 0x184   :  { %v1078_v44 = vadd.f32 %v1077_v57, %v1076_v31 }
 0x186   :  { %v1079_v51 = vrot.slane %v1078_v44, 1 }
 0x188   :  { %v1080_v63 = vadd.f32 %v1079_v51, %v1078_v44 }
 0x18a   :  { %v1082_v1 = vmul.f32 0.0625, %v1080_v63 }
 0x18c   :  { %v1086_v36 = vrot.slane %v1082_v1, %v2851_v62 }
 0x18e   :  { %v2588_v4 = vsub.f32 %v2512_v40, %v1086_v36  ;;  %v2591_v15 = vsub.f32 %v2518_v50, %v1086_v36  ;;  %v2594_v22 = vsub.f32 %v2524_v34, %v1086_v36  ;;  %v2597_v61 = vsub.f32 %v2529_v28, %v1086_v36 }
 0x18f   :  { %v2600_v41 = vsub.f32 %v2535_v59, %v1086_v36  ;;  %v2603_v10 = vsub.f32 %v2541_v3, %v1086_v36  ;;  %v2606_v46 = vsub.f32 %v2549_v5, %v1086_v36  ;;  %v2608_v40 = vsub.f32 %v1012_v56, %v1086_v36 }
 0x190   :  { %v2610_v11 = vsub.f32 %v1013_v21, %v1086_v36  ;;  %v2612_v50 = vsub.f32 %v1014_v18, %v1086_v36  ;;  %v2614_v34 = vsub.f32 %v1015_v38, %v1086_v36  ;;  %v2616_v54 = vsub.f32 %v1016_v14, %v1086_v36 }
 0x191   :  { %v2618_v28 = vsub.f32 %v1017_v47, %v1086_v36  ;;  %v2620_v59 = vsub.f32 %v1018_v37, %v1086_v36  ;;  %v2622_v2 = vsub.f32 %v1019_v42, %v1086_v36  ;;  %v2624_v3 = vsub.f32 %v1020_v13, %v1086_v36 }
 0x192   :  { %v1104_v5 = vmul.f32 %v2591_v15, %v2591_v15  ;;  %v1105_v56 = vmul.f32 %v2594_v22, %v2594_v22  ;;  %v1103_v21 = vmul.f32 %v2588_v4, %v2588_v4  ;;  %v1106_v18 = vmul.f32 %v2597_v61, %v2597_v61 }
 0x193   :  { %v1112_v30 = vmul.f32 %v2612_v50, %v2612_v50  ;;  %v1113_v33 = vmul.f32 %v2614_v34, %v2614_v34  ;;  %v1107_v38 = vmul.f32 %v2600_v41, %v2600_v41  ;;  %v1108_v27 = vmul.f32 %v2603_v10, %v2603_v10 }
 0x194   :  { %v1109_v32 = vmul.f32 %v2606_v46, %v2606_v46  ;;  %v1114_v9 = vmul.f32 %v2616_v54, %v2616_v54  ;;  %v1110_v55 = vmul.f32 %v2608_v40, %v2608_v40  ;;  %v1115_v14 = vmul.f32 %v2618_v28, %v2618_v28 }
 0x195   :  { %v1135_v8 = vrot.slane %v1104_v5, 7  ;;  %v1137_v29 = vrot.slane %v1105_v56, 6  ;;  %v1111_v58 = vmul.f32 %v2610_v11, %v2610_v11  ;;  %v1116_v52 = vmul.f32 %v2620_v59, %v2620_v59 }
 0x196   :  { %v1117_v60 = vmul.f32 %v2622_v2, %v2622_v2  ;;  %v1149_v47 = vrot.slane %v1112_v30, 7  ;;  %v1118_v43 = vmul.f32 %v2624_v3, %v2624_v3  ;;  %v1139_v23 = vrot.slane %v1106_v18, 5 }
 0x197   :  { %v1136_v49 = vsel %vm1038_vm4, %v1135_v8, %v1103_v21  ;;  %v1151_v37 = vrot.slane %v1113_v33, 6  ;;  %v1141_v24 = vrot.slane %v1107_v38, 4  ;;  %v1153_v42 = vrot.slane %v1114_v9, 5  ;;  %v1200_v38 = vpop.permute.xlu0 %1199 }
 0x198   :  { %v1138_v16 = vsel %vm1041_vm5, %v1137_v29, %v1136_v49  ;;  %v1150_v39 = vsel %vm1038_vm4, %v1149_v47, %v1111_v58  ;;  %v1143_v0 = vrot.slane %v1108_v27, 3  ;;  %v1155_v13 = vrot.slane %v1115_v14, 4  ;;  %v2672_v27 = vpop.permute.xlu1 %1203 }
 0x199   :  { %v1140_v45 = vsel %vm1044_vm6, %v1139_v23, %v1138_v16  ;;  %v1152_v19 = vsel %vm1041_vm5, %v1151_v37, %v1150_v39  ;;  %v1145_v17 = vrot.slane %v1109_v32, 2  ;;  %v1157_v35 = vrot.slane %v1116_v52, 3 }
 0x19a   :  { %v1142_v53 = vsel %vm1047_vm7, %v1141_v24, %v1140_v45  ;;  %v1154_v20 = vsel %vm1044_vm6, %v1153_v42, %v1152_v19  ;;  %v1147_v12 = vrot.slane %v1110_v55, 1  ;;  %v1159_v26 = vrot.slane %v1117_v60, 2 }
 0x19b   :  { %v1144_v6 = vsel %vm1050_vm8, %v1143_v0, %v1142_v53  ;;  %v1156_v48 = vsel %vm1047_vm7, %v1155_v13, %v1154_v20  ;;  %v1161_v31 = vrot.slane %v1118_v43, 1  ;;  %v1205_v32 = vrot.slane %v1200_v38, 1  ;;  %v2674_v14 = vpop.permute.xlu0 %1255 }
 0x19c   :  { %v1146_v7 = vsel %vm1053_vm9, %v1145_v17, %v1144_v6  ;;  %v1158_v25 = vsel %vm1050_vm8, %v1157_v35, %v1156_v48  ;;  %v1206_v9 = vrot.slane %v1200_v38, 2  ;;  %v1207_v55 = vrot.slane %v1200_v38, 3  ;;  %v2680_v60 = vpop.permute.xlu1 %1259 }
 0x19d   :  { %v1148_v57 = vsel %vm1056_vm10, %v1147_v12, %v1146_v7  ;;  %v1160_v44 = vsel %vm1053_vm9, %v1159_v26, %v1158_v25  ;;  %v1261_v8 = vrot.slane %v2674_v14, 1  ;;  %v1212_v29 = vrot.slane %v2672_v27, 1 }
 0x19e   :  { %v1162_v51 = vsel %vm1056_vm10, %v1161_v31, %v1160_v44  ;;  %v1213_v58 = vrot.slane %v2672_v27, 2  ;;  %v1214_v52 = vrot.slane %v2672_v27, 3  ;;  %v1262_v47 = vrot.slane %v2674_v14, 2 }
 0x19f   :  { %v1165_v63 = vadd.f32 %v1162_v51, %v1148_v57  ;;  %v1268_v43 = vrot.slane %v2680_v60, 1  ;;  %v1269_v49 = vrot.slane %v2680_v60, 2  ;;  %v1208_v23 = vrot.slane %v1200_v38, 4 }
 0x1a0   :  { %v1209_v16 = vrot.slane %v1200_v38, 5  ;;  %v1210_v24 = vrot.slane %v1200_v38, 6  ;;  %v1211_v39 = vrot.slane %v1200_v38, 7  ;;  %v1263_v42 = vrot.slane %v2674_v14, 3 }
 0x1a1   :  { %v1166_v1 = vrot.slane %v1165_v63, 4  ;;  %v1264_v0 = vrot.slane %v2674_v14, 4  ;;  %v1265_v19 = vrot.slane %v2674_v14, 5  ;;  %v1266_v13 = vrot.slane %v2674_v14, 6 }
 0x1a2   :  { %v1215_v53 = vrot.slane %v2672_v27, 4  ;;  %v1216_v17 = vrot.slane %v2672_v27, 5  ;;  %v1217_v20 = vrot.slane %v2672_v27, 6  ;;  %v1267_v35 = vrot.slane %v2674_v14, 7 }
 0x1a3   :  { %v1167_v36 = vadd.f32 %v1166_v1, %v1165_v63 }
 0x1a5   :  { %v1168_v5 = vrot.slane %v1167_v36, 2 }
 0x1a7   :  { %v1169_v56 = vadd.f32 %v1168_v5, %v1167_v36 }
 0x1a9   :  { %v1170_v21 = vrot.slane %v1169_v56, 1 }
 0x1ab   :  { %v1171_v18 = vadd.f32 %v1170_v21, %v1169_v56 }
 0x1ad   :  { %v1172_v30 = vmul.f32 0.0625, %v1171_v18 }
 0x1af   :  { %v1173_v33 = vadd.f32 1e-05, %v1172_v30 }
 0x1b1   :  { %1805 = vrsqrt.f32 %v1173_v33 }
 0x1bb   :  { %v1806_v37 = vpop.eup %1805 }
 0x1bc   :  { %v1178_v45 = vrot.slane %v1806_v37, %v2851_v62 }
 0x1be   :  { %v1179_v6 = vmul.f32 %v1178_v45, %v2588_v4  ;;  %v1180_v12 = vmul.f32 %v1178_v45, %v2591_v15  ;;  %v1181_v62 = vmul.f32 %v1178_v45, %v2594_v22  ;;  %v1182_v48 = vmul.f32 %v1178_v45, %v2597_v61 }
 0x1bf   :  { %v1183_v26 = vmul.f32 %v1178_v45, %v2600_v41  ;;  %v1184_v7 = vmul.f32 %v1178_v45, %v2603_v10  ;;  %v1185_v25 = vmul.f32 %v1178_v45, %v2606_v46  ;;  %v1186_v31 = vmul.f32 %v1178_v45, %v2608_v40 }
 0x1c0   :  { %v1187_v57 = vmul.f32 %v1178_v45, %v2610_v11  ;;  %v1188_v44 = vmul.f32 %v1178_v45, %v2612_v50  ;;  %v1189_v4 = vmul.f32 %v1178_v45, %v2614_v34  ;;  %v1190_v15 = vmul.f32 %v1178_v45, %v2616_v54 }
 0x1c1   :  { %v1191_v22 = vmul.f32 %v1178_v45, %v2618_v28  ;;  %v1192_v61 = vmul.f32 %v1178_v45, %v2620_v59  ;;  %v1193_v41 = vmul.f32 %v1178_v45, %v2622_v2  ;;  %v1194_v10 = vmul.f32 %v1178_v45, %v2624_v3 }
 0x1c2   :  { %v1218_v46 = vrot.slane %v2672_v27, 7  ;;  %v1236_v51 = vmul.f32 %v1205_v32, %v1180_v12  ;;  %v1237_v40 = vmul.f32 %v1206_v9, %v1181_v62  ;;  %v1270_v11 = vrot.slane %v2680_v60, 3 }
 0x1c3   :  { %v1271_v50 = vrot.slane %v2680_v60, 4  ;;  %v1272_v34 = vrot.slane %v2680_v60, 5  ;;  %v1273_v54 = vrot.slane %v2680_v60, 6  ;;  %v1274_v28 = vrot.slane %v2680_v60, 7 }
 0x1c4   :  { %v1235_v63 = vmul.f32 %v1200_v38, %v1179_v6  ;;  %v1238_v59 = vmul.f32 %v1207_v55, %v1182_v48  ;;  %v1244_v1 = vmul.f32 %v1212_v29, %v1188_v44  ;;  %v1245_v2 = vmul.f32 %v1213_v58, %v1189_v4 }
 0x1c5   :  { %v1239_v36 = vmul.f32 %v1208_v23, %v1183_v26  ;;  %v1240_v3 = vmul.f32 %v1209_v16, %v1184_v7  ;;  %v1241_v5 = vmul.f32 %v1210_v24, %v1185_v25  ;;  %v1246_v56 = vmul.f32 %v1214_v52, %v1190_v15 }
 0x1c6   :  { %v1242_v21 = vmul.f32 %v1211_v39, %v1186_v31  ;;  %v1247_v18 = vmul.f32 %v1215_v53, %v1191_v22  ;;  %v1292_v30 = vadd.f32 %v1261_v8, %v1236_v51  ;;  %v1293_v33 = vadd.f32 %v1262_v47, %v1237_v40 }
 0x1c7   :  { %v1243_v32 = vmul.f32 %v2672_v27, %v1187_v57  ;;  %v1248_v9 = vmul.f32 %v1216_v17, %v1192_v61  ;;  %v1249_v37 = vmul.f32 %v1217_v20, %v1193_v41  ;;  %v1250_v45 = vmul.f32 %v1218_v46, %v1194_v10 }
 0x1c8   :  { %v1291_v12 = vadd.f32 %v2674_v14, %v1235_v63  ;;  %v1294_v62 = vadd.f32 %v1263_v42, %v1238_v59  ;;  %v1300_v38 = vadd.f32 %v1268_v43, %v1244_v1  ;;  %v1301_v55 = vadd.f32 %v1269_v49, %v1245_v2 }
 0x1c9   :  { %v1295_v29 = vadd.f32 %v1264_v0, %v1239_v36  ;;  %v1296_v58 = vadd.f32 %v1265_v19, %v1240_v3  ;;  %v1297_v23 = vadd.f32 %v1266_v13, %v1241_v5  ;;  %v1302_v16 = vadd.f32 %v1270_v11, %v1246_v56 }
 0x1ca   :  { %v1298_v24 = vadd.f32 %v1267_v35, %v1242_v21  ;;  %v1303_v52 = vadd.f32 %v1271_v50, %v1247_v18  ;;  %v1312_v39 = vpack.c.bf16 %v1292_v30, %v1292_v30  ;;  %v1313_v53 = vpack.c.bf16 %v1293_v33, %v1293_v33 }
 0x1cb   :  { %v1299_v8 = vadd.f32 %v2680_v60, %v1243_v32  ;;  %v1304_v47 = vadd.f32 %v1272_v34, %v1248_v9  ;;  %v1305_v27 = vadd.f32 %v1273_v54, %v1249_v37  ;;  %v1306_v17 = vadd.f32 %v1274_v28, %v1250_v45 }
 0x1cc   :  { %v1311_v20 = vpack.c.bf16 %v1291_v12, %v1291_v12  ;;  %v1314_v6 = vpack.c.bf16 %v1294_v62, %v1294_v62  ;;  %v1320_v48 = vpack.c.bf16 %v1300_v38, %v1300_v38  ;;  %v1321_v14 = vpack.c.bf16 %v1301_v55, %v1301_v55 }
 0x1cd   :  { %v1315_v42 = vpack.c.bf16 %v1295_v29, %v1295_v29  ;;  %v1316_v43 = vpack.c.bf16 %v1296_v58, %v1296_v58  ;;  %v1317_v49 = vpack.c.bf16 %v1297_v23, %v1297_v23  ;;  %v1322_v0 = vpack.c.bf16 %v1302_v16, %v1302_v16 }
 0x1ce   :  { %v1318_v19 = vpack.c.bf16 %v1298_v24, %v1298_v24  ;;  %v1323_v13 = vpack.c.bf16 %v1303_v52, %v1303_v52  ;;  %v1378_v26 = vunpack.c.l.b16 %v1312_v39  ;;  %v1379_v35 = vunpack.c.l.b16 %v1313_v53  ;;  %v1707_v53 = vld [vmem:[%s2764_s5 + $0x8] sm:$0xff]  }
 0x1cf   :  { %v1319_v7 = vpack.c.bf16 %v1299_v8, %v1299_v8  ;;  %v1324_v25 = vpack.c.bf16 %v1304_v47, %v1304_v47  ;;  %v1325_v31 = vpack.c.bf16 %v1305_v27, %v1305_v27  ;;  %v1326_v57 = vpack.c.bf16 %v1306_v17, %v1306_v17  ;;  %v1334_v47 = vpop.permute.xlu0 %1333  ;;  %v1339_v27 = vpop.permute.xlu1 %1338 }
 0x1d0   :  { %v1377_v60 = vunpack.c.l.b16 %v1311_v20  ;;  %v1380_v44 = vunpack.c.l.b16 %v1314_v6  ;;  %v1386_v4 = vunpack.c.l.b16 %v1320_v48  ;;  %v1387_v15 = vunpack.c.l.b16 %v1321_v14 }
 0x1d1   :  { %v1381_v22 = vunpack.c.l.b16 %v1315_v42  ;;  %v1382_v61 = vunpack.c.l.b16 %v1316_v43  ;;  %v1383_v41 = vunpack.c.l.b16 %v1317_v49  ;;  %v1388_v10 = vunpack.c.l.b16 %v1322_v0 }
 0x1d2   :  { %v1384_v46 = vunpack.c.l.b16 %v1318_v19  ;;  %v1389_v51 = vunpack.c.l.b16 %v1323_v13  ;;  %v1393_v40 = vrot.slane %v1378_v26, 7  ;;  %v1395_v11 = vrot.slane %v1379_v35, 6 }
 0x1d3   :  { %v1385_v50 = vunpack.c.l.b16 %v1319_v7  ;;  %v1390_v34 = vunpack.c.l.b16 %v1324_v25  ;;  %v1391_v54 = vunpack.c.l.b16 %v1325_v31  ;;  %v1407_v28 = vrot.slane %v1386_v4, 7  ;;  %v1344_v20 = vpop.permute.xlu0 %1343  ;;  %v1349_v43 = vpop.permute.xlu1 %1348 }
 0x1d4   :  { %v1392_v63 = vunpack.c.l.b16 %v1326_v57  ;;  %v1394_v59 = vsel %vm1038_vm4, %v1393_v40, %v1377_v60  ;;  %v1397_v1 = vrot.slane %v1380_v44, 5  ;;  %v1409_v2 = vrot.slane %v1387_v15, 6 }
 0x1d5   :  { %v1396_v36 = vsel %vm1041_vm5, %v1395_v11, %v1394_v59  ;;  %v1399_v3 = vrot.slane %v1381_v22, 4  ;;  %v1408_v5 = vsel %vm1038_vm4, %v1407_v28, %v1385_v50  ;;  %v1411_v56 = vrot.slane %v1388_v10, 5 }
 0x1d6   :  { %v1398_v21 = vsel %vm1044_vm6, %v1397_v1, %v1396_v36  ;;  %v1401_v18 = vrot.slane %v1382_v61, 3  ;;  %v1410_v30 = vsel %vm1041_vm5, %v1409_v2, %v1408_v5  ;;  %v1413_v33 = vrot.slane %v1389_v51, 4 }
 0x1d7   :  { %v1400_v32 = vsel %vm1047_vm7, %v1399_v3, %v1398_v21  ;;  %v1403_v9 = vrot.slane %v1383_v41, 2  ;;  %v1412_v37 = vsel %vm1044_vm6, %v1411_v56, %v1410_v30  ;;  %v1415_v45 = vrot.slane %v1390_v34, 3 }
 0x1d8   :  { %v1402_v12 = vsel %vm1050_vm8, %v1401_v18, %v1400_v32  ;;  %v1405_v62 = vrot.slane %v1384_v46, 1  ;;  %v1414_v38 = vsel %vm1047_vm7, %v1413_v33, %v1412_v37  ;;  %v1417_v55 = vrot.slane %v1391_v54, 2  ;;  %v1532_v32 = vpop.permute.xlu0 %1531 }
 0x1d9   :  { %v1404_v29 = vsel %vm1053_vm9, %v1403_v9, %v1402_v12  ;;  %v1416_v58 = vsel %vm1050_vm8, %v1415_v45, %v1414_v38  ;;  %v1419_v23 = vrot.slane %v1392_v63, 1  ;;  %v2852_v8 = vmov 0.0   ;;  %v1537_v9 = vpop.permute.xlu1 %1536 }
 0x1da   :  { %v1406_v16 = vsel %vm1056_vm10, %v1405_v62, %v1404_v29  ;;  %v1418_v24 = vsel %vm1053_vm9, %v1417_v55, %v1416_v58 }
 0x1db   :  { %v1420_v52 = vsel %vm1056_vm10, %v1419_v23, %v1418_v24 }
 0x1dc   :  { %v1421_v39 = vpack.c.b16 %v1420_v52, %v1406_v16  ;;  %v1560_v12 = vpop.permute.xlu0 %1559 }
 0x1dd   :  { %v1565_v62 = vpop.permute.xlu1 %1564 }
 0x1de   :  { %1681 = vmatprep.subr.bf16.mxu1 %v1421_v39 }
 0x1df   :  { %1682 = vmatpush3.bf16.msra.mxu1 %v1421_v39 }
 0x1e0   :  { %1687 = vmatprep.subr.bf16.mxu1 %v2852_v8  ;;  %v1542_v38 = vpop.permute.xlu0 %1541 }
 0x1e1   :  { %v1547_v55 = vpop.permute.xlu1 %1546 }
 0x1e2   :  { %1684 = vmatmul.mubr.msk.bf16.vlgmr.msra.gmra.mrb[0].mxu1 %vm108_vm1, %v1707_v53 }
 0x1e3   :  { %1691 = vmatprep.mubr.msk.bf16.mxu1 %vm1834_vm0, %v2852_v8 }
 0x2b5   :  { %v1685_v17 = vpop.f32.mrb[0].mxu1 }
 0x2b6   :  { %v1463_v6 = vpop.f32.mrb[1].mxu1  ;;  %v1472_v48 = vadd.f32 %v1685_v17, %v1344_v20  ;;  %v1575_v17 = vpop.permute.xlu1 %1574 }
 0x2b7   :  { %v1464_v14 = vadd.f32 %v1463_v6, %v1334_v47  ;;  %v1686_v42 = vpop.f32.mrb[2].mxu1 }
 0x2b8   :  { %v1466_v49 = vpop.f32.mrb[3].mxu1  ;;  %v1475_v19 = vadd.f32 %v1686_v42, %v1349_v43  ;;  %v1484_v26 = vmul.f32 0.5, %v1472_v48  ;;  %vm1480_vm13 = vcmp.ge.f32.partialorder %v1472_v48, 0.0 }
 0x2b9   :  { %v1482_v0 = vmul.f32 0.5, %v1464_v14  ;;  %v1467_v13 = vadd.f32 %v1466_v49, %v1339_v27  ;;  %vm1478_vm11 = vcmp.ge.f32.partialorder %v1464_v14, 0.0  ;;  %v1570_v27 = vpop.permute.xlu0 %1569  ;;  %v1581_v49 = vld [vmem:[%s2768_s9] sm:$0x1] }
 0x2ba   :  { %v1485_v25 = vmul.f32 0.5, %v1475_v19  ;;  %vm1481_vm14 = vcmp.ge.f32.partialorder %v1475_v19, 0.0  ;;  %v1488_v60 = vsel %vm1480_vm13, %v1472_v48, %v1484_v26 }
 0x2bb   :  { %vm1479_vm12 = vcmp.ge.f32.partialorder %v1467_v13, 0.0  ;;  %v1483_v35 = vmul.f32 0.5, %v1467_v13  ;;  %v1486_v7 = vsel %vm1478_vm11, %v1464_v14, %v1482_v0  ;;  %v1585_v0 = vstv %s2769_s10 }
 0x2bc   :  { %v1489_v4 = vsel %vm1481_vm14, %v1475_v19, %v1485_v25 }
 0x2bd   :  { %v1487_v31 = vsel %vm1479_vm12, %v1467_v13, %v1483_v35 }
 0x2be   :  { %v1490_v57 = vadd.f32 %v1487_v31, %v1486_v7 }
 0x2c0   :  { %v1491_v44 = vadd.f32 %v1490_v57, %v1488_v60 }
 0x2c2   :  { %v1492_v15 = vadd.f32 %v1491_v44, %v1489_v4 }
 0x2c4   :  { %v1493_v22 = vrot.slane %v1492_v15, 4 }
 0x2c6   :  { %v1494_v61 = vadd.f32 %v1493_v22, %v1492_v15 }
 0x2c8   :  { %v1495_v41 = vrot.slane %v1494_v61, 2 }
 0x2ca   :  { %v1496_v10 = vadd.f32 %v1495_v41, %v1494_v61 }
 0x2cc   :  { %v1497_v46 = vrot.slane %v1496_v10, 1 }
 0x2ce   :  { %v1498_v51 = vadd.f32 %v1497_v46, %v1496_v10 }
 0x2d0   :  { %v1500_v40 = vmul.f32 0.03125, %v1498_v51 }
 0x2d2   :  { %v1501_v11 = vsub.f32 %v1486_v7, %v1500_v40  ;;  %v1502_v50 = vsub.f32 %v1487_v31, %v1500_v40  ;;  %v1503_v34 = vsub.f32 %v1488_v60, %v1500_v40  ;;  %v1504_v54 = vsub.f32 %v1489_v4, %v1500_v40 }
 0x2d4   :  { %v1505_v28 = vmul.f32 %v1501_v11, %v1501_v11  ;;  %v1506_v63 = vmul.f32 %v1502_v50, %v1502_v50  ;;  %v1507_v59 = vmul.f32 %v1503_v34, %v1503_v34  ;;  %v1508_v2 = vmul.f32 %v1504_v54, %v1504_v54 }
 0x2d6   :  { %v1509_v1 = vadd.f32 %v1506_v63, %v1505_v28 }
 0x2d8   :  { %v1510_v36 = vadd.f32 %v1509_v1, %v1507_v59 }
 0x2da   :  { %v1511_v3 = vadd.f32 %v1510_v36, %v1508_v2 }
 0x2dc   :  { %v1512_v5 = vrot.slane %v1511_v3, 4 }
 0x2de   :  { %v1513_v56 = vadd.f32 %v1512_v5, %v1511_v3 }
 0x2e0   :  { %v1514_v21 = vrot.slane %v1513_v56, 2 }
 0x2e2   :  { %v1515_v18 = vadd.f32 %v1514_v21, %v1513_v56 }
 0x2e4   :  { %v1516_v30 = vrot.slane %v1515_v18, 1 }
 0x2e6   :  { %v1517_v33 = vadd.f32 %v1516_v30, %v1515_v18 }
 0x2e8   :  { %v1518_v37 = vmul.f32 0.03125, %v1517_v33 }
 0x2ea   :  { %v1519_v45 = vadd.f32 1e-05, %v1518_v37 }
 0x2ec   :  { %1807 = vrsqrt.f32 %v1519_v45 }
 0x2f6   :  { %v1808_v29 = vpop.eup %1807 }
 0x2f7   :  { %v1522_v58 = vmul.f32 %v1808_v29, %v1502_v50  ;;  %v1521_v23 = vmul.f32 %v1808_v29, %v1501_v11  ;;  %v1523_v16 = vmul.f32 %v1808_v29, %v1503_v34  ;;  %v1524_v24 = vmul.f32 %v1808_v29, %v1504_v54 }
 0x2f9   :  { %v1550_v52 = vmul.f32 %v1537_v9, %v1522_v58  ;;  %v1549_v39 = vmul.f32 %v1532_v32, %v1521_v23  ;;  %v1551_v53 = vmul.f32 %v1542_v38, %v1523_v16  ;;  %v1552_v47 = vmul.f32 %v1547_v55, %v1524_v24 }
 0x2fb   :  { %v1577_v20 = vadd.f32 %v1560_v12, %v1549_v39  ;;  %v1578_v6 = vadd.f32 %v1565_v62, %v1550_v52  ;;  %v1579_v48 = vadd.f32 %v1570_v27, %v1551_v53  ;;  %v1580_v14 = vadd.f32 %v1575_v17, %v1552_v47 }
 0x2fd   :  { %v1582_v42 = vpack.c.bf16 %v1578_v6, %v1577_v20  ;;  %v1583_v43 = vpack.c.bf16 %v1580_v14, %v1579_v48 }
 0x2ff   :  { %1688 = vmatpush3.bf16.msra.mxu1 %v1582_v42 }
 0x300   :  { %1689 = vmatprep.subr.bf16.mxu1 %v2852_v8 }
 0x303   :  { %1690 = vmatpush3.bf16.msra.mxu1 %v1583_v43 }
 0x306   :  { %1692 = vmatmul.mubr.msk.bf16.vlgmr.msra.gmra.mrb[4].mxu1 %vm1586_vm15, %v1581_v49 }
 0x3d9   :  { %v1624_v19 = vpop.f32.mrb[4].mxu1 }
 0x3da   :  { %v1625_v13 = vadd.f32 %v1624_v19, %v1585_v0  ;;  %v1693_v26 = vpop.f32.mrb[5].mxu1 }
 0x3db   :  { %v1627_v35 = vpop.f32.mrb[6].mxu1 }
 0x3dc   :  { %1630 = vst [vmem:[#allocation3] sm:$0x1] %v1625_v13  ;;  %v1694_v8 = vpop.f32.mrb[7].mxu1 }
 0x3dd   :  { %1820 = shalt.err (!%p1817_p4)
}
 0x3de   :  { %s1821_s10 = scalar_lea.hbm %s2770_s11, 16 }
 0x3df   :  { %p1822_p5 = scmp.ne.s32.totalorder %s2770_s11, %s1821_s10  ;;  %p1825_p6 = scmp.lt.u32.totalorder %s1821_s10, %s2770_s11 }
 0x3e1   :  { %p1827_p7 = pnand %p1825_p6, %p1822_p5 }
 0x3e3   :  { %1830 = shalt.err (!%p1827_p7)
}
 0x3e4   :  { %1640 = dma.vmem_to_hbm [thread:$0]  %s1638_s26, 16, %s2770_s11, [#allocation4]  }
 0x3e5   :  { %1831 = dma.done.wait [#allocation4], 16  }
 0x3e6   :  { %1832 = vsyncadd [#allocation4], 4294967280 }
 0x3e7   :  { %1644 = vsyncpa [#allocation4], 1 }

</bundles_post_ra>
